<compile_context>
chip_gen: v5e
topology: v5e:2x2
jax: 0.10.0
libtpu: 0.0.40
codegen_flags: <defaults>
</compile_context>

<pallas_src>
import jax
import jax.numpy as jnp
from jax import lax
from jax.experimental import pallas as pl
from jax.experimental.pallas import tpu as pltpu

_LANE = 128
_SUBLANE = 8
_HOMO_BLOCK_BYTES = 2 * 1024 * 1024      # per-operand per-block VMEM budget
_SMALL_PROBLEM_BYTES = 4 * 1024 * 1024   # whole problem fits -> single block, no grid
_VMEM_LIMIT_CAP = 48 * 1024 * 1024       # leave headroom on v7x (64 MiB physical)


def _round_up(x, m):
    return (x + m - 1) // m * m


# ----------------------------------------------------------------------------
# HomoLayer kernel: softmax(q - r) over channels, times r.
# Blocks are (..., C, S, 128); the channel axis is always axis -3.
# ----------------------------------------------------------------------------
def _homo_kernel(q_ref, r_ref, o_ref):
    q = q_ref[...].astype(jnp.float32)
    r = r_ref[...].astype(jnp.float32)
    diff = q - r
    m = jnp.max(diff, axis=-3, keepdims=True)           # VPU elementwise max over channels
    e = jnp.exp(diff - m)                                # EUP
    s = jnp.sum(e, axis=-3, keepdims=True)               # VPU elementwise add over channels
    inv = pl.reciprocal(s, approx=True)                   # EUP, not a VPU divide
    o_ref[...] = ((e * r) * inv).astype(o_ref.dtype)


def homo_layer(query_features, reference_features):
    """softmax(query - reference, axis=1) * reference for NCHW float inputs."""
    B, C, H, W = query_features.shape
    dtype = query_features.dtype
    itemsize = jnp.dtype(dtype).itemsize
    WH = H * W

    # Lane-dense layout: pad flattened spatial to a multiple of 128 and fold it
    # into (rows, 128) so the channel softmax reduces over a leading axis.
    wh_pad = _round_up(WH, _LANE)
    n_rows = wh_pad // _LANE

    bytes_per_row = C * _LANE * itemsize
    rows_budget = max(1, _HOMO_BLOCK_BYTES // bytes_per_row)
    if n_rows <= max(rows_budget, _SUBLANE):
        s_tile = n_rows                                   # single spatial tile per batch
    else:
        s_tile = max(_SUBLANE, (rows_budget // _SUBLANE) * _SUBLANE)
        n_rows = _round_up(n_rows, s_tile)
        wh_pad = n_rows * _LANE

    def to_padded(x):
        x = x.reshape(B, C, WH)
        if wh_pad != WH:
            x = jnp.pad(x, ((0, 0), (0, 0), (0, wh_pad - WH)))
        return x.reshape(B, C, n_rows, _LANE)

    q4 = to_padded(query_features)
    r4 = to_padded(reference_features)

    total_bytes = 3 * B * C * wh_pad * itemsize
    if total_bytes <= _SMALL_PROBLEM_BYTES:
        # Tiny problem: one whole-array block, no grid -> no per-step overhead.
        out4 = pl.pallas_call(
            _homo_kernel,
            out_shape=jax.ShapeDtypeStruct((B, C, n_rows, _LANE), dtype),
        )(q4, r4)
    else:
        spec = pl.BlockSpec((None, C, s_tile, _LANE), lambda b, s: (b, 0, s, 0))
        block_bytes = C * s_tile * _LANE * itemsize
        vmem_limit = min(max(32 * 1024 * 1024, 8 * block_bytes), _VMEM_LIMIT_CAP)
        n_elems = B * C * wh_pad
        out4 = pl.pallas_call(
            _homo_kernel,
            out_shape=jax.ShapeDtypeStruct((B, C, n_rows, _LANE), dtype),
            grid=(B, n_rows // s_tile),
            in_specs=[spec, spec],
            out_specs=spec,
            cost_estimate=pl.CostEstimate(
                flops=5 * n_elems,
                transcendentals=n_elems,
                bytes_accessed=3 * n_elems * itemsize,
            ),
            compiler_params=pltpu.CompilerParams(
                dimension_semantics=("parallel", "parallel"),
                vmem_limit_bytes=vmem_limit,
            ),
        )(q4, r4)

    out = out4.reshape(B, C, wh_pad)[:, :, :WH]
    return out.reshape(B, C, H, W)


# ----------------------------------------------------------------------------
# CoAttentionLayer: flash-style attention over reference spatial positions.
# ----------------------------------------------------------------------------
def _make_xattn_kernel(nk_valid, nk_pad, tk):
    need_mask = nk_pad != nk_valid

    def kernel(q_ref, k_ref, v_ref, o_ref, m_sc, l_sc, acc_sc):
        ki = pl.program_id(2)

        @pl.when(ki == 0)
        def _():
            m_sc[...] = jnp.full_like(m_sc, -jnp.inf)
            l_sc[...] = jnp.zeros_like(l_sc)
            acc_sc[...] = jnp.zeros_like(acc_sc)

        # s[q, k] = Q[q, :] . K[k, :]   (MXU, f32 accumulation)
        s = lax.dot_general(q_ref[...], k_ref[...],
                            (((1,), (1,)), ((), ())),
                            preferred_element_type=jnp.float32)
        if need_mask:
            col = ki * tk + lax.broadcasted_iota(jnp.int32, s.shape, 1)
            s = jnp.where(col < nk_valid, s, -1e30)

        m_new = jnp.maximum(m_sc[...], jnp.max(s, axis=1, keepdims=True))
        alpha = jnp.exp(m_sc[...] - m_new)
        p = jnp.exp(s - m_new)
        l_sc[...] = alpha * l_sc[...] + jnp.sum(p, axis=1, keepdims=True)
        acc_sc[...] = alpha * acc_sc[...] + jnp.dot(
            p.astype(v_ref.dtype), v_ref[...], preferred_element_type=jnp.float32)
        m_sc[...] = m_new

        @pl.when(ki == pl.num_programs(2) - 1)
        def _():
            o_ref[...] = (acc_sc[...] *
                          pl.reciprocal(l_sc[...], approx=True)).astype(o_ref.dtype)

    return kernel


def co_attention_layer(query_features, reference_features, wq, bq, wk, bk):
    """CoAttentionLayer forward.  query/reference: (B, C, H, W); wq/wk: (Dh, C)."""
    B, C, H, W = query_features.shape
    dtype = query_features.dtype
    itemsize = jnp.dtype(dtype).itemsize
    N = H * W
    Dh = wq.shape[0]

    # 1x1 convolutions == per-pixel matmuls (done in XLA, see TODO above).
    q = jnp.einsum('oc,bchw->bhwo', wq, query_features) + bq          # (B,H,W,Dh)
    k = jnp.einsum('oc,bchw->bhwo', wk, reference_features) + bk      # (B,H,W,Dh)
    q = q.reshape(B, N, Dh)
    k = k.reshape(B, N, Dh)
    v = reference_features.reshape(B, C, N).transpose(0, 2, 1)        # (B,N,C)

    # Zero-pad the head dim to a lane-dense multiple of 128 (does not change Q.K^T).
    d_pad = _round_up(Dh, _LANE)
    if d_pad != Dh:
        q = jnp.pad(q, ((0, 0), (0, 0), (0, d_pad - Dh)))
        k = jnp.pad(k, ((0, 0), (0, 0), (0, d_pad - Dh)))

    # Zero-pad the value/output channel axis to a multiple of 128 so the output
    # tile is lane-dense (unmasked vst); the padded channels stay exactly zero.
    c_pad = _round_up(C, _LANE)
    if c_pad != C:
        v = jnp.pad(v, ((0, 0), (0, 0), (0, c_pad - C)))

    # Tile sizes: single tile for small feature maps, flash tiling otherwise.
    if N <= 512:
        tq = tk = N
    else:
        tq, tk = 128, 512
    nq_pad = _round_up(N, tq)
    nk_pad = _round_up(N, tk)
    if nq_pad != N:
        q = jnp.pad(q, ((0, 0), (0, nq_pad - N), (0, 0)))
    if nk_pad != N:
        k = jnp.pad(k, ((0, 0), (0, nk_pad - N), (0, 0)))
        v = jnp.pad(v, ((0, 0), (0, nk_pad - N), (0, 0)))

    flops = B * nq_pad * nk_pad * (2 * d_pad + 2 * c_pad + 5)
    bytes_accessed = itemsize * B * (nq_pad * d_pad + nk_pad * d_pad
                                     + nk_pad * c_pad + nq_pad * c_pad)

    out = pl.pallas_call(
        _make_xattn_kernel(N, nk_pad, tk),
        out_shape=jax.ShapeDtypeStruct((B, nq_pad, c_pad), dtype),
        grid=(B, nq_pad // tq, nk_pad // tk),
        in_specs=[
            pl.BlockSpec((None, tq, d_pad), lambda b, qi, ki: (b, qi, 0)),
            pl.BlockSpec((None, tk, d_pad), lambda b, qi, ki: (b, ki, 0)),
            pl.BlockSpec((None, tk, c_pad), lambda b, qi, ki: (b, ki, 0)),
        ],
        out_specs=pl.BlockSpec((None, tq, c_pad), lambda b, qi, ki: (b, qi, 0)),
        scratch_shapes=[
            pltpu.VMEM((tq, 1), jnp.float32),       # running max
            pltpu.VMEM((tq, 1), jnp.float32),       # running denom
            pltpu.VMEM((tq, c_pad), jnp.float32),   # output accumulator
        ],
        cost_estimate=pl.CostEstimate(
            flops=flops,
            transcendentals=B * nq_pad * nk_pad,
            bytes_accessed=bytes_accessed,
        ),
        compiler_params=pltpu.CompilerParams(
            dimension_semantics=("parallel", "parallel", "arbitrary"),
            vmem_limit_bytes=_VMEM_LIMIT_CAP,
        ),
    )(q, k, v)

    out = out[:, :N, :C]                                # drop query / channel padding
    return out.transpose(0, 2, 1).reshape(B, C, H, W)   # (B,C,H,W)


# ----------------------------------------------------------------------------
# getBothDifferences forward.
# ----------------------------------------------------------------------------
def get_both_differences(query_features, reference_features, params):
    B, C2, H, W = query_features.shape
    C = C2 // 2
    q_orig = query_features[:, :C]
    q_trans = query_features[:, C:]
    r_orig = reference_features[:, :C]

    cross_diff = co_attention_layer(q_orig, r_orig,
                                    params['wq'], params['bq'],
                                    params['wk'], params['bk'])
    reduce_diff = homo_layer(q_orig, q_trans)
    diff = cross_diff + reduce_diff
    return jnp.concatenate([q_orig, diff], axis=1)


# ----------------------------------------------------------------------------
# Pure-JAX reference of the PyTorch semantics (for verification).
# ----------------------------------------------------------------------------
def _reference(query_features, reference_features, params):
    B, C2, H, W = query_features.shape
    C = C2 // 2
    q_orig = query_features[:, :C]
    q_trans = query_features[:, C:]
    r_orig = reference_features[:, :C]

    Q = jnp.einsum('oc,bchw->bohw', params['wq'], q_orig) + params['bq'][None, :, None, None]
    K = jnp.einsum('oc,bchw->bohw', params['wk'], r_orig) + params['bk'][None, :, None, None]
    V = r_orig.reshape(B, C, H * W)
    attn = jnp.einsum('bcij,bckl->bijkl', Q, K).reshape(B, H, W, H * W)
    attn = jax.nn.softmax(attn, axis=3)
    cross = jnp.einsum('bijp,bcp->bcij', attn, V)

    corr = jax.nn.softmax(q_orig - q_trans, axis=1)
    reduce = corr * q_trans

    return jnp.concatenate([q_orig, cross + reduce], axis=1)


if __name__ == "__main__":
    key = jax.random.PRNGKey(0)
    kq, kr, k1, k2, k3, k4 = jax.random.split(key, 6)
    B, C2, H, W = 2, 32, 16, 16          # full channels = 32 -> C = 16, hidden = 2
    C = C2 // 2
    hidden = C // 8

    q = jax.random.normal(kq, (B, C2, H, W), dtype=jnp.float32)
    r = jax.random.normal(kr, (B, C2, H, W), dtype=jnp.float32)
    params = {
        'wq': 0.1 * jax.random.normal(k1, (hidden, C), dtype=jnp.float32),
        'bq': 0.1 * jax.random.normal(k2, (hidden,), dtype=jnp.float32),
        'wk': 0.1 * jax.random.normal(k3, (hidden, C), dtype=jnp.float32),
        'bk': 0.1 * jax.random.normal(k4, (hidden,), dtype=jnp.float32),
    }

    out = get_both_differences(q, r, params)
    out = jax.block_until_ready(out)

    ref = _reference(q, r, params)
    assert out.shape == (B, C2, H, W)
    max_err = float(jnp.max(jnp.abs(out - ref)))
    # approx=True reciprocal (EUP) gives ~1e-3-level relative deviation; loosen tolerance.
    assert jnp.allclose(out, ref, atol=5e-3, rtol=5e-3), f"mismatch vs reference (max abs err {max_err})"

    print("KERNEL_OK")
</pallas_src>

<mosaic_0001>
module attributes {stable_mosaic.version = 11 : i64} {
  func.func @kernel(%arg0: i32, %arg1: i32, %arg2: i32, %arg3: memref<1x256x128xf32, #tpu.memory_space<vmem>>, %arg4: memref<1x256x128xf32, #tpu.memory_space<vmem>>, %arg5: memref<1x256x128xf32, #tpu.memory_space<vmem>>, %arg6: memref<1x256x128xf32, #tpu.memory_space<vmem>>, %arg7: memref<256x1xf32, #tpu.memory_space<vmem>>, %arg8: memref<256x1xf32, #tpu.memory_space<vmem>>, %arg9: memref<256x128xf32, #tpu.memory_space<vmem>>) attributes {dimension_semantics = [#tpu.dimension_semantics<parallel>, #tpu.dimension_semantics<parallel>, #tpu.dimension_semantics<arbitrary>], iteration_bounds = array<i64: 2, 1, 1>, scalar_prefetch = 0 : i64, scratch_operands = 3 : i64, tpu.core_type = #tpu.core_type<tc>, window_params = [{transform_indices = @transform_0, window_bounds = array<i64: 1, 256, 128>}, {transform_indices = @transform_1, window_bounds = array<i64: 1, 256, 128>}, {transform_indices = @transform_2, window_bounds = array<i64: 1, 256, 128>}, {transform_indices = @transform_3, window_bounds = array<i64: 1, 256, 128>}]} {
    %c0_i32 = arith.constant 0 : i32
    %0 = arith.cmpi eq, %arg2, %c0_i32 : i32
    %1 = arith.extui %0 : i1 to i32
    %c0_i32_0 = arith.constant 0 : i32
    %2 = arith.cmpi ne, %1, %c0_i32_0 : i32
    scf.if %2 {
      %cst_28 = arith.constant 0xFF800000 : f32
      %36 = vector.broadcast %cst_28 : f32 to vector<256x1xf32>
      %c0_29 = arith.constant 0 : index
      %c0_30 = arith.constant 0 : index
      %37 = vector.load %arg7[%c0_29, %c0_30] : memref<256x1xf32, #tpu.memory_space<vmem>>, vector<256x1xf32>
      tpu.vector_store %arg7[%c0_29, %c0_30], %36 {strides = array<i32>} : memref<256x1xf32, #tpu.memory_space<vmem>>, vector<256x1xf32>,
      %cst_31 = arith.constant 0.000000e+00 : f32
      %38 = vector.broadcast %cst_31 : f32 to vector<256x1xf32>
      %c0_32 = arith.constant 0 : index
      %c0_33 = arith.constant 0 : index
      %39 = vector.load %arg8[%c0_32, %c0_33] : memref<256x1xf32, #tpu.memory_space<vmem>>, vector<256x1xf32>
      tpu.vector_store %arg8[%c0_32, %c0_33], %38 {strides = array<i32>} : memref<256x1xf32, #tpu.memory_space<vmem>>, vector<256x1xf32>,
      %cst_34 = arith.constant 0.000000e+00 : f32
      %40 = vector.broadcast %cst_34 : f32 to vector<256x128xf32>
      %c0_35 = arith.constant 0 : index
      %c0_36 = arith.constant 0 : index
      %41 = vector.load %arg9[%c0_35, %c0_36] : memref<256x128xf32, #tpu.memory_space<vmem>>, vector<256x128xf32>
      tpu.vector_store %arg9[%c0_35, %c0_36], %40 {strides = array<i32>} : memref<256x128xf32, #tpu.memory_space<vmem>>, vector<256x128xf32>,
    } else {
    }
    %c0 = arith.constant 0 : index
    %c0_1 = arith.constant 0 : index
    %c0_2 = arith.constant 0 : index
    %3 = vector.load %arg3[%c0, %c0_1, %c0_2] : memref<1x256x128xf32, #tpu.memory_space<vmem>>, vector<1x256x128xf32>
    %4 = vector.shape_cast %3 : vector<1x256x128xf32> to vector<256x128xf32>
    %c0_3 = arith.constant 0 : index
    %c0_4 = arith.constant 0 : index
    %c0_5 = arith.constant 0 : index
    %5 = vector.load %arg4[%c0_3, %c0_4, %c0_5] : memref<1x256x128xf32, #tpu.memory_space<vmem>>, vector<1x256x128xf32>
    %6 = vector.shape_cast %5 : vector<1x256x128xf32> to vector<256x128xf32>
    %cst = arith.constant dense<0.000000e+00> : vector<256x256xf32>
    %7 = tpu.matmul %4, %6, %cst {dimension_numbers = #tpu.dot_dimension_numbers<[1], [1], [0], [0], [0, 0, 1, 0], [], []>} : vector<256x128xf32>, vector<256x128xf32>, vector<256x256xf32> -> vector<256x256xf32>
    %c0_6 = arith.constant 0 : index
    %c0_7 = arith.constant 0 : index
    %8 = vector.load %arg7[%c0_6, %c0_7] : memref<256x1xf32, #tpu.memory_space<vmem>>, vector<256x1xf32>
    %cst_8 = arith.constant dense<0xFF800000> : vector<256xf32>
    %9 = vector.multi_reduction <maximumf>, %7, %cst_8 [1] : vector<256x256xf32> to vector<256xf32>
    %10 = vector.shape_cast %9 : vector<256xf32> to vector<256x1xf32>
    %11 = arith.maximumf %8, %10 : vector<256x1xf32>
    %c0_9 = arith.constant 0 : index
    %c0_10 = arith.constant 0 : index
    %12 = vector.load %arg7[%c0_9, %c0_10] : memref<256x1xf32, #tpu.memory_space<vmem>>, vector<256x1xf32>
    %13 = arith.subf %12, %11 : vector<256x1xf32>
    %14 = math.exp %13 : vector<256x1xf32>
    %15 = vector.broadcast %11 : vector<256x1xf32> to vector<256x256xf32>
    %16 = arith.subf %7, %15 : vector<256x256xf32>
    %17 = math.exp %16 : vector<256x256xf32>
    %c0_11 = arith.constant 0 : index
    %c0_12 = arith.constant 0 : index
    %18 = vector.load %arg8[%c0_11, %c0_12] : memref<256x1xf32, #tpu.memory_space<vmem>>, vector<256x1xf32>
    %19 = arith.mulf %14, %18 : vector<256x1xf32>
    %cst_13 = arith.constant dense<0.000000e+00> : vector<256xf32>
    %20 = vector.multi_reduction <add>, %17, %cst_13 [1] : vector<256x256xf32> to vector<256xf32>
    %21 = vector.shape_cast %20 : vector<256xf32> to vector<256x1xf32>
    %22 = arith.addf %19, %21 : vector<256x1xf32>
    %c0_14 = arith.constant 0 : index
    %c0_15 = arith.constant 0 : index
    %23 = vector.load %arg8[%c0_14, %c0_15] : memref<256x1xf32, #tpu.memory_space<vmem>>, vector<256x1xf32>
    tpu.vector_store %arg8[%c0_14, %c0_15], %22 {strides = array<i32>} : memref<256x1xf32, #tpu.memory_space<vmem>>, vector<256x1xf32>,
    %c0_16 = arith.constant 0 : index
    %c0_17 = arith.constant 0 : index
    %24 = vector.load %arg9[%c0_16, %c0_17] : memref<256x128xf32, #tpu.memory_space<vmem>>, vector<256x128xf32>
    %25 = vector.broadcast %14 : vector<256x1xf32> to vector<256x128xf32>
    %26 = arith.mulf %25, %24 : vector<256x128xf32>
    %c0_18 = arith.constant 0 : index
    %c0_19 = arith.constant 0 : index
    %c0_20 = arith.constant 0 : index
    %27 = vector.load %arg5[%c0_18, %c0_19, %c0_20] : memref<1x256x128xf32, #tpu.memory_space<vmem>>, vector<1x256x128xf32>
    %28 = vector.shape_cast %27 : vector<1x256x128xf32> to vector<256x128xf32>
    %cst_21 = arith.constant dense<0.000000e+00> : vector<256x128xf32>
    %29 = tpu.matmul %17, %28, %cst_21 {dimension_numbers = #tpu.dot_dimension_numbers<[1], [0], [0], [1], [0, 0, 1, 1], [], []>} : vector<256x256xf32>, vector<256x128xf32>, vector<256x128xf32> -> vector<256x128xf32>
    %30 = arith.addf %26, %29 : vector<256x128xf32>
    %c0_22 = arith.constant 0 : index
    %c0_23 = arith.constant 0 : index
    %31 = vector.load %arg9[%c0_22, %c0_23] : memref<256x128xf32, #tpu.memory_space<vmem>>, vector<256x128xf32>
    tpu.vector_store %arg9[%c0_22, %c0_23], %30 {strides = array<i32>} : memref<256x128xf32, #tpu.memory_space<vmem>>, vector<256x128xf32>,
    %c0_24 = arith.constant 0 : index
    %c0_25 = arith.constant 0 : index
    %32 = vector.load %arg7[%c0_24, %c0_25] : memref<256x1xf32, #tpu.memory_space<vmem>>, vector<256x1xf32>
    tpu.vector_store %arg7[%c0_24, %c0_25], %11 {strides = array<i32>} : memref<256x1xf32, #tpu.memory_space<vmem>>, vector<256x1xf32>,
    %c0_i32_26 = arith.constant 0 : i32
    %33 = arith.cmpi eq, %arg2, %c0_i32_26 : i32
    %34 = arith.extui %33 : i1 to i32
    %c0_i32_27 = arith.constant 0 : i32
    %35 = arith.cmpi ne, %34, %c0_i32_27 : i32
    scf.if %35 {
      %c0_28 = arith.constant 0 : index
      %c0_29 = arith.constant 0 : index
      %36 = vector.load %arg9[%c0_28, %c0_29] : memref<256x128xf32, #tpu.memory_space<vmem>>, vector<256x128xf32>
      %c0_30 = arith.constant 0 : index
      %c0_31 = arith.constant 0 : index
      %37 = vector.load %arg8[%c0_30, %c0_31] : memref<256x1xf32, #tpu.memory_space<vmem>>, vector<256x1xf32>
      %38 = tpu.reciprocal %37 {approx = true} : vector<256x1xf32> -> vector<256x1xf32>
      %39 = vector.broadcast %38 : vector<256x1xf32> to vector<256x128xf32>
      %40 = arith.mulf %36, %39 : vector<256x128xf32>
      %c0_32 = arith.constant 0 : index
      %c0_33 = arith.constant 0 : index
      %c0_34 = arith.constant 0 : index
      %41 = vector.load %arg6[%c0_32, %c0_33, %c0_34] : memref<1x256x128xf32, #tpu.memory_space<vmem>>, vector<1x256x128xf32>
      %42 = vector.shape_cast %41 : vector<1x256x128xf32> to vector<256x128xf32>
      %43 = vector.shape_cast %40 : vector<256x128xf32> to vector<1x256x128xf32>
      tpu.vector_store %arg6[%c0_32, %c0_33, %c0_34], %43 {strides = array<i32>} : memref<1x256x128xf32, #tpu.memory_space<vmem>>, vector<1x256x128xf32>,
    } else {
    }
    return
  }
  func.func @transform_0(%arg0: i32, %arg1: i32, %arg2: i32) -> (i32, i32, i32) {
    %c0_i32 = arith.constant 0 : i32
    %c0_i32_0 = arith.constant 0 : i32
    return %arg0, %arg1, %c0_i32 : i32, i32, i32
  }
  func.func @transform_1(%arg0: i32, %arg1: i32, %arg2: i32) -> (i32, i32, i32) {
    %c0_i32 = arith.constant 0 : i32
    %c0_i32_0 = arith.constant 0 : i32
    return %arg0, %arg2, %c0_i32 : i32, i32, i32
  }
  func.func @transform_2(%arg0: i32, %arg1: i32, %arg2: i32) -> (i32, i32, i32) {
    %c0_i32 = arith.constant 0 : i32
    %c0_i32_0 = arith.constant 0 : i32
    return %arg0, %arg2, %c0_i32 : i32, i32, i32
  }
  func.func @transform_3(%arg0: i32, %arg1: i32, %arg2: i32) -> (i32, i32, i32) {
    %c0_i32 = arith.constant 0 : i32
    %c0_i32_0 = arith.constant 0 : i32
    return %arg0, %arg1, %c0_i32 : i32, i32, i32
  }
}

</mosaic_0001>

<bundles_post_ra>
// kernel: tpu_custom_call.1
= control target key start
LH: loop header
LB: loop body
LE: loop exit
PB: predicated region body
PF: predicated region fallthrough
CT: control target
= control target key end

     0   :  { %s4665_s0 = inlined_call_operand.hbm [shape: f32[2,256,128], index: 0, kind: input, shape index: {}]   ;;  %s4666_s1 = inlined_call_operand.hbm [shape: f32[2,256,128], index: 1, kind: input, shape index: {}]   ;;  %s4667_s2 = inlined_call_operand.hbm [shape: f32[2,256,128], index: 2, kind: input, shape index: {}]   ;;  %s4668_s3 = inlined_call_operand.hbm [shape: f32[2,256,128], index: 3, kind: output, shape index: {}]  }
   0x1   :  { %4724 = sst [smem:[#allocation94_spill]] %s4666_s1 }
   0x2   :  { %8 = vsyncpa [#allocation6], 0 }
   0x3   :  { %10 = vsyncpa [#allocation6 + $0x1], 0 }
   0x4   :  { %11 = vsyncpa [#allocation9], 0 }
   0x5   :  { %13 = vsyncpa [#allocation9 + $0x1], 0 }
   0x6   :  { %14 = vsyncpa [#allocation7], 0 }
   0x7   :  { %16 = vsyncpa [#allocation7 + $0x1], 0  ;;  %s3161_s12 = smov 0   ;;  %s3163_s13 = smov 0  }
   0x8   :  { %s3165_s14 = smov 0   ;;  %s3167_s15 = smov 0  }
   0x9   :  { %s3169_s16 = smov 0   ;;  %s3171_s17 = smov 0  }
   0xa LB: > { %4725 = sst [smem:[#allocation15_spill]] %s3120_s14  ;;  %s3192_s18 = sadd.s32 4294967295, %s3132_s17   ;;  %s3132_s17 = sphi %s3171_s17, %s22_s17   ;;  %s3128_s16 = sphi %s3169_s16, %s4942_s16   ;;  %s3124_s15 = sphi %s3167_s15, %s4941_s15   ;;  %s3120_s14 = sphi %s3165_s14, %s4945_s14   ;;  %s3116_s13 = sphi %s3163_s13, %s4944_s13   ;;  %s3112_s12 = sphi %s3161_s12, %s4943_s12  }
   0xb   : > { %4726 = sst [smem:[#allocation16_spill]] %s3128_s16  ;;  %s2592_s19 = sadd.s32 4294967294, %s3132_s17  }
   0xc   : > { %4727 = sst [smem:[#allocation17_spill]] %s3132_s17  ;;  %s41_s20 = sadd.s32 1, %s3128_s16 }
   0xd   : > { %s50_s21 = sadd.s32 1, %s3120_s14  ;;  %p43_p0 = scmp.ge.s32.totalorder %s41_s20, 2 }
   0xe   : > { %p57_p1 = scmp.ne.s32.totalorder %s3120_s14, %s3116_s13  ;;  %p58_p2 = scmp.eq.s32.totalorder %s3132_s17, 0 }
   0xf   : > { %p63_p3 = scmp.ne.s32.totalorder %s3116_s13, %s3112_s12  ;;  %s4947_s20 = smov (%p43_p0, %s41_s20), 0 }
  0x10   : > { %4728 = sst [smem:[#allocation18_spill]] %s4947_s20  ;;  %p3204_p4 = por %p58_p2, %p57_p1 }
  0x11   : > { %p64_p5 = scmp.eq.s32.totalorder %s3192_s18, 0  ;;  %s45_s23 = ssub.s32 %s3128_s16, %s4947_s20 }
  0x12   : > { %p145_p6 = scmp.eq.s32.totalorder %s3192_s18, 1  ;;  %p48_p7 = scmp.eq.s32.totalorder %s45_s23, 0 }
  0x13   : > { %p3212_p8 = por %p64_p5, %p63_p3  ;;  %p151_p10 = scmp.eq.s32.totalorder %s2592_s19, 1 }
  0x14   : > { %p3216_p9 = por %p145_p6, %p57_p1  ;;  %p2594_p12 = scmp.ge.s32.totalorder %s3132_s17, 2 }
  0x15   : > { %s3221_s26 = scalar_select %p48_p7, %s3120_s14, %s50_s21  }
  0x16   : > { %p3223_p11 = por %p151_p10, %p63_p3  ;;  %p2640_p13 = scmp.lt.s32.totalorder %s3132_s17, 2 }
  0x17   : > { %4732 = sst [smem:[#allocation19_spill]] %s3221_s26  ;;  %s171_s28 = sand.u32 1, %s3120_s14  }
  0x18   : > { %s3230_s29 = sshll.u32 %s171_s28, 8  ;;  %s2614_s30 = sshll.u32 %s3128_s16, 8 }
  0x19   : > { %p3235_p0 = pnand %p2640_p13, %p3204_p4  ;;  %s195_s5 = sand.u32 1, %s3132_s17  }
  0x1a   : > { %s4735_s1 = sld [smem:[#allocation94_spill]]  ;;  %s199_s10 = scalar_lea.vmem [#allocation8], %s3230_s29 }
  0x1b   : > { %s209_s11 = sshll.u32 %s199_s10, 4  ;;  %s196_s19 = scalar_lea.sflag [#allocation9], %s195_s5  ;;  %s210_s11 = int_to_ptr.vmem [resolvable:$true] %s209_s11 }
  0x1c   : > { %s3134_s21 = smov 128   ;;  %s3135_s22 = smov 8  }
  0x1d   : > { %p2604_p1 = scmp.ge.s32.totalorder %s3132_s17, 1  ;;  %p241_p2 = scmp.lt.s32.totalorder %s3132_s17, 3 }
  0x1e   : > { %s172_s5 = scalar_lea.sflag [#allocation6], %s171_s28  ;;  %s230_s16 = scalar_lea.hbm %s4667_s2, %s2614_s30 }
  0x1f   : > { %p3248_p3 = pnand %p2604_p1, %p241_p2  ;;  %s231_s26 = sshll.u32 %s230_s16, 4  ;;  %s232_s26 = int_to_ptr.hbm [resolvable:$true] %s231_s26 }
  0x20   : > { %s206_s8 = scalar_lea.hbm %s4735_s1, %s2614_s30  ;;  %s175_s1 = scalar_lea.vmem [#allocation5], %s3230_s29 }
  0x21   : > { %s207_s9 = sshll.u32 %s206_s8, 4  ;;  %s182_s8 = scalar_lea.hbm %s4665_s0, %s2614_s30  ;;  %s208_s9 = int_to_ptr.hbm [resolvable:$true] %s207_s9 }
  0x22   : > { %2632 = dma.hbm_to_vmem [thread:$0]  (!%p3235_p0), %s208_s9, 4096, %s210_s11, %s196_s19, %s3134_s21, %s3134_s21, %s3135_s22  }
  0x23   : > { %s183_s10 = sshll.u32 %s182_s8, 4  ;;  %s185_s20 = sshll.u32 %s175_s1, 4  ;;  %s184_s10 = int_to_ptr.hbm [resolvable:$true] %s183_s10  ;;  %s186_s20 = int_to_ptr.vmem [resolvable:$true] %s185_s20 }
  0x24   : > { %2629 = dma.hbm_to_vmem [thread:$0]  (!%p3235_p0), %s184_s10, 4096, %s186_s20, %s172_s5, %s3134_s21, %s3134_s21, %s3135_s22  }
  0x25   : > { %s223_s14 = scalar_lea.vmem [#allocation10], %s3230_s29  ;;  %245 = sbr.rel (%p3248_p3) target bundleno = 1717 (0x6b5), region = 32 }
  0x26   : > { %s233_s17 = sshll.u32 %s223_s14, 4  ;;  %s234_s17 = int_to_ptr.vmem [resolvable:$true] %s233_s17 }
  0x27   : > { %2635 = dma.hbm_to_vmem [thread:$0]  (!%p3235_p0), %s232_s26, 4096, %s234_s17, %s196_s19, %s3134_s21, %s3134_s21, %s3135_s22  }
  0x2a   : > { %s3267_s1 = sand.u32 1, %s3116_s13  }
  0x2b   : > { %s3270_s20 = sshll.u32 %s3267_s1, 8  ;;  %s248_s28 = scalar_lea.sflag [#allocation6], %s3267_s1 }
  0x2c   : > { %s3274_s16 = scalar_lea.vmem [#allocation5], %s3270_s20 }
  0x2d   : > { %3099 = dma.done.wait (%p3212_p8), %s248_s28, 4096  }
  0x2e   : > { %3101 = vsyncadd (%p3212_p8), %s248_s28, 4294963200  ;;  %s257_s14 = sand.u32 1, %s3192_s18   ;;  %s3282_s26 = scalar_lea.vmem [#allocation8], %s3270_s20 }
  0x2f   : > { %s258_s17 = scalar_lea.sflag [#allocation9], %s257_s14 }
  0x30   : > { %3103 = dma.done.wait (%p3212_p8), %s258_s17, 8192  }
  0x31   : > { %3105 = vsyncadd (%p3212_p8), %s258_s17, 4294959104  ;;  %v457_v0 = vld [vmem:[%s3282_s26 + $0x78] sm:$0xff]  ;;  %v456_v2 = vld [vmem:[%s3282_s26 + $0x70] sm:$0xff]  ;;  %vm313_vm0 = vcmask 7168   ;;  %s3620_s18 = scalar_lea.vmem [#allocation10], %s3270_s20  ;;  %s4418_s24 = scalar_lea.vmem [#allocation11], %s3270_s20 }
  0x32   : > { %v473_v1 = vld [vmem:[%s3282_s26 + $0xf8] sm:$0xff]  ;;  %474 = vmatpush.xpose.msra.mxu0 %v457_v0  ;;  %v472_v3 = vld [vmem:[%s3282_s26 + $0xf0] sm:$0xff]  ;;  %v455_v4 = vld [vmem:[%s3282_s26 + $0x68] sm:$0xff]  ;;  %s2617_s29 = sshll.u32 %s3124_s15, 8  ;;  %s2449_s21 = sshll.u32 %s4418_s24, 4  ;;  %s2450_s21 = int_to_ptr.vmem [resolvable:$true] %s2449_s21 }
  0x33   : > { %587 = vmatpush.xpose.msra.mxu1 %v473_v1  ;;  %v471_v5 = vld [vmem:[%s3282_s26 + $0xe8] sm:$0xff]  ;;  %v454_v6 = vld [vmem:[%s3282_s26 + $0x60] sm:$0xff]  ;;  %v453_v8 = vld [vmem:[%s3282_s26 + $0x58] sm:$0xff]  ;;  %s2448_s19 = scalar_lea.hbm %s4668_s3, %s2617_s29  ;;  %s2435_s15 = scalar_lea.sflag [#allocation7], %s3267_s1 }
  0x34   : > { %v470_v7 = vld [vmem:[%s3282_s26 + $0xe0] sm:$0xff]  ;;  %v469_v9 = vld [vmem:[%s3282_s26 + $0xd8] sm:$0xff]  ;;  %v452_v10 = vld [vmem:[%s3282_s26 + $0x50] sm:$0xff]  ;;  %s2451_s22 = sshll.u32 %s2448_s19, 4  ;;  %s3066_s10 = scalar_lea.hbm %s4668_s3, 512  ;;  %s2452_s22 = int_to_ptr.hbm [resolvable:$true] %s2451_s22 }
  0x35   : > { %v468_v11 = vld [vmem:[%s3282_s26 + $0xd0] sm:$0xff]  ;;  %v451_v12 = vld [vmem:[%s3282_s26 + $0x48] sm:$0xff]  ;;  %v450_v14 = vld [vmem:[%s3282_s26 + $0x40] sm:$0xff]  ;;  %s3060_s23 = sshra.s32 %s2452_s22, 4  ;;  %s3061_s23 = int_to_ptr.hbm [resolvable:$true] %s3060_s23 }
  0x36   : > { %475 = vmatpush.xpose.msra.mxu0 %v456_v2  ;;  %v467_v13 = vld [vmem:[%s3282_s26 + $0xc8] sm:$0xff]  ;;  %v466_v15 = vld [vmem:[%s3282_s26 + $0xc0] sm:$0xff]  ;;  %v449_v16 = vld [vmem:[%s3282_s26 + $0x38] sm:$0xff]  ;;  %s3062_s6 = scalar_lea.hbm %s3061_s23, 256  ;;  %p3067_p7 = scmp.lt.s32.totalorder %s3061_s23, %s4668_s3 }
  0x37   : > { %588 = vmatpush.xpose.msra.mxu1 %v472_v3  ;;  %v465_v17 = vld [vmem:[%s3282_s26 + $0xb8] sm:$0xff]  ;;  %v448_v18 = vld [vmem:[%s3282_s26 + $0x30] sm:$0xff]  ;;  %v447_v20 = vld [vmem:[%s3282_s26 + $0x28] sm:$0xff]  ;;  %p3063_p4 = scmp.ne.s32.totalorder %s3061_s23, %s3062_s6  ;;  %p3068_p8 = scmp.lt.s32.totalorder %s3066_s10, %s3062_s6 }
  0x38   : > { %v464_v19 = vld [vmem:[%s3282_s26 + $0xb0] sm:$0xff]  ;;  %v463_v21 = vld [vmem:[%s3282_s26 + $0xa8] sm:$0xff]  ;;  %v446_v22 = vld [vmem:[%s3282_s26 + $0x20] sm:$0xff] }
  0x39   : > { %v462_v23 = vld [vmem:[%s3282_s26 + $0xa0] sm:$0xff]  ;;  %v445_v24 = vld [vmem:[%s3282_s26 + $0x18] sm:$0xff]  ;;  %v444_v26 = vld [vmem:[%s3282_s26 + $0x10] sm:$0xff]  ;;  %p3064_p5 = pnand %p3063_p4, %p3216_p9  ;;  %p3069_p10 = por %p3068_p8, %p3067_p7 }
  0x3a   : > { %476 = vmatpush.xpose.msra.mxu0 %v455_v4  ;;  %v461_v25 = vld [vmem:[%s3282_s26 + $0x98] sm:$0xff]  ;;  %v460_v27 = vld [vmem:[%s3282_s26 + $0x90] sm:$0xff]  ;;  %v443_v28 = vld [vmem:[%s3282_s26 + $0x8] sm:$0xff] }
  0x3b   : > { %589 = vmatpush.xpose.msra.mxu1 %v471_v5  ;;  %v459_v29 = vld [vmem:[%s3282_s26 + $0x88] sm:$0xff]  ;;  %v442_v30 = vld [vmem:[%s3282_s26] sm:$0xff]  ;;  %v412_v34 = vld [vmem:[%s3274_s16 + $0x10] sm:$0xff]  ;;  %p3065_p6 = pneg %p3064_p5 }
  0x3c   : > { %v458_v31 = vld [vmem:[%s3282_s26 + $0x80] sm:$0xff]  ;;  %v411_v33 = vld [vmem:[%s3274_s16 + $0x8] sm:$0xff]  ;;  %v413_v35 = vld [vmem:[%s3274_s16 + $0x18] sm:$0xff] }
  0x3d   : > { %v410_v32 = vld [vmem:[%s3274_s16] sm:$0xff]  ;;  %v415_v37 = vld [vmem:[%s3274_s16 + $0x28] sm:$0xff]  ;;  %v416_v38 = vld [vmem:[%s3274_s16 + $0x30] sm:$0xff]  ;;  %p3070_p13 = pnand %p3069_p10, %p3065_p6 }
  0x3e   : > { %477 = vmatpush.xpose.msra.mxu0 %v454_v6  ;;  %v414_v36 = vld [vmem:[%s3274_s16 + $0x20] sm:$0xff]  ;;  %v417_v39 = vld [vmem:[%s3274_s16 + $0x38] sm:$0xff]  ;;  %v419_v41 = vld [vmem:[%s3274_s16 + $0x48] sm:$0xff] }
  0x3f   : > { %590 = vmatpush.xpose.msra.mxu1 %v470_v7  ;;  %v418_v40 = vld [vmem:[%s3274_s16 + $0x40] sm:$0xff]  ;;  %v420_v42 = vld [vmem:[%s3274_s16 + $0x50] sm:$0xff]  ;;  %v421_v43 = vld [vmem:[%s3274_s16 + $0x58] sm:$0xff] }
  0x40   : > { %v422_v44 = vld [vmem:[%s3274_s16 + $0x60] sm:$0xff]  ;;  %v423_v45 = vld [vmem:[%s3274_s16 + $0x68] sm:$0xff]  ;;  %v424_v46 = vld [vmem:[%s3274_s16 + $0x70] sm:$0xff] }
  0x41   : > { %v425_v47 = vld [vmem:[%s3274_s16 + $0x78] sm:$0xff]  ;;  %v426_v50 = vld [vmem:[%s3274_s16 + $0x80] sm:$0xff]  ;;  %v427_v57 = vld [vmem:[%s3274_s16 + $0x88] sm:$0xff] }
  0x42   : > { %478 = vmatpush.xpose.msra.mxu0 %v453_v8  ;;  %v428_v61 = vld [vmem:[%s3274_s16 + $0x90] sm:$0xff]  ;;  %v429_v5 = vld [vmem:[%s3274_s16 + $0x98] sm:$0xff] }
  0x43   : > { %591 = vmatpush.xpose.msra.mxu1 %v469_v9 }
  0x46   : > { %479 = vmatpush.xpose.msra.mxu0 %v452_v10 }
  0x47   : > { %592 = vmatpush.xpose.msra.mxu1 %v468_v11 }
  0x4a   : > { %480 = vmatpush.xpose.msra.mxu0 %v451_v12 }
  0x4b   : > { %593 = vmatpush.xpose.msra.mxu1 %v467_v13 }
  0x4e   : > { %481 = vmatpush.xpose.msra.mxu0 %v450_v14 }
  0x4f   : > { %594 = vmatpush.xpose.msra.mxu1 %v466_v15 }
  0x52   : > { %482 = vmatpush.xpose.msra.mxu0 %v449_v16 }
  0x53   : > { %595 = vmatpush.xpose.msra.mxu1 %v465_v17 }
  0x56   : > { %483 = vmatpush.xpose.msra.mxu0 %v448_v18 }
  0x57   : > { %596 = vmatpush.xpose.msra.mxu1 %v464_v19 }
  0x5a   : > { %484 = vmatpush.xpose.msra.mxu0 %v447_v20  ;;  %v3136_v20 = vmov -inf  }
  0x5b   : > { %597 = vmatpush.xpose.msra.mxu1 %v463_v21  ;;  %314 = vst.msk [vmem:[#allocation2] sm:$0xff] %vm313_vm0, %v3136_v20 }
  0x5c   : > { %315 = vst.msk [vmem:[#allocation2 + $0x8] sm:$0xff] %vm313_vm0, %v3136_v20 }
  0x5d   : > { %316 = vst.msk [vmem:[#allocation2 + $0x10] sm:$0xff] %vm313_vm0, %v3136_v20 }
  0x5e   : > { %485 = vmatpush.xpose.msra.mxu0 %v446_v22  ;;  %317 = vst.msk [vmem:[#allocation2 + $0x18] sm:$0xff] %vm313_vm0, %v3136_v20  ;;  %v430_v22 = vld [vmem:[%s3274_s16 + $0xa0] sm:$0xff] }
  0x5f   : > { %598 = vmatpush.xpose.msra.mxu1 %v462_v23  ;;  %318 = vst.msk [vmem:[#allocation2 + $0x20] sm:$0xff] %vm313_vm0, %v3136_v20 }
  0x60   : > { %319 = vst.msk [vmem:[#allocation2 + $0x28] sm:$0xff] %vm313_vm0, %v3136_v20 }
  0x61   : > { %320 = vst.msk [vmem:[#allocation2 + $0x30] sm:$0xff] %vm313_vm0, %v3136_v20 }
  0x62   : > { %486 = vmatpush.xpose.msra.mxu0 %v445_v24  ;;  %321 = vst.msk [vmem:[#allocation2 + $0x38] sm:$0xff] %vm313_vm0, %v3136_v20 }
  0x63   : > { %599 = vmatpush.xpose.msra.mxu1 %v461_v25  ;;  %322 = vst.msk [vmem:[#allocation2 + $0x40] sm:$0xff] %vm313_vm0, %v3136_v20 }
  0x64   : > { %323 = vst.msk [vmem:[#allocation2 + $0x48] sm:$0xff] %vm313_vm0, %v3136_v20 }
  0x65   : > { %324 = vst.msk [vmem:[#allocation2 + $0x50] sm:$0xff] %vm313_vm0, %v3136_v20 }
  0x66   : > { %487 = vmatpush.xpose.msra.mxu0 %v444_v26  ;;  %325 = vst.msk [vmem:[#allocation2 + $0x58] sm:$0xff] %vm313_vm0, %v3136_v20  ;;  %v431_v26 = vld [vmem:[%s3274_s16 + $0xa8] sm:$0xff] }
  0x67   : > { %600 = vmatpush.xpose.msra.mxu1 %v460_v27  ;;  %326 = vst.msk [vmem:[#allocation2 + $0x60] sm:$0xff] %vm313_vm0, %v3136_v20 }
  0x68   : > { %327 = vst.msk [vmem:[#allocation2 + $0x68] sm:$0xff] %vm313_vm0, %v3136_v20 }
  0x69   : > { %328 = vst.msk [vmem:[#allocation2 + $0x70] sm:$0xff] %vm313_vm0, %v3136_v20 }
  0x6a   : > { %488 = vmatpush.xpose.msra.mxu0 %v443_v28  ;;  %329 = vst.msk [vmem:[#allocation2 + $0x78] sm:$0xff] %vm313_vm0, %v3136_v20 }
  0x6b   : > { %601 = vmatpush.xpose.msra.mxu1 %v459_v29  ;;  %330 = vst.msk [vmem:[#allocation2 + $0x80] sm:$0xff] %vm313_vm0, %v3136_v20 }
  0x6c   : > { %331 = vst.msk [vmem:[#allocation2 + $0x88] sm:$0xff] %vm313_vm0, %v3136_v20 }
  0x6d   : > { %332 = vst.msk [vmem:[#allocation2 + $0x90] sm:$0xff] %vm313_vm0, %v3136_v20 }
  0x6e   : > { %489 = vmatpush.xpose.msra.mxu0 %v442_v30  ;;  %333 = vst.msk [vmem:[#allocation2 + $0x98] sm:$0xff] %vm313_vm0, %v3136_v20 }
  0x6f   : > { %602 = vmatpush.xpose.msra.mxu1 %v458_v31  ;;  %334 = vst.msk [vmem:[#allocation2 + $0xa0] sm:$0xff] %vm313_vm0, %v3136_v20 }
  0x70   : > { %335 = vst.msk [vmem:[#allocation2 + $0xa8] sm:$0xff] %vm313_vm0, %v3136_v20 }
  0x71   : > { %490 = vmatmul.f32.vlgmr.msra.gmra.mxu0 %v410_v32  ;;  %336 = vst.msk [vmem:[#allocation2 + $0xb0] sm:$0xff] %vm313_vm0, %v3136_v20 }
  0x72   : > { %603 = vmatmul.f32.vlgmr.msra.gmra.mxu1 %v410_v32  ;;  %337 = vst.msk [vmem:[#allocation2 + $0xb8] sm:$0xff] %vm313_vm0, %v3136_v20 }
  0x73   : > { %338 = vst.msk [vmem:[#allocation2 + $0xc0] sm:$0xff] %vm313_vm0, %v3136_v20 }
  0x74   : > { %339 = vst.msk [vmem:[#allocation2 + $0xc8] sm:$0xff] %vm313_vm0, %v3136_v20 }
  0x75   : > { %340 = vst.msk [vmem:[#allocation2 + $0xd0] sm:$0xff] %vm313_vm0, %v3136_v20 }
  0x76   : > { %341 = vst.msk [vmem:[#allocation2 + $0xd8] sm:$0xff] %vm313_vm0, %v3136_v20 }
  0x77   : > { %342 = vst.msk [vmem:[#allocation2 + $0xe0] sm:$0xff] %vm313_vm0, %v3136_v20 }
  0x78   : > { %343 = vst.msk [vmem:[#allocation2 + $0xe8] sm:$0xff] %vm313_vm0, %v3136_v20 }
  0x79   : > { %493 = vmatmul.f32.gmra.mxu0 %v411_v33  ;;  %344 = vst.msk [vmem:[#allocation2 + $0xf0] sm:$0xff] %vm313_vm0, %v3136_v20 }
  0x7a   : > { %606 = vmatmul.f32.gmra.mxu1 %v411_v33  ;;  %v3137_v33 = vmov 0   ;;  %345 = vst.msk [vmem:[#allocation2 + $0xf8] sm:$0xff] %vm313_vm0, %v3136_v20 }
  0x7b   : > { %2697 = vset.pattern.permute.xlu2 %v3137_v33  ;;  %2698 = vset.pattern.permute.xlu0 %v3137_v33 }
  0x7c   : > { %2699 = vset.pattern.permute.xlu1 %v3137_v33  ;;  %v434_v33 = vld [vmem:[%s3274_s16 + $0xc0] sm:$0xff] }
  0x81   : > { %496 = vmatmul.f32.gmra.mxu0 %v412_v34 }
  0x82   : > { %609 = vmatmul.f32.gmra.mxu1 %v412_v34 }
  0x89   : > { %499 = vmatmul.f32.gmra.mxu0 %v413_v35 }
  0x8a   : > { %612 = vmatmul.f32.gmra.mxu1 %v413_v35 }
  0x91   : > { %502 = vmatmul.f32.gmra.mxu0 %v414_v36 }
  0x92   : > { %615 = vmatmul.f32.gmra.mxu1 %v414_v36  ;;  %v3138_v36 = vmov 0.0  }
  0x93   : > { %346 = vst.msk [vmem:[#allocation3] sm:$0xff] %vm313_vm0, %v3138_v36 }
  0x94   : > { %347 = vst.msk [vmem:[#allocation3 + $0x8] sm:$0xff] %vm313_vm0, %v3138_v36 }
  0x95   : > { %348 = vst.msk [vmem:[#allocation3 + $0x10] sm:$0xff] %vm313_vm0, %v3138_v36 }
  0x96   : > { %349 = vst.msk [vmem:[#allocation3 + $0x18] sm:$0xff] %vm313_vm0, %v3138_v36 }
  0x97   : > { %350 = vst.msk [vmem:[#allocation3 + $0x20] sm:$0xff] %vm313_vm0, %v3138_v36 }
  0x98   : > { %351 = vst.msk [vmem:[#allocation3 + $0x28] sm:$0xff] %vm313_vm0, %v3138_v36 }
  0x99   : > { %505 = vmatmul.f32.gmra.mxu0 %v415_v37  ;;  %352 = vst.msk [vmem:[#allocation3 + $0x30] sm:$0xff] %vm313_vm0, %v3138_v36 }
  0x9a   : > { %618 = vmatmul.f32.gmra.mxu1 %v415_v37  ;;  %353 = vst.msk [vmem:[#allocation3 + $0x38] sm:$0xff] %vm313_vm0, %v3138_v36 }
  0x9b   : > { %354 = vst.msk [vmem:[#allocation3 + $0x40] sm:$0xff] %vm313_vm0, %v3138_v36 }
  0x9c   : > { %355 = vst.msk [vmem:[#allocation3 + $0x48] sm:$0xff] %vm313_vm0, %v3138_v36 }
  0x9d   : > { %356 = vst.msk [vmem:[#allocation3 + $0x50] sm:$0xff] %vm313_vm0, %v3138_v36 }
  0x9e   : > { %357 = vst.msk [vmem:[#allocation3 + $0x58] sm:$0xff] %vm313_vm0, %v3138_v36 }
  0x9f   : > { %358 = vst.msk [vmem:[#allocation3 + $0x60] sm:$0xff] %vm313_vm0, %v3138_v36 }
  0xa0   : > { %359 = vst.msk [vmem:[#allocation3 + $0x68] sm:$0xff] %vm313_vm0, %v3138_v36 }
  0xa1   : > { %508 = vmatmul.f32.gmra.mxu0 %v416_v38  ;;  %360 = vst.msk [vmem:[#allocation3 + $0x70] sm:$0xff] %vm313_vm0, %v3138_v36 }
  0xa2   : > { %621 = vmatmul.f32.gmra.mxu1 %v416_v38  ;;  %v700_v38 = vld [vmem:[#allocation2] sm:$0xff]  ;;  %361 = vst.msk [vmem:[#allocation3 + $0x78] sm:$0xff] %vm313_vm0, %v3138_v36 }
  0xa3   : > { %362 = vst.msk [vmem:[#allocation3 + $0x80] sm:$0xff] %vm313_vm0, %v3138_v36 }
  0xa4   : > { %363 = vst.msk [vmem:[#allocation3 + $0x88] sm:$0xff] %vm313_vm0, %v3138_v36 }
  0xa5   : > { %364 = vst.msk [vmem:[#allocation3 + $0x90] sm:$0xff] %vm313_vm0, %v3138_v36 }
  0xa6   : > { %365 = vst.msk [vmem:[#allocation3 + $0x98] sm:$0xff] %vm313_vm0, %v3138_v36 }
  0xa7   : > { %366 = vst.msk [vmem:[#allocation3 + $0xa0] sm:$0xff] %vm313_vm0, %v3138_v36 }
  0xa8   : > { %367 = vst.msk [vmem:[#allocation3 + $0xa8] sm:$0xff] %vm313_vm0, %v3138_v36 }
  0xa9   : > { %511 = vmatmul.f32.gmra.mxu0 %v417_v39  ;;  %368 = vst.msk [vmem:[#allocation3 + $0xb0] sm:$0xff] %vm313_vm0, %v3138_v36 }
  0xaa   : > { %624 = vmatmul.f32.gmra.mxu1 %v417_v39  ;;  %369 = vst.msk [vmem:[#allocation3 + $0xb8] sm:$0xff] %vm313_vm0, %v3138_v36 }
  0xab   : > { %370 = vst.msk [vmem:[#allocation3 + $0xc0] sm:$0xff] %vm313_vm0, %v3138_v36 }
  0xac   : > { %371 = vst.msk [vmem:[#allocation3 + $0xc8] sm:$0xff] %vm313_vm0, %v3138_v36 }
  0xad   : > { %372 = vst.msk [vmem:[#allocation3 + $0xd0] sm:$0xff] %vm313_vm0, %v3138_v36 }
  0xae   : > { %373 = vst.msk [vmem:[#allocation3 + $0xd8] sm:$0xff] %vm313_vm0, %v3138_v36 }
  0xaf   : > { %374 = vst.msk [vmem:[#allocation3 + $0xe0] sm:$0xff] %vm313_vm0, %v3138_v36 }
  0xb0   : > { %375 = vst.msk [vmem:[#allocation3 + $0xe8] sm:$0xff] %vm313_vm0, %v3138_v36 }
  0xb1   : > { %514 = vmatmul.f32.gmra.mxu0 %v418_v40  ;;  %376 = vst.msk [vmem:[#allocation3 + $0xf0] sm:$0xff] %vm313_vm0, %v3138_v36 }
  0xb2   : > { %627 = vmatmul.f32.gmra.mxu1 %v418_v40  ;;  %377 = vst.msk [vmem:[#allocation3 + $0xf8] sm:$0xff] %vm313_vm0, %v3138_v36 }
  0xb9   : > { %517 = vmatmul.f32.gmra.mxu0 %v419_v41 }
  0xba   : > { %630 = vmatmul.f32.gmra.mxu1 %v419_v41 }
  0xc1   : > { %520 = vmatmul.f32.gmra.mxu0 %v420_v42 }
  0xc2   : > { %633 = vmatmul.f32.gmra.mxu1 %v420_v42 }
  0xc9   : > { %523 = vmatmul.f32.gmra.mxu0 %v421_v43 }
  0xca   : > { %636 = vmatmul.f32.gmra.mxu1 %v421_v43 }
  0xd1   : > { %526 = vmatmul.f32.gmra.mxu0 %v422_v44 }
  0xd2   : > { %639 = vmatmul.f32.gmra.mxu1 %v422_v44  ;;  %v3495_v44 = vld [vmem:[#allocation2 + $0x8] sm:$0xff] }
  0xd9   : > { %529 = vmatmul.f32.gmra.mxu0 %v423_v45 }
  0xda   : > { %642 = vmatmul.f32.gmra.mxu1 %v423_v45 }
  0xe1   : > { %532 = vmatmul.f32.gmra.mxu0 %v424_v46 }
  0xe2   : > { %645 = vmatmul.f32.gmra.mxu1 %v424_v46 }
  0xe9   : > { %535 = vmatmul.f32.gmra.mxu0 %v425_v47 }
  0xea   : > { %648 = vmatmul.f32.gmra.mxu1 %v425_v47 }
  0xee   : > { %v3336_v48 = vpop.f32.mrf.mxu0 }
  0xef   : > { %v3338_v49 = vpop.f32.mrf.mxu1 }
  0xf0   : > { %v732_v51 = vmax.f32 %v3336_v48, %v3338_v49 }
  0xf1   : > { %538 = vmatmul.f32.gmra.mxu0 %v426_v50 }
  0xf2   : > { %651 = vmatmul.f32.gmra.mxu1 %v426_v50  ;;  %733 = vmax.xlane.f32.xlu0 %v732_v51 }
  0xf6   : > { %v3343_v52 = vpop.f32.mrf.mxu0 }
  0xf7   : > { %v3345_v53 = vpop.f32.mrf.mxu1 }
  0xf8   : > { %v735_v54 = vmax.f32 %v3343_v52, %v3345_v53 }
  0xf9   : > { %541 = vmatmul.f32.gmra.mxu0 %v427_v57 }
  0xfa   : > { %736 = vmax.xlane.f32.xlu0 %v735_v54  ;;  %654 = vmatmul.f32.gmra.mxu1 %v427_v57  ;;  %v432_v54 = vld [vmem:[%s3274_s16 + $0xb0] sm:$0xff]  ;;  %v1770_v57 = vld [vmem:[%s3620_s18 + $0x68] sm:$0xff] }
  0xfe   : > { %v3349_v55 = vpop.f32.mrf.mxu0 }
  0xff   : > { %v3351_v56 = vpop.f32.mrf.mxu1 }
 0x100   : > { %v738_v58 = vmax.f32 %v3349_v55, %v3351_v56 }
 0x101   : > { %544 = vmatmul.f32.gmra.mxu0 %v428_v61 }
 0x102   : > { %739 = vmax.xlane.f32.xlu1 %v738_v58  ;;  %657 = vmatmul.f32.gmra.mxu1 %v428_v61  ;;  %v3523_v58 = vld [vmem:[#allocation2 + $0x10] sm:$0xff] }
 0x106   : > { %v3356_v59 = vpop.f32.mrf.mxu0 }
 0x107   : > { %v3358_v60 = vpop.f32.mrf.mxu1 }
 0x108   : > { %v741_v62 = vmax.f32 %v3356_v59, %v3358_v60 }
 0x109   : > { %547 = vmatmul.f32.gmra.mxu0 %v429_v5 }
 0x10a   : > { %742 = vmax.xlane.f32.xlu1 %v741_v62  ;;  %660 = vmatmul.f32.gmra.mxu1 %v429_v5 }
 0x10e   : > { %v3363_v63 = vpop.f32.mrf.mxu0 }
 0x10f   : > { %v3365_v0 = vpop.f32.mrf.mxu1 }
 0x110   : > { %v744_v1 = vmax.f32 %v3363_v63, %v3365_v0 }
 0x111   : > { %550 = vmatmul.f32.gmra.mxu0 %v430_v22 }
 0x112   : > { %745 = vmax.xlane.f32.xlu2 %v744_v1  ;;  %663 = vmatmul.f32.gmra.mxu1 %v430_v22  ;;  %v3544_v1 = vld [vmem:[#allocation2 + $0x18] sm:$0xff]  ;;  %v3576_v22 = vld [vmem:[#allocation2 + $0x28] sm:$0xff] }
 0x116   : > { %v3369_v2 = vpop.f32.mrf.mxu0 }
 0x117   : > { %v3371_v3 = vpop.f32.mrf.mxu1 }
 0x118   : > { %v747_v4 = vmax.f32 %v3369_v2, %v3371_v3 }
 0x119   : > { %553 = vmatmul.f32.gmra.mxu0 %v431_v26 }
 0x11a   : > { %748 = vmax.xlane.f32.xlu2 %v747_v4  ;;  %666 = vmatmul.f32.gmra.mxu1 %v431_v26 }
 0x11e   : > { %v3376_v6 = vpop.f32.mrf.mxu0 }
 0x11f   : > { %v3378_v7 = vpop.f32.mrf.mxu1 }
 0x120   : > { %v750_v8 = vmax.f32 %v3376_v6, %v3378_v7 }
 0x121   : > { %556 = vmatmul.f32.gmra.mxu0 %v432_v54 }
 0x122   : > { %751 = vmax.xlane.f32.xlu0 %v750_v8  ;;  %669 = vmatmul.f32.gmra.mxu1 %v432_v54 }
 0x126   : > { %v3382_v9 = vpop.f32.mrf.mxu0 }
 0x127   : > { %v3384_v10 = vpop.f32.mrf.mxu1 }
 0x128   : > { %v753_v11 = vmax.f32 %v3382_v9, %v3384_v10 }
 0x12a   : > { %754 = vmax.xlane.f32.xlu1 %v753_v11 }
 0x12e   : > { %v3388_v12 = vpop.f32.mrf.mxu0 }
 0x12f   : > { %v3390_v13 = vpop.f32.mrf.mxu1 }
 0x130   : > { %v756_v14 = vmax.f32 %v3388_v12, %v3390_v13 }
 0x132   : > { %757 = vmax.xlane.f32.xlu2 %v756_v14  ;;  %v3566_v14 = vld [vmem:[#allocation2 + $0x20] sm:$0xff] }
 0x136   : > { %v3394_v15 = vpop.f32.mrf.mxu0 }
 0x137   : > { %v3396_v16 = vpop.f32.mrf.mxu1 }
 0x138   : > { %v759_v17 = vmax.f32 %v3394_v15, %v3396_v16 }
 0x13a   : > { %760 = vmax.xlane.f32.xlu0 %v759_v17 }
 0x13e   : > { %v3400_v18 = vpop.f32.mrf.mxu0 }
 0x13f   : > { %v3402_v19 = vpop.f32.mrf.mxu1 }
 0x140   : > { %v762_v21 = vmax.f32 %v3400_v18, %v3402_v19 }
 0x142   : > { %763 = vmax.xlane.f32.xlu1 %v762_v21 }
 0x146   : > { %v3415_v23 = vpop.f32.mrf.mxu0 }
 0x147   : > { %v3417_v24 = vpop.f32.mrf.mxu1 }
 0x148   : > { %v765_v25 = vmax.f32 %v3415_v23, %v3417_v24 }
 0x14a   : > { %766 = vmax.xlane.f32.xlu2 %v765_v25  ;;  %v433_v25 = vld [vmem:[%s3274_s16 + $0xb8] sm:$0xff] }
 0x14b   : > { %559 = vmatmul.f32.gmra.mxu0 %v433_v25  ;;  %672 = vmatmul.f32.gmra.mxu1 %v433_v25  ;;  %v1772_v25 = vld [vmem:[%s3620_s18 + $0x78] sm:$0xff] }
 0x14c   : > { %1789 = vmatpush.msra.mxu2 %v1772_v25 }
 0x14e   : > { %v3430_v27 = vpop.f32.mrf.mxu0 }
 0x14f   : > { %4737 = vst [vmem:[#allocation20_spill] sm:$0xff] %v3430_v27  ;;  %v3432_v28 = vpop.f32.mrf.mxu1 }
 0x150   : > { %4738 = vst [vmem:[#allocation21_spill] sm:$0xff] %v3432_v28  ;;  %v768_v29 = vmax.f32 %v3430_v27, %v3432_v28 }
 0x152   : > { %769 = vmax.xlane.f32.xlu0 %v768_v29 }
 0x153   : > { %562 = vmatmul.f32.gmra.mxu0 %v434_v33  ;;  %675 = vmatmul.f32.gmra.mxu1 %v434_v33  ;;  %v3624_v33 = vld [vmem:[#allocation2 + $0x48] sm:$0xff] }
 0x156   : > { %v3444_v30 = vpop.f32.mrf.mxu0 }
 0x157   : > { %v3446_v31 = vpop.f32.mrf.mxu1 }
 0x158   : > { %v771_v32 = vmax.f32 %v3444_v30, %v3446_v31 }
 0x15a   : > { %772 = vmax.xlane.f32.xlu1 %v771_v32  ;;  %v3585_v32 = vld [vmem:[#allocation2 + $0x30] sm:$0xff] }
 0x15e   : > { %v3458_v34 = vpop.f32.mrf.mxu0 }
 0x15f   : > { %v3460_v35 = vpop.f32.mrf.mxu1 }
 0x160   : > { %4739 = vst [vmem:[#allocation22_spill] sm:$0xff] %v3460_v35  ;;  %v774_v37 = vmax.f32 %v3458_v34, %v3460_v35 }
 0x162   : > { %775 = vmax.xlane.f32.xlu2 %v774_v37 }
 0x165   : > { %v734_v39 = vpop.xlane.xlu0 %733 }
 0x166   : > { %v828_v40 = vmax.f32 %v700_v38, %v734_v39  ;;  %v3480_v41 = vpop.f32.mrf.mxu0 }
 0x167   : > { %4740 = vst [vmem:[#allocation23_spill] sm:$0xff] %v3480_v41  ;;  %v3482_v42 = vpop.f32.mrf.mxu1 }
 0x168   : > { %4741 = vst [vmem:[#allocation24_spill] sm:$0xff] %v3482_v42  ;;  %v777_v43 = vmax.f32 %v3480_v41, %v3482_v42  ;;  %v860_v4 = vsub.f32 %v700_v38, %v828_v40  ;;  %v3742_v41 = vld [vmem:[#allocation2 + $0x80] sm:$0xff] }
 0x169   : > { %2079 = vst.msk [vmem:[#allocation2] sm:$0xff] %vm313_vm0, %v828_v40 }
 0x16a   : > { %778 = vmax.xlane.f32.xlu0 %v777_v43  ;;  %v892_v11 = vmul.f32 1.442695, %v860_v4  ;;  %v3610_v4 = vld [vmem:[#allocation2 + $0x40] sm:$0xff] }
 0x16c   : > { %2700 = vpow2.f32 %v892_v11 }
 0x16d   : > { %v737_v45 = vpop.xlane.xlu0 %736 }
 0x16e   : > { %v3504_v46 = vmax.f32 %v3495_v44, %v737_v45  ;;  %v3506_v47 = vpop.f32.mrf.mxu0 }
 0x16f   : > { %4742 = vst [vmem:[#allocation25_spill] sm:$0xff] %v3506_v47  ;;  %v3508_v50 = vpop.f32.mrf.mxu1 }
 0x170   : > { %4743 = vst [vmem:[#allocation26_spill] sm:$0xff] %v3508_v50  ;;  %v780_v51 = vmax.f32 %v3506_v47, %v3508_v50  ;;  %v4749_v25 = vsub.f32 %v3495_v44, %v3504_v46  ;;  %v1767_v44 = vld [vmem:[%s3620_s18 + $0x50] sm:$0xff] }
 0x171   : > { %2080 = vst.msk [vmem:[#allocation2 + $0x8] sm:$0xff] %vm313_vm0, %v3504_v46 }
 0x172   : > { %781 = vmax.xlane.f32.xlu1 %v780_v51  ;;  %v3573_v21 = vpop.eup %2700 }
 0x173   : > { %4744 = vst [vmem:[#allocation27_spill] sm:$0xff] %v3573_v21 }
 0x175   : > { %v740_v61 = vpop.xlane.xlu1 %739 }
 0x176   : > { %v3532_v62 = vmax.f32 %v3523_v58, %v740_v61  ;;  %v3593_v39 = vpop.f32.mrf.mxu0 }
 0x177   : > { %v3591_v38 = vpop.f32.mrf.mxu1  ;;  %4746 = vst [vmem:[#allocation29_spill] sm:$0xff] %v3593_v39 }
 0x178   : > { %2081 = vst.msk [vmem:[#allocation2 + $0x10] sm:$0xff] %vm313_vm0, %v3532_v62  ;;  %v783_v51 = vmax.f32 %v3593_v39, %v3591_v38 }
 0x179   : > { %4745 = vst [vmem:[#allocation28_spill] sm:$0xff] %v3591_v38  ;;  %v435_v38 = vld [vmem:[%s3274_s16 + $0xc8] sm:$0xff] }
 0x17a   : > { %958 = vperm.xlu2 %2697, %v828_v40   ;;  %v3597_v40 = vld [vmem:[#allocation2 + $0x38] sm:$0xff]  ;;  %565 = vmatmul.f32.gmra.mxu0 %v435_v38 }
 0x17b   : > { %678 = vmatmul.f32.gmra.mxu1 %v435_v38  ;;  %v3692_v38 = vld [vmem:[#allocation2 + $0x60] sm:$0xff] }
 0x17d   : > { %v743_v5 = vpop.xlane.xlu1 %742 }
 0x17e   : > { %v3553_v8 = vmax.f32 %v3544_v1, %v743_v5  ;;  %963 = vperm.xlu0 %2698, %v3504_v46   ;;  %v3608_v61 = vpop.f32.mrf.mxu0  ;;  %v1783_v46 = vld [vmem:[%s3620_s18 + $0xd0] sm:$0xff] }
 0x17f   : > { %v3606_v54 = vpop.f32.mrf.mxu1  ;;  %4748 = vst [vmem:[#allocation31_spill] sm:$0xff] %v3608_v61 }
 0x180   : > { %2082 = vst.msk [vmem:[#allocation2 + $0x18] sm:$0xff] %vm313_vm0, %v3553_v8  ;;  %v786_v5 = vmax.f32 %v3608_v61, %v3606_v54  ;;  %v3644_v61 = vld [vmem:[#allocation2 + $0x50] sm:$0xff]  ;;  %v863_v39 = vsub.f32 %v3544_v1, %v3553_v8 }
 0x181   : > { %4747 = vst [vmem:[#allocation30_spill] sm:$0xff] %v3606_v54  ;;  %v1786_v54 = vld [vmem:[%s3620_s18 + $0xe8] sm:$0xff] }
 0x185   : > { %v746_v17 = vpop.xlane.xlu2 %745 }
 0x186   : > { %v3569_v20 = vmax.f32 %v3566_v14, %v746_v17 }
 0x188   : > { %2083 = vst.msk [vmem:[#allocation2 + $0x20] sm:$0xff] %vm313_vm0, %v3569_v20 }
 0x18b   : > { %1567 = vperm.xlu1 %2699, %v3573_v21  }
 0x18d   : > { %v749_v26 = vpop.xlane.xlu2 %748 }
 0x18e   : > { %v3580_v29 = vmax.f32 %v3576_v22, %v749_v26  ;;  %v1788_v26 = vld [vmem:[%s3620_s18 + $0xf8] sm:$0xff] }
 0x18f   : > { %1902 = vmatpush.msra.mxu3 %v1788_v26  ;;  %v894_v26 = vmul.f32 1.442695, %v4749_v25  ;;  %v3653_v25 = vpop.f32.mrf.mxu0 }
 0x190   : > { %2084 = vst.msk [vmem:[#allocation2 + $0x28] sm:$0xff] %vm313_vm0, %v3580_v29 }
 0x191   : > { %2702 = vpow2.f32 %v894_v26  ;;  %4750 = vst [vmem:[#allocation32_spill] sm:$0xff] %v3653_v25  ;;  %v1766_v26 = vld [vmem:[%s3620_s18 + $0x48] sm:$0xff] }
 0x193   : > { %968 = vperm.xlu1 %2699, %v3532_v62  }
 0x195   : > { %v752_v36 = vpop.xlane.xlu0 %751 }
 0x196   : > { %v3589_v37 = vmax.f32 %v3585_v32, %v752_v36  ;;  %v1771_v36 = vld [vmem:[%s3620_s18 + $0x70] sm:$0xff] }
 0x197   : > { %1790 = vmatpush.msra.mxu2 %v1771_v36 }
 0x198   : > { %2085 = vst.msk [vmem:[#allocation2 + $0x30] sm:$0xff] %vm313_vm0, %v3589_v37 }
 0x199   : > { %1791 = vmatpush.msra.mxu2 %v1770_v57  ;;  %v864_v57 = vsub.f32 %v3566_v14, %v3569_v20  ;;  %v1765_v14 = vld [vmem:[%s3620_s18 + $0x40] sm:$0xff] }
 0x19d   : > { %v755_v43 = vpop.xlane.xlu1 %754 }
 0x19e   : > { %v3600_v45 = vmax.f32 %v3597_v40, %v755_v43  ;;  %v1787_v43 = vld [vmem:[%s3620_s18 + $0xf0] sm:$0xff] }
 0x19f   : > { %1903 = vmatpush.msra.mxu3 %v1787_v43  ;;  %v1768_v43 = vld [vmem:[%s3620_s18 + $0x58] sm:$0xff] }
 0x1a0   : > { %2086 = vst.msk [vmem:[#allocation2 + $0x38] sm:$0xff] %vm313_vm0, %v3600_v45 }
 0x1a1   : > { %1904 = vmatpush.msra.mxu3 %v1786_v54 }
 0x1a3   : > { %784 = vmax.xlane.f32.xlu2 %v783_v51  ;;  %v862_v51 = vsub.f32 %v3523_v58, %v3532_v62  ;;  %v1769_v58 = vld [vmem:[%s3620_s18 + $0x60] sm:$0xff] }
 0x1a4   : > { %v1785_v62 = vld [vmem:[%s3620_s18 + $0xe0] sm:$0xff]  ;;  %1792 = vmatpush.msra.mxu2 %v1769_v58  ;;  %v3655_v58 = vpop.f32.mrf.mxu1 }
 0x1a5   : > { %v758_v11 = vpop.xlane.xlu2 %757  ;;  %v896_v36 = vmul.f32 1.442695, %v862_v51  ;;  %1905 = vmatpush.msra.mxu3 %v1785_v62  ;;  %4751 = vst [vmem:[#allocation33_spill] sm:$0xff] %v3655_v58  ;;  %v1782_v62 = vld [vmem:[%s3620_s18 + $0xc8] sm:$0xff] }
 0x1a6   : > { %v3615_v17 = vmax.f32 %v3610_v4, %v758_v11  ;;  %1793 = vmatpush.msra.mxu2 %v1768_v43  ;;  %v900_v43 = vmul.f32 1.442695, %v864_v57  ;;  %v1763_v57 = vld [vmem:[%s3620_s18 + $0x30] sm:$0xff] }
 0x1a7   : > { %2704 = vpow2.f32 %v896_v36  ;;  %v1781_v36 = vld [vmem:[%s3620_s18 + $0xc0] sm:$0xff] }
 0x1a8   : > { %2087 = vst.msk [vmem:[#allocation2 + $0x40] sm:$0xff] %vm313_vm0, %v3615_v17  ;;  %787 = vmax.xlane.f32.xlu0 %v786_v5  ;;  %1794 = vmatpush.msra.mxu2 %v1767_v44  ;;  %v3665_v44 = vpop.eup %2702  ;;  %2706 = vpow2.f32 %v900_v43  ;;  %v1761_v43 = vld [vmem:[%s3620_s18 + $0x20] sm:$0xff] }
 0x1a9   : > { %4752 = vst [vmem:[#allocation34_spill] sm:$0xff] %v3665_v44 }
 0x1aa   : > { %1795 = vmatpush.msra.mxu2 %v1766_v26 }
 0x1ac   : > { %1796 = vmatpush.msra.mxu2 %v1765_v14  ;;  %v1779_v14 = vld [vmem:[%s3620_s18 + $0xb0] sm:$0xff] }
 0x1ad   : > { %v761_v5 = vpop.xlane.xlu0 %760  ;;  %v3669_v26 = vpop.eup %2704 }
 0x1ae   : > { %v3631_v11 = vmax.f32 %v3624_v33, %v761_v5  ;;  %v1784_v5 = vld [vmem:[%s3620_s18 + $0xd8] sm:$0xff]  ;;  %4753 = vst [vmem:[#allocation35_spill] sm:$0xff] %v3669_v26 }
 0x1af   : > { %1906 = vmatpush.msra.mxu3 %v1784_v5  ;;  %v789_v5 = vmax.f32 %v3653_v25, %v3655_v58  ;;  %v1778_v25 = vld [vmem:[%s3620_s18 + $0xa8] sm:$0xff] }
 0x1b0   : > { %2088 = vst.msk [vmem:[#allocation2 + $0x48] sm:$0xff] %vm313_vm0, %v3631_v11 }
 0x1b1   : > { %1907 = vmatpush.msra.mxu3 %v1783_v46  ;;  %v1764_v46 = vld [vmem:[%s3620_s18 + $0x38] sm:$0xff] }
 0x1b2   : > { %1797 = vmatpush.msra.mxu2 %v1764_v46  ;;  %v1762_v46 = vld [vmem:[%s3620_s18 + $0x28] sm:$0xff] }
 0x1b3   : > { %1908 = vmatpush.msra.mxu3 %v1782_v62  ;;  %v3672_v62 = vld [vmem:[#allocation2 + $0x58] sm:$0xff] }
 0x1b4   : > { %1798 = vmatpush.msra.mxu2 %v1763_v57  ;;  %v1759_v57 = vld [vmem:[%s3620_s18 + $0x10] sm:$0xff] }
 0x1b5   : > { %v764_v54 = vpop.xlane.xlu1 %763  ;;  %1909 = vmatpush.msra.mxu3 %v1781_v36 }
 0x1b6   : > { %v3651_v51 = vmax.f32 %v3644_v61, %v764_v54  ;;  %v1780_v54 = vld [vmem:[%s3620_s18 + $0xb8] sm:$0xff]  ;;  %1799 = vmatpush.msra.mxu2 %v1762_v46 }
 0x1b7   : > { %1910 = vmatpush.msra.mxu3 %v1780_v54  ;;  %v1777_v54 = vld [vmem:[%s3620_s18 + $0xa0] sm:$0xff] }
 0x1b8   : > { %2089 = vst.msk [vmem:[#allocation2 + $0x50] sm:$0xff] %vm313_vm0, %v3651_v51  ;;  %1800 = vmatpush.msra.mxu2 %v1761_v43  ;;  %v1758_v43 = vld [vmem:[%s3620_s18 + $0x8] sm:$0xff] }
 0x1b9   : > { %1911 = vmatpush.msra.mxu3 %v1779_v14  ;;  %v1775_v14 = vld [vmem:[%s3620_s18 + $0x90] sm:$0xff] }
 0x1bb   : > { %1572 = vperm.xlu2 %2697, %v3665_v44   ;;  %1912 = vmatpush.msra.mxu3 %v1778_v25  ;;  %v1774_v44 = vld [vmem:[%s3620_s18 + $0x88] sm:$0xff] }
 0x1bc   : > { %1577 = vperm.xlu0 %2698, %v3669_v26   ;;  %v3689_v26 = vpop.eup %2706 }
 0x1bd   : > { %v767_v36 = vpop.xlane.xlu2 %766  ;;  %790 = vmax.xlane.f32.xlu1 %v789_v5  ;;  %v1760_v5 = vld [vmem:[%s3620_s18 + $0x18] sm:$0xff]  ;;  %4754 = vst [vmem:[#allocation36_spill] sm:$0xff] %v3689_v26  ;;  %1913 = vmatpush.msra.mxu3 %v1777_v54  ;;  %v1757_v54 = vld [vmem:[%s3620_s18] sm:$0xff] }
 0x1be   : > { %v3679_v58 = vmax.f32 %v3672_v62, %v767_v36  ;;  %v1776_v36 = vld [vmem:[%s3620_s18 + $0x98] sm:$0xff]  ;;  %1801 = vmatpush.msra.mxu2 %v1760_v5  ;;  %v1773_v5 = vld [vmem:[%s3620_s18 + $0x80] sm:$0xff] }
 0x1bf   : > { %1914 = vmatpush.msra.mxu3 %v1776_v36  ;;  %v898_v36 = vmul.f32 1.442695, %v863_v39 }
 0x1c0   : > { %2090 = vst.msk [vmem:[#allocation2 + $0x58] sm:$0xff] %vm313_vm0, %v3679_v58  ;;  %1802 = vmatpush.msra.mxu2 %v1759_v57  ;;  %v3709_v57 = vld [vmem:[#allocation2 + $0x68] sm:$0xff] }
 0x1c1   : > { %1915 = vmatpush.msra.mxu3 %v1775_v14  ;;  %2708 = vpow2.f32 %v898_v36  ;;  %v3717_v14 = vld [vmem:[#allocation2 + $0x70] sm:$0xff]  ;;  %v3732_v36 = vpop.f32.mrf.mxu1 }
 0x1c2   : > { %1803 = vmatpush.msra.mxu2 %v1758_v43  ;;  %v437_v43 = vld [vmem:[%s3274_s16 + $0xd8] sm:$0xff] }
 0x1c3   : > { %973 = vperm.xlu2 %2697, %v3553_v8   ;;  %1916 = vmatpush.msra.mxu3 %v1774_v44  ;;  %v436_v8 = vld [vmem:[%s3274_s16 + $0xd0] sm:$0xff] }
 0x1c4   : > { %1587 = vperm.xlu0 %2698, %v3689_v26   ;;  %1804 = vmatpush.msra.mxu2 %v1757_v54  ;;  %v3728_v54 = vld [vmem:[#allocation2 + $0x78] sm:$0xff] }
 0x1c5   : > { %v770_v25 = vpop.xlane.xlu0 %769  ;;  %1917 = vmatpush.msra.mxu3 %v1773_v5  ;;  %568 = vmatmul.f32.gmra.mxu0 %v436_v8  ;;  %v3730_v5 = vpop.f32.mrf.mxu0 }
 0x1c6   : > { %v3698_v46 = vmax.f32 %v3692_v38, %v770_v25  ;;  %681 = vmatmul.f32.gmra.mxu1 %v436_v8 }
 0x1c7   : > { %v3719_v39 = vpop.eup %2708 }
 0x1c8   : > { %2091 = vst.msk [vmem:[#allocation2 + $0x60] sm:$0xff] %vm313_vm0, %v3698_v46 }
 0x1c9   : > { %4755 = vst [vmem:[#allocation37_spill] sm:$0xff] %v3719_v39 }
 0x1cb   : > { %978 = vperm.xlu2 %2697, %v3569_v20  }
 0x1cd   : > { %v773_v25 = vpop.xlane.xlu1 %772  ;;  %571 = vmatmul.f32.gmra.mxu0 %v437_v43 }
 0x1ce   : > { %v3712_v1 = vmax.f32 %v3709_v57, %v773_v25  ;;  %684 = vmatmul.f32.gmra.mxu1 %v437_v43 }
 0x1d0   : > { %2092 = vst.msk [vmem:[#allocation2 + $0x68] sm:$0xff] %vm313_vm0, %v3712_v1 }
 0x1d5   : > { %v776_v20 = vpop.xlane.xlu2 %775 }
 0x1d6   : > { %v3722_v44 = vmax.f32 %v3717_v14, %v776_v20  ;;  %1582 = vperm.xlu1 %2699, %v3719_v39  }
 0x1d8   : > { %2093 = vst.msk [vmem:[#allocation2 + $0x70] sm:$0xff] %vm313_vm0, %v3722_v44 }
 0x1dd   : > { %v779_v25 = vpop.xlane.xlu0 %778  ;;  %v959_v8 = vpop.permute.xlu2 %958 }
 0x1de   : > { %v3735_v26 = vmax.f32 %v3728_v54, %v779_v25  ;;  %v1116_v20 = vsub.f32 %v3336_v48, %v959_v8  ;;  %v1117_v39 = vsub.f32 %v3338_v49, %v959_v8  ;;  %983 = vperm.xlu1 %2699, %v3580_v29   ;;  %v3748_v48 = vpop.f32.mrf.mxu0  ;;  %v3750_v49 = vpop.f32.mrf.mxu1 }
 0x1df   : > { %4756 = vst [vmem:[#allocation38_spill] sm:$0xff] %v3748_v48 }
 0x1e0   : > { %2094 = vst.msk [vmem:[#allocation2 + $0x78] sm:$0xff] %vm313_vm0, %v3735_v26  ;;  %v1180_v42 = vmul.f32 1.442695, %v1116_v20  ;;  %v1182_v43 = vmul.f32 1.442695, %v1117_v39  ;;  %v792_v20 = vmax.f32 %v3730_v5, %v3732_v36 }
 0x1e1   : > { %4757 = vst [vmem:[#allocation39_spill] sm:$0xff] %v3750_v49 }
 0x1e2   : > { %2710 = vpow2.f32 %v1180_v42  ;;  %v795_v42 = vmax.f32 %v3748_v48, %v3750_v49 }
 0x1e3   : > { %2712 = vpow2.f32 %v1182_v43 }
 0x1e5   : > { %v782_v21 = vpop.xlane.xlu1 %781 }
 0x1e6   : > { %v3745_v50 = vmax.f32 %v3742_v41, %v782_v21  ;;  %993 = vperm.xlu1 %2699, %v3600_v45  }
 0x1e8   : > { %v2711_v25 = vpop.eup %2710  ;;  %2095 = vst.msk [vmem:[#allocation2 + $0x80] sm:$0xff] %vm313_vm0, %v3745_v50 }
 0x1e9   : > { %v2713_v8 = vpop.eup %2712  ;;  %1805 = vmatmul.f32.vlgmr.msra.gmra.mxu2 %v2711_v25 }
 0x1ea   : > { %1918 = vmatmul.f32.vlgmr.msra.gmra.mxu3 %v2713_v8  ;;  %v3756_v39 = vadd.f32 %v2713_v8, %v2711_v25  ;;  %v867_v25 = vsub.f32 %v3597_v40, %v3600_v45 }
 0x1ec   : > { %v906_v48 = vmul.f32 1.442695, %v867_v25  ;;  %v3789_v25 = vld [vmem:[#allocation2 + $0x88] sm:$0xff] }
 0x1ee   : > { %796 = vmax.xlane.f32.xlu0 %v795_v42 }
 0x1f0   : > { %v964_v21 = vpop.permute.xlu0 %963 }
 0x1f1   : > { %v1118_v43 = vsub.f32 %v3343_v52, %v964_v21  ;;  %v1119_v47 = vsub.f32 %v3345_v53, %v964_v21  ;;  %v438_v52 = vld [vmem:[%s3274_s16 + $0xe0] sm:$0xff]  ;;  %v865_v53 = vsub.f32 %v3576_v22, %v3580_v29 }
 0x1f2   : > { %574 = vmatmul.f32.gmra.mxu0 %v438_v52  ;;  %687 = vmatmul.f32.gmra.mxu1 %v438_v52 }
 0x1f3   : > { %v1184_v28 = vmul.f32 1.442695, %v1118_v43  ;;  %v1186_v27 = vmul.f32 1.442695, %v1119_v47  ;;  %v3778_v43 = vpop.f32.mrf.mxu1 }
 0x1f4   : > { %793 = vmax.xlane.f32.xlu2 %v792_v20  ;;  %v3776_v20 = vpop.f32.mrf.mxu0  ;;  %4759 = vst [vmem:[#allocation41_spill] sm:$0xff] %v3778_v43 }
 0x1f5   : > { %2714 = vpow2.f32 %v1184_v28 }
 0x1f6   : > { %2716 = vpow2.f32 %v1186_v27 }
 0x1f7   : > { %2718 = vpow2.f32 %v906_v48 }
 0x1fb   : > { %v2715_v35 = vpop.eup %2714 }
 0x1fc   : > { %v2717_v8 = vpop.eup %2716  ;;  %1808 = vmatmul.f32.gmra.mxu2 %v2715_v35 }
 0x1fd   : > { %1921 = vmatmul.f32.gmra.mxu3 %v2717_v8  ;;  %v3764_v42 = vpop.permute.xlu1 %1567  ;;  %v3766_v49 = vadd.f32 %v2717_v8, %v2715_v35  ;;  %v3774_v21 = vpop.eup %2718  ;;  %v902_v35 = vmul.f32 1.442695, %v865_v53  ;;  %v439_v53 = vld [vmem:[%s3274_s16 + $0xe8] sm:$0xff] }
 0x1fe   : > { %4758 = vst [vmem:[#allocation40_spill] sm:$0xff] %v3764_v42  ;;  %577 = vmatmul.f32.gmra.mxu0 %v439_v53  ;;  %690 = vmatmul.f32.gmra.mxu1 %v439_v53  ;;  %v3822_v42 = vld [vmem:[#allocation2 + $0x98] sm:$0xff] }
 0x202   : > { %998 = vperm.xlu0 %2698, %v3615_v17  }
 0x205   : > { %v969_v27 = vpop.permute.xlu1 %968 }
 0x206   : > { %v1120_v28 = vsub.f32 %v3349_v55, %v969_v27  ;;  %v1121_v47 = vsub.f32 %v3351_v56, %v969_v27  ;;  %v798_v55 = vmax.f32 %v3776_v20, %v3778_v43  ;;  %v3797_v27 = vld [vmem:[#allocation2 + $0x90] sm:$0xff] }
 0x208   : > { %v1188_v40 = vmul.f32 1.442695, %v1120_v28  ;;  %v1190_v45 = vmul.f32 1.442695, %v1121_v47  ;;  %v866_v28 = vsub.f32 %v3585_v32, %v3589_v37 }
 0x20a   : > { %2720 = vpow2.f32 %v1188_v40  ;;  %1602 = vperm.xlu0 %2698, %v3774_v21  }
 0x20b   : > { %2722 = vpow2.f32 %v1190_v45  ;;  %v440_v45 = vld [vmem:[%s3274_s16 + $0xf0] sm:$0xff] }
 0x20c   : > { %988 = vperm.xlu2 %2697, %v3589_v37   ;;  %2724 = vpow2.f32 %v902_v35  ;;  %v904_v35 = vmul.f32 1.442695, %v866_v28  ;;  %580 = vmatmul.f32.gmra.mxu0 %v440_v45 }
 0x20d   : > { %693 = vmatmul.f32.gmra.mxu1 %v440_v45 }
 0x20e   : > { %2726 = vpow2.f32 %v904_v35 }
 0x210   : > { %v2721_v56 = vpop.eup %2720  ;;  %799 = vmax.xlane.f32.xlu1 %v798_v55 }
 0x211   : > { %v2723_v22 = vpop.eup %2722  ;;  %1811 = vmatmul.f32.gmra.mxu2 %v2721_v56 }
 0x212   : > { %1924 = vmatmul.f32.gmra.mxu3 %v2723_v22  ;;  %v3784_v29 = vadd.f32 %v2723_v22, %v2721_v56  ;;  %v3786_v48 = vpop.eup %2724  ;;  %v3809_v56 = vpop.f32.mrf.mxu0 }
 0x213   : > { %v3811_v22 = vpop.f32.mrf.mxu1 }
 0x214   : > { %1592 = vperm.xlu2 %2697, %v3786_v48   ;;  %v3815_v53 = vpop.eup %2726 }
 0x215   : > { %4761 = vst [vmem:[#allocation43_spill] sm:$0xff] %v3815_v53 }
 0x216   : > { %v785_v8 = vpop.xlane.xlu2 %784 }
 0x217   : > { %v3792_v52 = vmax.f32 %v3789_v25, %v785_v8 }
 0x219   : > { %2096 = vst.msk [vmem:[#allocation2 + $0x88] sm:$0xff] %vm313_vm0, %v3792_v52 }
 0x21b   : > { %v788_v47 = vpop.xlane.xlu0 %787  ;;  %v3820_v45 = vpop.f32.mrf.mxu1 }
 0x21c   : > { %v3802_v40 = vmax.f32 %v3797_v27, %v788_v47  ;;  %4763 = vst [vmem:[#allocation45_spill] sm:$0xff] %v3820_v45 }
 0x21e   : > { %v3805_v55 = vpop.permute.xlu2 %1572  ;;  %2097 = vst.msk [vmem:[#allocation2 + $0x90] sm:$0xff] %vm313_vm0, %v3802_v40 }
 0x21f   : > { %4760 = vst [vmem:[#allocation42_spill] sm:$0xff] %v3805_v55  ;;  %v3818_v55 = vpop.f32.mrf.mxu0 }
 0x220   : > { %4762 = vst [vmem:[#allocation44_spill] sm:$0xff] %v3818_v55 }
 0x226   : > { %v974_v8 = vpop.permute.xlu2 %973 }
 0x227   : > { %v1122_v32 = vsub.f32 %v3356_v59, %v974_v8  ;;  %v1123_v37 = vsub.f32 %v3358_v60, %v974_v8  ;;  %v804_v8 = vmax.f32 %v3818_v55, %v3820_v45 }
 0x229   : > { %v1192_v28 = vmul.f32 1.442695, %v1122_v32  ;;  %v1194_v47 = vmul.f32 1.442695, %v1123_v37  ;;  %1597 = vperm.xlu1 %2699, %v3815_v53  }
 0x22b   : > { %2728 = vpow2.f32 %v1192_v28 }
 0x22c   : > { %2730 = vpow2.f32 %v1194_v47 }
 0x22e   : > { %v979_v35 = vpop.permute.xlu2 %978 }
 0x22f   : > { %v1124_v43 = vsub.f32 %v3363_v63, %v979_v35  ;;  %v1125_v59 = vsub.f32 %v3365_v0, %v979_v35 }
 0x230   : > { %v791_v60 = vpop.xlane.xlu1 %790 }
 0x231   : > { %v2729_v32 = vpop.eup %2728  ;;  %v1196_v37 = vmul.f32 1.442695, %v1124_v43  ;;  %v1198_v53 = vmul.f32 1.442695, %v1125_v59  ;;  %v3829_v28 = vmax.f32 %v3822_v42, %v791_v60  ;;  %1008 = vperm.xlu1 %2699, %v3651_v51   ;;  %v801_v43 = vmax.f32 %v3809_v56, %v3811_v22 }
 0x232   : > { %v2731_v47 = vpop.eup %2730  ;;  %1814 = vmatmul.f32.gmra.mxu2 %v2729_v32  ;;  %v870_v60 = vsub.f32 %v3644_v61, %v3651_v51  ;;  %v441_v51 = vld [vmem:[%s3274_s16 + $0xf8] sm:$0xff] }
 0x233   : > { %2732 = vpow2.f32 %v1196_v37  ;;  %2098 = vst.msk [vmem:[#allocation2 + $0x98] sm:$0xff] %vm313_vm0, %v3829_v28  ;;  %1927 = vmatmul.f32.gmra.mxu3 %v2731_v47  ;;  %v3834_v63 = vadd.f32 %v2731_v47, %v2729_v32  ;;  %v3849_v47 = vpop.permute.xlu0 %1577  ;;  %583 = vmatmul.f32.gmra.mxu0 %v441_v51 }
 0x234   : > { %2734 = vpow2.f32 %v1198_v53  ;;  %805 = vmax.xlane.f32.xlu0 %v804_v8  ;;  %v912_v37 = vmul.f32 1.442695, %v870_v60  ;;  %v868_v53 = vsub.f32 %v3610_v4, %v3615_v17  ;;  %4766 = vst [vmem:[#allocation48_spill] sm:$0xff] %v3849_v47  ;;  %696 = vmatmul.f32.gmra.mxu1 %v441_v51  ;;  %v3857_v4 = vpop.f32.mrf.mxu1 }
 0x235   : > { %4768 = vst [vmem:[#allocation50_spill] sm:$0xff] %v3857_v4 }
 0x236   : > { %2736 = vpow2.f32 %v912_v37  ;;  %v908_v45 = vmul.f32 1.442695, %v868_v53  ;;  %v3855_v37 = vpop.f32.mrf.mxu0 }
 0x237   : > { %4767 = vst [vmem:[#allocation49_spill] sm:$0xff] %v3855_v37  ;;  %v807_v17 = vmax.f32 %v3855_v37, %v3857_v4 }
 0x238   : > { %2738 = vpow2.f32 %v908_v45 }
 0x239   : > { %v2733_v0 = vpop.eup %2732 }
 0x23a   : > { %v2735_v35 = vpop.eup %2734  ;;  %1817 = vmatmul.f32.gmra.mxu2 %v2733_v0 }
 0x23b   : > { %1930 = vmatmul.f32.gmra.mxu3 %v2735_v35  ;;  %v3838_v59 = vadd.f32 %v2735_v35, %v2733_v0  ;;  %v3862_v53 = vpop.permute.xlu0 %1587 }
 0x23c   : > { %v3847_v8 = vpop.eup %2736  ;;  %4769 = vst [vmem:[#allocation51_spill] sm:$0xff] %v3862_v53  ;;  %v3871_v53 = vld [vmem:[#allocation2 + $0xa8] sm:$0xff] }
 0x23d   : > { %802 = vmax.xlane.f32.xlu2 %v801_v43  ;;  %4765 = vst [vmem:[#allocation47_spill] sm:$0xff] %v3847_v8 }
 0x248   : > { %1013 = vperm.xlu0 %2698, %v3679_v58   ;;  %v3843_v32 = vpop.permute.xlu1 %1582 }
 0x249   : > { %4764 = vst [vmem:[#allocation46_spill] sm:$0xff] %v3843_v32 }
 0x250   : > { %1617 = vperm.xlu0 %2698, %v3847_v8   ;;  %v984_v0 = vpop.permute.xlu1 %983 }
 0x251   : > { %v1126_v43 = vsub.f32 %v3369_v2, %v984_v0  ;;  %v1127_v61 = vsub.f32 %v3371_v3, %v984_v0 }
 0x253   : > { %v1200_v35 = vmul.f32 1.442695, %v1126_v43  ;;  %v1202_v60 = vmul.f32 1.442695, %v1127_v61  ;;  %v3866_v43 = vpop.eup %2738 }
 0x254   : > { %4770 = vst [vmem:[#allocation52_spill] sm:$0xff] %v3866_v43 }
 0x255   : > { %2740 = vpow2.f32 %v1200_v35  ;;  %1003 = vperm.xlu2 %2697, %v3631_v11  }
 0x256   : > { %2742 = vpow2.f32 %v1202_v60 }
 0x258   : > { %v994_v2 = vpop.permute.xlu1 %993 }
 0x259   : > { %v1130_v3 = vsub.f32 %v3382_v9, %v994_v2  ;;  %v1131_v0 = vsub.f32 %v3384_v10, %v994_v2 }
 0x25b   : > { %v2741_v45 = vpop.eup %2740  ;;  %v1208_v61 = vmul.f32 1.442695, %v1130_v3  ;;  %v1210_v51 = vmul.f32 1.442695, %v1131_v0  ;;  %808 = vmax.xlane.f32.xlu1 %v807_v17  ;;  %v869_v17 = vsub.f32 %v3624_v33, %v3631_v11  ;;  %v3880_v3 = vld [vmem:[#allocation2 + $0xa0] sm:$0xff] }
 0x25c   : > { %v2743_v35 = vpop.eup %2742  ;;  %1820 = vmatmul.f32.gmra.mxu2 %v2741_v45 }
 0x25d   : > { %2744 = vpow2.f32 %v1208_v61  ;;  %1933 = vmatmul.f32.gmra.mxu3 %v2743_v35  ;;  %1607 = vperm.xlu2 %2697, %v3866_v43   ;;  %v3869_v60 = vadd.f32 %v2743_v35, %v2741_v45  ;;  %v3887_v35 = vpop.f32.mrf.mxu0 }
 0x25e   : > { %2746 = vpow2.f32 %v1210_v51  ;;  %v910_v51 = vmul.f32 1.442695, %v869_v17  ;;  %4771 = vst [vmem:[#allocation53_spill] sm:$0xff] %v3887_v35 }
 0x260   : > { %2748 = vpow2.f32 %v910_v51 }
 0x261   : > { %v797_v9 = vpop.xlane.xlu0 %796 }
 0x262   : > { %v3874_v10 = vmax.f32 %v3871_v53, %v797_v9  ;;  %v3889_v9 = vpop.f32.mrf.mxu1 }
 0x263   : > { %v2745_v2 = vpop.eup %2744  ;;  %4772 = vst [vmem:[#allocation54_spill] sm:$0xff] %v3889_v9 }
 0x264   : > { %v2747_v32 = vpop.eup %2746  ;;  %2100 = vst.msk [vmem:[#allocation2 + $0xa8] sm:$0xff] %vm313_vm0, %v3874_v10 }
 0x265   : > { %v3882_v0 = vadd.f32 %v2747_v32, %v2745_v2 }
 0x266   : > { %v3895_v43 = vpop.eup %2748 }
 0x267   : > { %v794_v45 = vpop.xlane.xlu2 %793  ;;  %4773 = vst [vmem:[#allocation55_spill] sm:$0xff] %v3895_v43 }
 0x268   : > { %v3885_v61 = vmax.f32 %v3880_v3, %v794_v45  ;;  %v3897_v45 = vpop.f32.mrf.mxu0 }
 0x269   : > { %4774 = vst [vmem:[#allocation56_spill] sm:$0xff] %v3897_v45 }
 0x26a   : > { %2099 = vst.msk [vmem:[#allocation2 + $0xa0] sm:$0xff] %vm313_vm0, %v3885_v61  ;;  %v3899_v17 = vpop.f32.mrf.mxu1 }
 0x26b   : > { %4775 = vst [vmem:[#allocation57_spill] sm:$0xff] %v3899_v17 }
 0x26f   : > { %v989_v47 = vpop.permute.xlu2 %988 }
 0x270   : > { %v1128_v33 = vsub.f32 %v3376_v6, %v989_v47  ;;  %v1129_v11 = vsub.f32 %v3378_v7, %v989_v47  ;;  %v813_v6 = vmax.f32 %v3897_v45, %v3899_v17 }
 0x272   : > { %v1204_v4 = vmul.f32 1.442695, %v1128_v33  ;;  %v1206_v37 = vmul.f32 1.442695, %v1129_v11 }
 0x274   : > { %2750 = vpow2.f32 %v1204_v4  ;;  %v999_v55 = vpop.permute.xlu0 %998  ;;  %1612 = vperm.xlu1 %2699, %v3895_v43   ;;  %v3909_v43 = vld [vmem:[#allocation2 + $0xb0] sm:$0xff] }
 0x275   : > { %2752 = vpow2.f32 %v1206_v37  ;;  %v1132_v51 = vsub.f32 %v3388_v12, %v999_v55  ;;  %v1133_v8 = vsub.f32 %v3390_v13, %v999_v55  ;;  %v810_v55 = vmax.f32 %v3887_v35, %v3889_v9  ;;  %v4826_v35 = vld [vmem:[#allocation28_spill] sm:$0xff] }
 0x277   : > { %v1212_v7 = vmul.f32 1.442695, %v1132_v51  ;;  %v1214_v47 = vmul.f32 1.442695, %v1133_v8 }
 0x279   : > { %2754 = vpow2.f32 %v1212_v7 }
 0x27a   : > { %v2751_v33 = vpop.eup %2750  ;;  %2756 = vpow2.f32 %v1214_v47  ;;  %814 = vmax.xlane.f32.xlu0 %v813_v6  ;;  %v873_v6 = vsub.f32 %v3709_v57, %v3712_v1  ;;  %v3933_v57 = vpop.f32.mrf.mxu0 }
 0x27b   : > { %v2753_v11 = vpop.eup %2752  ;;  %1823 = vmatmul.f32.gmra.mxu2 %v2751_v33  ;;  %4779 = vst [vmem:[#allocation61_spill] sm:$0xff] %v3933_v57 }
 0x27c   : > { %1936 = vmatmul.f32.gmra.mxu3 %v2753_v11  ;;  %1023 = vperm.xlu1 %2699, %v3712_v1   ;;  %v3907_v4 = vadd.f32 %v2753_v11, %v2751_v33  ;;  %v918_v7 = vmul.f32 1.442695, %v873_v6  ;;  %v3930_v11 = vpop.permute.xlu0 %1602  ;;  %v3935_v1 = vpop.f32.mrf.mxu1 }
 0x27d   : > { %4778 = vst [vmem:[#allocation60_spill] sm:$0xff] %v3930_v11 }
 0x27e   : > { %2758 = vpow2.f32 %v918_v7  ;;  %4780 = vst [vmem:[#allocation62_spill] sm:$0xff] %v3935_v1 }
 0x27f   : > { %v2755_v37 = vpop.eup %2754 }
 0x280   : > { %v2757_v12 = vpop.eup %2756 }
 0x281   : > { %v3911_v13 = vadd.f32 %v2757_v12, %v2755_v37 }
 0x283   : > { %1826 = vmatmul.f32.gmra.mxu2 %v2745_v2  ;;  %v800_v8 = vpop.xlane.xlu1 %799 }
 0x284   : > { %1939 = vmatmul.f32.gmra.mxu3 %v2747_v32  ;;  %v3916_v51 = vmax.f32 %v3909_v43, %v800_v8  ;;  %v3923_v47 = vpop.eup %2758  ;;  %v871_v32 = vsub.f32 %v3672_v62, %v3679_v58  ;;  %v3943_v8 = vld [vmem:[#allocation2 + $0xc0] sm:$0xff] }
 0x285   : > { %4776 = vst [vmem:[#allocation58_spill] sm:$0xff] %v3923_v47 }
 0x286   : > { %2101 = vst.msk [vmem:[#allocation2 + $0xb0] sm:$0xff] %vm313_vm0, %v3916_v51  ;;  %811 = vmax.xlane.f32.xlu2 %v810_v55  ;;  %v914_v2 = vmul.f32 1.442695, %v871_v32 }
 0x288   : > { %2760 = vpow2.f32 %v914_v2  ;;  %v3946_v2 = vpop.permute.xlu2 %1592 }
 0x289   : > { %4782 = vst [vmem:[#allocation64_spill] sm:$0xff] %v3946_v2 }
 0x28b   : > { %1829 = vmatmul.f32.gmra.mxu2 %v2755_v37  ;;  %v816_v37 = vmax.f32 %v3933_v57, %v3935_v1 }
 0x28c   : > { %1942 = vmatmul.f32.gmra.mxu3 %v2757_v12 }
 0x28e   : > { %1028 = vperm.xlu0 %2698, %v3722_v44   ;;  %v3941_v62 = vpop.eup %2760 }
 0x28f   : > { %4781 = vst [vmem:[#allocation63_spill] sm:$0xff] %v3941_v62 }
 0x296   : > { %1632 = vperm.xlu0 %2698, %v3923_v47  }
 0x29b   : > { %v3928_v33 = vpop.permute.xlu1 %1597 }
 0x29c   : > { %4777 = vst [vmem:[#allocation59_spill] sm:$0xff] %v3928_v33 }
 0x29e   : > { %1018 = vperm.xlu2 %2697, %v3698_v46  }
 0x2a3   : > { %v1009_v12 = vpop.permute.xlu1 %1008 }
 0x2a4   : > { %v1136_v55 = vsub.f32 %v3400_v18, %v1009_v12  ;;  %v1137_v58 = vsub.f32 %v3402_v19, %v1009_v12  ;;  %v3953_v19 = vld [vmem:[#allocation2 + $0xb8] sm:$0xff] }
 0x2a6   : > { %v1220_v6 = vmul.f32 1.442695, %v1136_v55  ;;  %v1222_v7 = vmul.f32 1.442695, %v1137_v58  ;;  %1622 = vperm.xlu2 %2697, %v3941_v62   ;;  %817 = vmax.xlane.f32.xlu1 %v816_v37  ;;  %v3955_v55 = vpop.f32.mrf.mxu0  ;;  %v3957_v58 = vpop.f32.mrf.mxu1  ;;  %v872_v37 = vsub.f32 %v3692_v38, %v3698_v46 }
 0x2a7   : > { %v806_v32 = vpop.xlane.xlu0 %805  ;;  %4783 = vst [vmem:[#allocation65_spill] sm:$0xff] %v3955_v55 }
 0x2a8   : > { %2762 = vpow2.f32 %v1220_v6  ;;  %v3949_v11 = vmax.f32 %v3943_v8, %v806_v32  ;;  %4784 = vst [vmem:[#allocation66_spill] sm:$0xff] %v3957_v58 }
 0x2a9   : > { %2764 = vpow2.f32 %v1222_v7  ;;  %v916_v7 = vmul.f32 1.442695, %v872_v37 }
 0x2aa   : > { %2103 = vst.msk [vmem:[#allocation2 + $0xc0] sm:$0xff] %vm313_vm0, %v3949_v11 }
 0x2ab   : > { %2766 = vpow2.f32 %v916_v7 }
 0x2ae   : > { %v2763_v18 = vpop.eup %2762  ;;  %v3970_v62 = vpop.f32.mrf.mxu0 }
 0x2af   : > { %v2765_v12 = vpop.eup %2764  ;;  %4785 = vst [vmem:[#allocation67_spill] sm:$0xff] %v3970_v62  ;;  %v3972_v17 = vpop.f32.mrf.mxu1 }
 0x2b0   : > { %v803_v33 = vpop.xlane.xlu2 %802  ;;  %v3961_v6 = vadd.f32 %v2765_v12, %v2763_v18  ;;  %4786 = vst [vmem:[#allocation68_spill] sm:$0xff] %v3972_v17  ;;  %v822_v37 = vmax.f32 %v3970_v62, %v3972_v17 }
 0x2b1   : > { %v3964_v32 = vmax.f32 %v3953_v19, %v803_v33 }
 0x2b3   : > { %2102 = vst.msk [vmem:[#allocation2 + $0xb8] sm:$0xff] %vm313_vm0, %v3964_v32 }
 0x2b8   : > { %v1004_v2 = vpop.permute.xlu2 %1003 }
 0x2b9   : > { %v1134_v1 = vsub.f32 %v3394_v15, %v1004_v2  ;;  %v1135_v57 = vsub.f32 %v3396_v16, %v1004_v2  ;;  %v3978_v15 = vpop.eup %2766 }
 0x2ba   : > { %v1014_v38 = vpop.permute.xlu0 %1013  ;;  %4787 = vst [vmem:[#allocation69_spill] sm:$0xff] %v3978_v15 }
 0x2bb   : > { %v1216_v46 = vmul.f32 1.442695, %v1134_v1  ;;  %v1218_v45 = vmul.f32 1.442695, %v1135_v57  ;;  %v1138_v33 = vsub.f32 %v3415_v23, %v1014_v38  ;;  %v1139_v9 = vsub.f32 %v3417_v24, %v1014_v38 }
 0x2bd   : > { %2768 = vpow2.f32 %v1216_v46  ;;  %v1224_v7 = vmul.f32 1.442695, %v1138_v33  ;;  %v1226_v47 = vmul.f32 1.442695, %v1139_v9  ;;  %v819_v9 = vmax.f32 %v3955_v55, %v3957_v58 }
 0x2be   : > { %2770 = vpow2.f32 %v1218_v45  ;;  %v3989_v45 = vld [vmem:[#allocation2 + $0xc8] sm:$0xff]  ;;  %v876_v46 = vsub.f32 %v3742_v41, %v3745_v50  ;;  %v4009_v41 = vpop.f32.mrf.mxu0 }
 0x2bf   : > { %2772 = vpow2.f32 %v1224_v7  ;;  %1627 = vperm.xlu1 %2699, %v3978_v15   ;;  %4789 = vst [vmem:[#allocation71_spill] sm:$0xff] %v4009_v41  ;;  %v4799_v15 = vld [vmem:[#allocation21_spill] sm:$0xff] }
 0x2c0   : > { %2774 = vpow2.f32 %v1226_v47  ;;  %823 = vmax.xlane.f32.xlu0 %v822_v37 }
 0x2c2   : > { %v4004_v37 = vpop.permute.xlu0 %1617 }
 0x2c3   : > { %v2769_v16 = vpop.eup %2768 }
 0x2c4   : > { %v2771_v57 = vpop.eup %2770  ;;  %1832 = vmatmul.f32.gmra.mxu2 %v2769_v16 }
 0x2c5   : > { %v2773_v23 = vpop.eup %2772  ;;  %1945 = vmatmul.f32.gmra.mxu3 %v2771_v57  ;;  %v3981_v24 = vadd.f32 %v2771_v57, %v2769_v16  ;;  %v4013_v16 = vld [vmem:[#allocation2 + $0xd8] sm:$0xff] }
 0x2c6   : > { %v2775_v1 = vpop.eup %2774 }
 0x2c7   : > { %1038 = vperm.xlu1 %2699, %v3745_v50   ;;  %v3984_v2 = vadd.f32 %v2775_v1, %v2773_v23  ;;  %v4011_v50 = vpop.f32.mrf.mxu1 }
 0x2c8   : > { %1373 = vadd.xlane.f32.xlu0 %v3756_v39  ;;  %v924_v39 = vmul.f32 1.442695, %v876_v46  ;;  %4790 = vst [vmem:[#allocation72_spill] sm:$0xff] %v4011_v50  ;;  %v4028_v46 = vpop.permute.xlu2 %1607 }
 0x2c9   : > { %4792 = vst [vmem:[#allocation74_spill] sm:$0xff] %v4028_v46  ;;  %v875_v46 = vsub.f32 %v3728_v54, %v3735_v26 }
 0x2ca   : > { %2776 = vpow2.f32 %v924_v39 }
 0x2cc   : > { %1835 = vmatmul.f32.gmra.mxu2 %v2763_v18  ;;  %v874_v18 = vsub.f32 %v3717_v14, %v3722_v44  ;;  %v825_v14 = vmax.f32 %v4009_v41, %v4011_v50  ;;  %v4032_v50 = vpop.f32.mrf.mxu2 }
 0x2cd   : > { %1948 = vmatmul.f32.gmra.mxu3 %v2765_v12  ;;  %4793 = vst [vmem:[#allocation75_spill] sm:$0xff] %v4032_v50  ;;  %v4796_v50 = vld [vmem:[#allocation22_spill] sm:$0xff] }
 0x2ce   : > { %v809_v47 = vpop.xlane.xlu1 %808  ;;  %v920_v33 = vmul.f32 1.442695, %v874_v18 }
 0x2cf   : > { %v3992_v38 = vmax.f32 %v3989_v45, %v809_v47  ;;  %820 = vmax.xlane.f32.xlu2 %v819_v9 }
 0x2d0   : > { %v4001_v12 = vpop.eup %2776  ;;  %2778 = vpow2.f32 %v920_v33  ;;  %v4030_v33 = vld [vmem:[#allocation2 + $0xd0] sm:$0xff] }
 0x2d1   : > { %2104 = vst.msk [vmem:[#allocation2 + $0xc8] sm:$0xff] %vm313_vm0, %v3992_v38 }
 0x2d2   : > { %4788 = vst [vmem:[#allocation70_spill] sm:$0xff] %v4001_v12 }
 0x2d4   : > { %1838 = vmatmul.f32.gmra.mxu2 %v2773_v23 }
 0x2d5   : > { %1951 = vmatmul.f32.gmra.mxu3 %v2775_v1 }
 0x2d6   : > { %v4018_v57 = vpop.eup %2778 }
 0x2d7   : > { %4791 = vst [vmem:[#allocation73_spill] sm:$0xff] %v4018_v57 }
 0x2dc   : > { %1043 = vperm.xlu0 %2698, %v3792_v52  }
 0x2e4   : > { %1647 = vperm.xlu0 %2698, %v4001_v12  }
 0x2e6   : > { %v4006_v7 = vpop.permute.xlu1 %1612 }
 0x2e7   : > { %1033 = vperm.xlu2 %2697, %v3735_v26  }
 0x2ec   : > { %1058 = vperm.xlu0 %2698, %v3885_v61  }
 0x2ed   : > { %v815_v44 = vpop.xlane.xlu0 %814 }
 0x2ee   : > { %v1024_v23 = vpop.permute.xlu1 %1023  ;;  %v4021_v1 = vmax.f32 %v4013_v16, %v815_v44 }
 0x2ef   : > { %v1142_v9 = vsub.f32 %v3444_v30, %v1024_v23  ;;  %v1143_v47 = vsub.f32 %v3446_v31, %v1024_v23  ;;  %1637 = vperm.xlu2 %2697, %v4018_v57   ;;  %v4034_v31 = vpop.f32.mrf.mxu3 }
 0x2f0   : > { %2106 = vst.msk [vmem:[#allocation2 + $0xd8] sm:$0xff] %vm313_vm0, %v4021_v1 }
 0x2f1   : > { %v1232_v39 = vmul.f32 1.442695, %v1142_v9  ;;  %v1234_v18 = vmul.f32 1.442695, %v1143_v47  ;;  %826 = vmax.xlane.f32.xlu1 %v825_v14  ;;  %4794 = vst [vmem:[#allocation76_spill] sm:$0xff] %v4034_v31 }
 0x2f2   : > { %v922_v14 = vmul.f32 1.442695, %v875_v46 }
 0x2f3   : > { %2780 = vpow2.f32 %v1232_v39  ;;  %v4045_v39 = vpop.f32.mrf.mxu2 }
 0x2f4   : > { %2782 = vpow2.f32 %v1234_v18  ;;  %4795 = vst [vmem:[#allocation77_spill] sm:$0xff] %v4045_v39 }
 0x2f5   : > { %2784 = vpow2.f32 %v922_v14 }
 0x2f7   : > { %v4049_v17 = vpop.f32.mrf.mxu3 }
 0x2f8   : > { %4797 = vst [vmem:[#allocation22_spill] sm:$0xff] %v4049_v17 }
 0x2f9   : > { %v2781_v44 = vpop.eup %2780  ;;  %v812_v30 = vpop.xlane.xlu2 %811 }
 0x2fa   : > { %v2783_v41 = vpop.eup %2782  ;;  %v4037_v23 = vmax.f32 %v4030_v33, %v812_v30  ;;  %v4798_v30 = vld [vmem:[#allocation20_spill] sm:$0xff] }
 0x2fb   : > { %v4041_v9 = vadd.f32 %v2783_v41, %v2781_v44  ;;  %v4053_v46 = vpop.eup %2784 }
 0x2fc   : > { %2105 = vst.msk [vmem:[#allocation2 + $0xd0] sm:$0xff] %vm313_vm0, %v4037_v23 }
 0x2fd   : > { %4800 = vst [vmem:[#allocation20_spill] sm:$0xff] %v4053_v46 }
 0x300   : > { %v1029_v47 = vpop.permute.xlu0 %1028 }
 0x301   : > { %v1144_v18 = vsub.f32 %v3458_v34, %v1029_v47  ;;  %v1145_v57 = vsub.f32 %v4796_v50, %v1029_v47  ;;  %v1019_v31 = vpop.permute.xlu2 %1018  ;;  %v4055_v34 = vpop.f32.mrf.mxu2 }
 0x302   : > { %v1140_v62 = vsub.f32 %v4798_v30, %v1019_v31  ;;  %v1141_v26 = vsub.f32 %v4799_v15, %v1019_v31  ;;  %4801 = vst [vmem:[#allocation21_spill] sm:$0xff] %v4055_v34  ;;  %v4057_v50 = vpop.f32.mrf.mxu3 }
 0x303   : > { %v1236_v54 = vmul.f32 1.442695, %v1144_v18  ;;  %v1238_v58 = vmul.f32 1.442695, %v1145_v57  ;;  %4802 = vst [vmem:[#allocation78_spill] sm:$0xff] %v4057_v50 }
 0x304   : > { %v1228_v55 = vmul.f32 1.442695, %v1140_v62  ;;  %v1230_v12 = vmul.f32 1.442695, %v1141_v26  ;;  %v879_v26 = vsub.f32 %v3822_v42, %v3829_v28  ;;  %v877_v42 = vsub.f32 %v3789_v25, %v3792_v52 }
 0x305   : > { %2786 = vpow2.f32 %v1236_v54 }
 0x306   : > { %2788 = vpow2.f32 %v1238_v58 }
 0x307   : > { %2790 = vpow2.f32 %v1228_v55 }
 0x308   : > { %2792 = vpow2.f32 %v1230_v12  ;;  %v4069_v12 = vld [vmem:[#allocation2 + $0xe0] sm:$0xff] }
 0x309   : > { %v4064_v55 = vpop.f32.mrf.mxu2 }
 0x30a   : > { %1642 = vperm.xlu1 %2699, %v4053_v46   ;;  %4804 = vst [vmem:[#allocation80_spill] sm:$0xff] %v4064_v55  ;;  %v4066_v58 = vpop.f32.mrf.mxu3  ;;  %v4819_v55 = vld [vmem:[#allocation26_spill] sm:$0xff] }
 0x30b   : > { %v2787_v47 = vpop.eup %2786  ;;  %4805 = vst [vmem:[#allocation81_spill] sm:$0xff] %v4066_v58  ;;  %v4818_v58 = vld [vmem:[#allocation25_spill] sm:$0xff] }
 0x30c   : > { %v2789_v30 = vpop.eup %2788 }
 0x30d   : > { %v2791_v15 = vpop.eup %2790  ;;  %v4060_v31 = vadd.f32 %v2789_v30, %v2787_v47 }
 0x30e   : > { %v2793_v57 = vpop.eup %2792  ;;  %1841 = vmatmul.f32.gmra.mxu2 %v2791_v15 }
 0x30f   : > { %4803 = vst [vmem:[#allocation79_spill] sm:$0xff] %v4060_v31  ;;  %1954 = vmatmul.f32.gmra.mxu3 %v2793_v57  ;;  %v4062_v62 = vadd.f32 %v2793_v57, %v2791_v15 }
 0x311   : > { %v4077_v54 = vpop.f32.mrf.mxu2 }
 0x312   : > { %4806 = vst [vmem:[#allocation82_spill] sm:$0xff] %v4077_v54  ;;  %v4079_v15 = vpop.f32.mrf.mxu3  ;;  %v4117_v54 = vpop.permute.xlu2 %1622 }
 0x313   : > { %4807 = vst [vmem:[#allocation83_spill] sm:$0xff] %v4079_v15 }
 0x314   : > { %4817 = vst [vmem:[#allocation93_spill] sm:$0xff] %v4117_v54 }
 0x316   : > { %1844 = vmatmul.f32.gmra.mxu2 %v2781_v44  ;;  %1385 = vadd.xlane.f32.xlu0 %v3838_v59  ;;  %v930_v59 = vmul.f32 1.442695, %v879_v26  ;;  %v4101_v26 = vld [vmem:[#allocation2 + $0xf0] sm:$0xff] }
 0x317   : > { %1957 = vmatmul.f32.gmra.mxu3 %v2783_v41  ;;  %4813 = vst [vmem:[#allocation89_spill] sm:$0xff] %v4101_v26 }
 0x318   : > { %1376 = vadd.xlane.f32.xlu2 %v3766_v49  ;;  %2794 = vpow2.f32 %v930_v59 }
 0x319   : > { %v818_v14 = vpop.xlane.xlu1 %817  ;;  %v4083_v41 = vpop.f32.mrf.mxu2 }
 0x31a   : > { %v4073_v18 = vmax.f32 %v4069_v12, %v818_v14  ;;  %4808 = vst [vmem:[#allocation84_spill] sm:$0xff] %v4083_v41  ;;  %v4085_v49 = vpop.f32.mrf.mxu3  ;;  %v4094_v14 = vpop.permute.xlu0 %1632 }
 0x31b   : > { %4809 = vst [vmem:[#allocation85_spill] sm:$0xff] %v4085_v49 }
 0x31c   : > { %2107 = vst.msk [vmem:[#allocation2 + $0xe0] sm:$0xff] %vm313_vm0, %v4073_v18 }
 0x31e   : > { %1847 = vmatmul.f32.gmra.mxu2 %v2787_v47  ;;  %v4087_v44 = vpop.eup %2794  ;;  %v926_v47 = vmul.f32 1.442695, %v877_v42 }
 0x31f   : > { %1960 = vmatmul.f32.gmra.mxu3 %v2789_v30  ;;  %4810 = vst [vmem:[#allocation86_spill] sm:$0xff] %v4087_v44 }
 0x320   : > { %2796 = vpow2.f32 %v926_v47  ;;  %v1308_v47 = vld [vmem:[#allocation3] sm:$0xff] }
 0x321   : > { %v4092_v57 = vpop.f32.mrf.mxu2 }
 0x322   : > { %4811 = vst [vmem:[#allocation87_spill] sm:$0xff] %v4092_v57  ;;  %v4096_v15 = vpop.f32.mrf.mxu3 }
 0x323   : > { %4812 = vst [vmem:[#allocation88_spill] sm:$0xff] %v4096_v15 }
 0x326   : > { %v4114_v42 = vpop.eup %2796 }
 0x327   : > { %4816 = vst [vmem:[#allocation92_spill] sm:$0xff] %v4114_v42 }
 0x329   : > { %v4108_v52 = vpop.f32.mrf.mxu2 }
 0x32a   : > { %1662 = vperm.xlu0 %2698, %v4087_v44   ;;  %4814 = vst [vmem:[#allocation90_spill] sm:$0xff] %v4108_v52  ;;  %v4110_v57 = vpop.f32.mrf.mxu3  ;;  %v4127_v44 = vld [vmem:[#allocation2 + $0xe8] sm:$0xff] }
 0x32b   : > { %4815 = vst [vmem:[#allocation91_spill] sm:$0xff] %v4110_v57 }
 0x330   : > { %1048 = vperm.xlu2 %2697, %v3802_v40  }
 0x331   : > { %v4099_v30 = vpop.permute.xlu1 %1627  ;;  %v4123_v41 = vpop.f32.mrf.mxu2 }
 0x332   : > { %1073 = vperm.xlu0 %2698, %v3964_v32   ;;  %4821 = vst [vmem:[#allocation25_spill] sm:$0xff] %v4123_v41 }
 0x333   : > { %v824_v59 = vpop.xlane.xlu0 %823 }
 0x334   : > { %v4105_v25 = vmax.f32 %v4101_v26, %v824_v59  ;;  %1379 = vadd.xlane.f32.xlu1 %v3784_v29  ;;  %v4820_v29 = vld [vmem:[#allocation27_spill] sm:$0xff] }
 0x335   : > { %v1340_v39 = vmul.f32 %v4820_v29, %v1308_v47  ;;  %v4823_v29 = vld [vmem:[#allocation23_spill] sm:$0xff] }
 0x336   : > { %2109 = vst.msk [vmem:[#allocation2 + $0xf0] sm:$0xff] %vm313_vm0, %v4105_v25 }
 0x338   : > { %1652 = vperm.xlu2 %2697, %v4114_v42   ;;  %v4125_v42 = vpop.f32.mrf.mxu3 }
 0x339   : > { %v1039_v15 = vpop.permute.xlu1 %1038  ;;  %4822 = vst [vmem:[#allocation26_spill] sm:$0xff] %v4125_v42  ;;  %v4824_v42 = vld [vmem:[#allocation24_spill] sm:$0xff] }
 0x33a   : > { %v1148_v59 = vsub.f32 %v4818_v58, %v1039_v15  ;;  %v1149_v17 = vsub.f32 %v4819_v55, %v1039_v15 }
 0x33b   : > { %v1374_v52 = vpop.xlane.xlu0 %1373 }
 0x33c   : > { %v1244_v46 = vmul.f32 1.442695, %v1148_v59  ;;  %v1246_v57 = vmul.f32 1.442695, %v1149_v17  ;;  %v1468_v49 = vadd.f32 %v1374_v52, %v1340_v39  ;;  %v878_v17 = vsub.f32 %v3797_v27, %v3802_v40  ;;  %v4825_v40 = vld [vmem:[#allocation29_spill] sm:$0xff] }
 0x33e   : > { %2798 = vpow2.f32 %v1244_v46  ;;  %1501 = vst.msk [vmem:[#allocation3] sm:$0xff] %vm313_vm0, %v1468_v49  ;;  %v928_v47 = vmul.f32 1.442695, %v878_v17 }
 0x33f   : > { %2800 = vpow2.f32 %v1246_v57  ;;  %v1734_v57 = vmul.f32 0.0, %v4006_v7 }
 0x340   : > { %2802 = vpow2.f32 %v928_v47 }
 0x342   : > { %v821_v54 = vpop.xlane.xlu2 %820 }
 0x343   : > { %v4130_v58 = vmax.f32 %v4127_v44, %v821_v54 }
 0x344   : > { %v2799_v55 = vpop.eup %2798 }
 0x345   : > { %v2801_v15 = vpop.eup %2800  ;;  %2108 = vst.msk [vmem:[#allocation2 + $0xe8] sm:$0xff] %vm313_vm0, %v4130_v58 }
 0x346   : > { %v4136_v39 = vadd.f32 %v2801_v15, %v2799_v55 }
 0x347   : > { %v1833_v46 = vpop.f32.mrf.mxu2 }
 0x348   : > { %v1946_v49 = vpop.f32.mrf.mxu3 }
 0x349   : > { %v1947_v52 = vadd.f32 %v1946_v49, %v1833_v46  ;;  %v1735_v49 = vmul.f32 0.0, %v4004_v37 }
 0x34a   : > { %v1034_v59 = vpop.permute.xlu2 %1033 }
 0x34b   : > { %v1146_v54 = vsub.f32 %v4823_v29, %v1034_v59  ;;  %v1147_v41 = vsub.f32 %v4824_v42, %v1034_v59  ;;  %v4141_v50 = vadd.f32 %v1947_v52, %v1734_v57  ;;  %v4160_v59 = vld [vmem:[#allocation2 + $0xf8] sm:$0xff] }
 0x34d   : > { %v1240_v34 = vmul.f32 1.442695, %v1146_v54  ;;  %v1242_v26 = vmul.f32 1.442695, %v1147_v41  ;;  %1053 = vperm.xlu1 %2699, %v3829_v28   ;;  %v4149_v41 = vpop.eup %2802 }
 0x34e   : > { %v1044_v27 = vpop.permute.xlu0 %1043 }
 0x34f   : > { %2804 = vpow2.f32 %v1240_v34  ;;  %v1150_v31 = vsub.f32 %v4825_v40, %v1044_v27  ;;  %v1151_v7 = vsub.f32 %v4826_v35, %v1044_v27  ;;  %v1836_v46 = vpop.f32.mrf.mxu2 }
 0x350   : > { %2806 = vpow2.f32 %v1242_v26  ;;  %v1949_v17 = vpop.f32.mrf.mxu3 }
 0x351   : > { %v1248_v29 = vmul.f32 1.442695, %v1150_v31  ;;  %v1250_v42 = vmul.f32 1.442695, %v1151_v7  ;;  %v1950_v57 = vadd.f32 %v1949_v17, %v1836_v46  ;;  %v882_v31 = vsub.f32 %v3909_v43, %v3916_v51  ;;  %v1312_v17 = vld [vmem:[#allocation3 + $0x20] sm:$0xff] }
 0x352   : > { %v4182_v46 = vpop.permute.xlu2 %1637 }
 0x353   : > { %2808 = vpow2.f32 %v1248_v29  ;;  %v4147_v52 = vadd.f32 %v1950_v57, %v1735_v49  ;;  %v936_v27 = vmul.f32 1.442695, %v882_v31  ;;  %v881_v31 = vsub.f32 %v3871_v53, %v3874_v10 }
 0x354   : > { %2810 = vpow2.f32 %v1250_v42 }
 0x355   : > { %4827 = vst [vmem:[#allocation27_spill] sm:$0xff] %v4147_v52  ;;  %v2805_v28 = vpop.eup %2804  ;;  %1657 = vperm.xlu1 %2699, %v4149_v41   ;;  %2812 = vpow2.f32 %v936_v27  ;;  %v4830_v52 = vld [vmem:[#allocation31_spill] sm:$0xff] }
 0x356   : > { %v2807_v34 = vpop.eup %2806  ;;  %1850 = vmatmul.f32.gmra.mxu2 %v2805_v28 }
 0x357   : > { %1963 = vmatmul.f32.gmra.mxu3 %v2807_v34  ;;  %v4152_v35 = vadd.f32 %v2807_v34, %v2805_v28  ;;  %v4185_v29 = vpop.f32.mrf.mxu2  ;;  %v4829_v34 = vld [vmem:[#allocation34_spill] sm:$0xff] }
 0x358   : > { %v4187_v57 = vpop.f32.mrf.mxu3 }
 0x359   : > { %v2809_v26 = vpop.eup %2808 }
 0x35a   : > { %v2811_v47 = vpop.eup %2810 }
 0x35b   : > { %v4154_v37 = vadd.f32 %v2811_v47, %v2809_v26 }
 0x35c   : > { %1394 = vadd.xlane.f32.xlu0 %v3882_v0  ;;  %v4167_v0 = vpop.eup %2812 }
 0x35e   : > { %1853 = vmatmul.f32.gmra.mxu2 %v2799_v55  ;;  %v4172_v55 = vpop.permute.xlu0 %1647 }
 0x35f   : > { %1966 = vmatmul.f32.gmra.mxu3 %v2801_v15 }
 0x361   : > { %1382 = vadd.xlane.f32.xlu2 %v3834_v63  ;;  %v880_v63 = vsub.f32 %v3880_v3, %v3885_v61  ;;  %v1309_v3 = vld [vmem:[#allocation3 + $0x8] sm:$0xff]  ;;  %v4828_v61 = vld [vmem:[#allocation36_spill] sm:$0xff] }
 0x362   : > { %v1344_v49 = vmul.f32 %v4828_v61, %v1312_v17 }
 0x363   : > { %v932_v43 = vmul.f32 1.442695, %v880_v63  ;;  %v934_v63 = vmul.f32 1.442695, %v881_v31 }
 0x364   : > { %v827_v54 = vpop.xlane.xlu1 %826 }
 0x365   : > { %v4163_v40 = vmax.f32 %v4160_v59, %v827_v54  ;;  %2814 = vpow2.f32 %v932_v43  ;;  %v1737_v43 = vmul.f32 0.0, %v4099_v30 }
 0x366   : > { %1856 = vmatmul.f32.gmra.mxu2 %v2809_v26  ;;  %v4179_v7 = vpop.permute.xlu0 %1058  ;;  %2816 = vpow2.f32 %v934_v63 }
 0x367   : > { %2110 = vst.msk [vmem:[#allocation2 + $0xf8] sm:$0xff] %vm313_vm0, %v4163_v40  ;;  %1969 = vmatmul.f32.gmra.mxu3 %v2811_v47 }
 0x36b   : > { %v4177_v15 = vpop.eup %2814 }
 0x370   : > { %1677 = vperm.xlu0 %2698, %v4167_v0  }
 0x378   : > { %1088 = vperm.xlu0 %2698, %v4037_v23  }
 0x379   : > { %1063 = vperm.xlu2 %2697, %v3874_v10  }
 0x37f   : > { %1388 = vadd.xlane.f32.xlu1 %v3869_v60  ;;  %v1341_v60 = vmul.f32 %v4829_v34, %v1309_v3 }
 0x381   : > { %1667 = vperm.xlu2 %2697, %v4177_v15  }
 0x389   : > { %v1386_v42 = vpop.xlane.xlu0 %1385 }
 0x38a   : > { %v1472_v28 = vadd.f32 %v1386_v42, %v1344_v49  ;;  %v4831_v42 = vld [vmem:[#allocation30_spill] sm:$0xff] }
 0x38b   : > { %v1377_v26 = vpop.xlane.xlu2 %1376 }
 0x38c   : > { %1505 = vst.msk [vmem:[#allocation3 + $0x20] sm:$0xff] %vm313_vm0, %v1472_v28  ;;  %v1469_v47 = vadd.f32 %v1377_v26, %v1341_v60  ;;  %v1738_v26 = vmul.f32 0.0, %v4094_v14 }
 0x38e   : > { %1502 = vst.msk [vmem:[#allocation3 + $0x8] sm:$0xff] %vm313_vm0, %v1469_v47  ;;  %v4201_v47 = vpop.eup %2816 }
 0x391   : > { %v1842_v54 = vpop.f32.mrf.mxu2 }
 0x392   : > { %v1955_v27 = vpop.f32.mrf.mxu3 }
 0x393   : > { %v1956_v17 = vadd.f32 %v1955_v27, %v1842_v54  ;;  %v1049_v61 = vpop.permute.xlu2 %1048  ;;  %v4205_v27 = vpop.permute.xlu1 %1642 }
 0x394   : > { %v1152_v49 = vsub.f32 %v4830_v52, %v1049_v61  ;;  %v1153_v3 = vsub.f32 %v4831_v42, %v1049_v61 }
 0x395   : > { %v4197_v34 = vadd.f32 %v1956_v17, %v1737_v43  ;;  %v4832_v43 = vld [vmem:[#allocation35_spill] sm:$0xff]  ;;  %v885_v17 = vsub.f32 %v3989_v45, %v3992_v38 }
 0x396   : > { %v1252_v28 = vmul.f32 1.442695, %v1152_v49  ;;  %v1254_v60 = vmul.f32 1.442695, %v1153_v3 }
 0x397   : > { %v942_v42 = vmul.f32 1.442695, %v885_v17 }
 0x398   : > { %2818 = vpow2.f32 %v1252_v28  ;;  %1068 = vperm.xlu1 %2699, %v3916_v51   ;;  %v1310_v51 = vld [vmem:[#allocation3 + $0x10] sm:$0xff] }
 0x399   : > { %2820 = vpow2.f32 %v1254_v60  ;;  %v1845_v53 = vpop.f32.mrf.mxu2  ;;  %v1342_v14 = vmul.f32 %v4832_v43, %v1310_v51 }
 0x39a   : > { %v1958_v10 = vpop.f32.mrf.mxu3  ;;  %2822 = vpow2.f32 %v942_v42 }
 0x39b   : > { %v1959_v30 = vadd.f32 %v1958_v10, %v1845_v53  ;;  %v4833_v53 = vld [vmem:[#allocation32_spill] sm:$0xff] }
 0x39c   : > { %v4221_v28 = vpop.permute.xlu0 %1662 }
 0x39d   : > { %v4203_v31 = vadd.f32 %v1959_v30, %v1738_v26  ;;  %v4834_v26 = vld [vmem:[#allocation33_spill] sm:$0xff] }
 0x39e   : > { %v2819_v52 = vpop.eup %2818 }
 0x39f   : > { %v2821_v54 = vpop.eup %2820  ;;  %1859 = vmatmul.f32.gmra.mxu2 %v2819_v52 }
 0x3a0   : > { %1972 = vmatmul.f32.gmra.mxu3 %v2821_v54  ;;  %1672 = vperm.xlu1 %2699, %v4201_v47   ;;  %v4208_v63 = vadd.f32 %v2821_v54, %v2819_v52  ;;  %v4216_v3 = vpop.eup %2822  ;;  %v1156_v54 = vsub.f32 %v3730_v5, %v4179_v7  ;;  %v4237_v5 = vpop.permute.xlu2 %1652 }
 0x3a2   : > { %1403 = vadd.xlane.f32.xlu0 %v3961_v6  ;;  %v883_v6 = vsub.f32 %v3953_v19, %v3964_v32  ;;  %v1157_v19 = vsub.f32 %v3732_v36, %v4179_v7  ;;  %v1260_v51 = vmul.f32 1.442695, %v1156_v54 }
 0x3a4   : > { %v938_v45 = vmul.f32 1.442695, %v883_v6  ;;  %v4231_v32 = vpop.permute.xlu0 %1073 }
 0x3a6   : > { %2824 = vpow2.f32 %v938_v45  ;;  %v1311_v45 = vld [vmem:[#allocation3 + $0x18] sm:$0xff] }
 0x3a7   : > { %v1380_v61 = vpop.xlane.xlu1 %1379 }
 0x3a8   : > { %v1470_v49 = vadd.f32 %v1380_v61, %v1342_v14  ;;  %v1262_v14 = vmul.f32 1.442695, %v1157_v19  ;;  %v1740_v19 = vmul.f32 0.0, %v4205_v27  ;;  %v1741_v27 = vmul.f32 0.0, %v4172_v55 }
 0x3a9   : > { %v888_v55 = vsub.f32 %v4069_v12, %v4073_v18  ;;  %v886_v12 = vsub.f32 %v4030_v33, %v4037_v23  ;;  %v1163_v33 = vsub.f32 %v3811_v22, %v4231_v32  ;;  %v1318_v23 = vld [vmem:[#allocation3 + $0x50] sm:$0xff] }
 0x3aa   : > { %1503 = vst.msk [vmem:[#allocation3 + $0x10] sm:$0xff] %vm313_vm0, %v1470_v49  ;;  %1391 = vadd.xlane.f32.xlu2 %v3907_v4  ;;  %v1315_v49 = vld [vmem:[#allocation3 + $0x38] sm:$0xff] }
 0x3ab   : > { %v1347_v7 = vmul.f32 %v3774_v21, %v1315_v49 }
 0x3ac   : > { %v4233_v43 = vpop.eup %2824 }
 0x3b6   : > { %1692 = vperm.xlu0 %2698, %v4216_v3  }
 0x3be   : > { %1103 = vperm.xlu0 %2698, %v4130_v58  }
 0x3bf   : > { %v1054_v60 = vpop.permute.xlu1 %1053 }
 0x3c0   : > { %v1154_v10 = vsub.f32 %v4833_v53, %v1054_v60  ;;  %v1155_v30 = vsub.f32 %v4834_v26, %v1054_v60  ;;  %v4242_v60 = vpop.f32.mrf.mxu2  ;;  %v4835_v26 = vld [vmem:[#allocation37_spill] sm:$0xff] }
 0x3c2   : > { %v1256_v4 = vmul.f32 1.442695, %v1154_v10  ;;  %v1258_v52 = vmul.f32 1.442695, %v1155_v30  ;;  %1078 = vperm.xlu2 %2697, %v3949_v11   ;;  %v1343_v30 = vmul.f32 %v4835_v26, %v1311_v45 }
 0x3c4   : > { %2826 = vpow2.f32 %v1256_v4 }
 0x3c5   : > { %2828 = vpow2.f32 %v1258_v52 }
 0x3c6   : > { %2830 = vpow2.f32 %v1260_v51 }
 0x3c7   : > { %2832 = vpow2.f32 %v1262_v14  ;;  %v884_v14 = vsub.f32 %v3943_v8, %v3949_v11 }
 0x3ca   : > { %v2827_v17 = vpop.eup %2826  ;;  %1682 = vperm.xlu2 %2697, %v4233_v43   ;;  %1397 = vadd.xlane.f32.xlu1 %v3911_v13  ;;  %v4246_v13 = vpop.f32.mrf.mxu3 }
 0x3cb   : > { %v2829_v61 = vpop.eup %2828  ;;  %1862 = vmatmul.f32.gmra.mxu2 %v2827_v17 }
 0x3cc   : > { %1975 = vmatmul.f32.gmra.mxu3 %v2829_v61  ;;  %v4239_v36 = vadd.f32 %v2829_v61, %v2827_v17  ;;  %v4244_v53 = vpop.eup %2830  ;;  %v4836_v61 = vld [vmem:[#allocation38_spill] sm:$0xff] }
 0x3cd   : > { %v4249_v10 = vpop.eup %2832 }
 0x3cf   : > { %v1395_v42 = vpop.xlane.xlu0 %1394 }
 0x3d0   : > { %v1475_v6 = vadd.f32 %v1395_v42, %v1347_v7  ;;  %v4837_v7 = vld [vmem:[#allocation39_spill] sm:$0xff] }
 0x3d2   : > { %1508 = vst.msk [vmem:[#allocation3 + $0x38] sm:$0xff] %vm313_vm0, %v1475_v6 }
 0x3d3   : > { %1865 = vmatmul.f32.gmra.mxu2 %v4244_v53 }
 0x3d4   : > { %1978 = vmatmul.f32.gmra.mxu3 %v4249_v10  ;;  %v1383_v21 = vpop.xlane.xlu2 %1382 }
 0x3d5   : > { %v1471_v4 = vadd.f32 %v1383_v21, %v1343_v30  ;;  %v940_v30 = vmul.f32 1.442695, %v884_v14  ;;  %v1658_v14 = vpop.permute.xlu1 %1657 }
 0x3d7   : > { %1504 = vst.msk [vmem:[#allocation3 + $0x18] sm:$0xff] %vm313_vm0, %v1471_v4 }
 0x3d9   : > { %v1851_v52 = vpop.f32.mrf.mxu2 }
 0x3da   : > { %v1964_v54 = vpop.f32.mrf.mxu3 }
 0x3db   : > { %v1965_v51 = vadd.f32 %v1964_v54, %v1851_v52 }
 0x3dc   : > { %v1064_v17 = vpop.permute.xlu2 %1063 }
 0x3dd   : > { %v1158_v49 = vsub.f32 %v4836_v61, %v1064_v17  ;;  %v1159_v42 = vsub.f32 %v4837_v7, %v1064_v17  ;;  %v4260_v6 = vadd.f32 %v1965_v51, %v1740_v19  ;;  %v948_v17 = vmul.f32 1.442695, %v888_v55  ;;  %v4840_v55 = vld [vmem:[#allocation47_spill] sm:$0xff] }
 0x3df   : > { %v1264_v45 = vmul.f32 1.442695, %v1158_v49  ;;  %v1266_v26 = vmul.f32 1.442695, %v1159_v42 }
 0x3e1   : > { %2834 = vpow2.f32 %v1264_v45  ;;  %v1854_v21 = vpop.f32.mrf.mxu2  ;;  %v944_v45 = vmul.f32 1.442695, %v886_v12 }
 0x3e2   : > { %2836 = vpow2.f32 %v1266_v26  ;;  %v1967_v4 = vpop.f32.mrf.mxu3  ;;  %v4280_v42 = vpop.permute.xlu0 %1677 }
 0x3e3   : > { %v1968_v52 = vadd.f32 %v1967_v4, %v1854_v21  ;;  %1083 = vperm.xlu1 %2699, %v3992_v38   ;;  %2838 = vpow2.f32 %v940_v30  ;;  %v1313_v38 = vld [vmem:[#allocation3 + $0x28] sm:$0xff]  ;;  %4838 = vst [vmem:[#allocation23_spill] sm:$0xff] %v4280_v42 }
 0x3e4   : > { %v1345_v61 = vmul.f32 %v3786_v48, %v1313_v38  ;;  %2840 = vpow2.f32 %v948_v17  ;;  %v4839_v30 = vld [vmem:[#allocation41_spill] sm:$0xff]  ;;  %v1350_v38 = vmul.f32 %v4840_v55, %v1318_v23 }
 0x3e5   : > { %v4264_v11 = vadd.f32 %v1968_v52, %v1741_v27  ;;  %2842 = vpow2.f32 %v944_v45  ;;  %v1162_v52 = vsub.f32 %v3809_v56, %v4231_v32  ;;  %v1314_v32 = vld [vmem:[#allocation3 + $0x30] sm:$0xff] }
 0x3e7   : > { %v2835_v8 = vpop.eup %2834 }
 0x3e8   : > { %v2837_v54 = vpop.eup %2836  ;;  %1412 = vadd.xlane.f32.xlu0 %v4041_v9  ;;  %1868 = vmatmul.f32.gmra.mxu2 %v2835_v8 }
 0x3e9   : > { %1981 = vmatmul.f32.gmra.mxu3 %v2837_v54  ;;  %v4267_v19 = vadd.f32 %v2837_v54, %v2835_v8  ;;  %v4269_v51 = vpop.eup %2838  ;;  %v1274_v54 = vmul.f32 1.442695, %v1163_v33  ;;  %v4303_v12 = vpop.f32.mrf.mxu2  ;;  %v1743_v33 = vmul.f32 0.0, %v1658_v14  ;;  %v891_v14 = vsub.f32 %v4160_v59, %v4163_v40 }
 0x3ea   : > { %v4277_v9 = vpop.eup %2840  ;;  %v4305_v45 = vpop.f32.mrf.mxu3 }
 0x3eb   : > { %1687 = vperm.xlu1 %2699, %v4269_v51   ;;  %v4293_v8 = vpop.eup %2842 }
 0x3f2   : > { %v1389_v49 = vpop.xlane.xlu1 %1388 }
 0x3f3   : > { %v1473_v7 = vadd.f32 %v1389_v49, %v1345_v61  ;;  %1400 = vadd.xlane.f32.xlu2 %v3981_v24  ;;  %v4287_v24 = vpop.permute.xlu0 %1088  ;;  %v4297_v61 = vpop.permute.xlu2 %1667 }
 0x3f5   : > { %1506 = vst.msk [vmem:[#allocation3 + $0x28] sm:$0xff] %vm313_vm0, %v1473_v7 }
 0x3fc   : > { %1707 = vperm.xlu0 %2698, %v4277_v9  }
 0x40a   : > { %v1069_v26 = vpop.permute.xlu1 %1068 }
 0x40b   : > { %v1160_v48 = vsub.f32 %v3776_v20, %v1069_v26  ;;  %v1161_v21 = vsub.f32 %v4839_v30, %v1069_v26  ;;  %1093 = vperm.xlu2 %2697, %v4021_v1   ;;  %v1272_v20 = vmul.f32 1.442695, %v1162_v52  ;;  %v4841_v26 = vld [vmem:[#allocation43_spill] sm:$0xff] }
 0x40d   : > { %v1268_v4 = vmul.f32 1.442695, %v1160_v48  ;;  %v1270_v27 = vmul.f32 1.442695, %v1161_v21  ;;  %v1346_v48 = vmul.f32 %v4841_v26, %v1314_v32 }
 0x40f   : > { %2844 = vpow2.f32 %v1268_v4 }
 0x410   : > { %2846 = vpow2.f32 %v1270_v27 }
 0x411   : > { %2848 = vpow2.f32 %v1272_v20 }
 0x412   : > { %2850 = vpow2.f32 %v1274_v54  ;;  %v4842_v54 = vld [vmem:[#allocation44_spill] sm:$0xff] }
 0x413   : > { %1697 = vperm.xlu2 %2697, %v4293_v8  }
 0x415   : > { %v2845_v17 = vpop.eup %2844  ;;  %v1404_v49 = vpop.xlane.xlu0 %1403  ;;  %1406 = vadd.xlane.f32.xlu1 %v3984_v2 }
 0x416   : > { %v2847_v56 = vpop.eup %2846  ;;  %v1478_v7 = vadd.f32 %v1404_v49, %v1350_v38  ;;  %1871 = vmatmul.f32.gmra.mxu2 %v2845_v17  ;;  %v4843_v38 = vld [vmem:[#allocation45_spill] sm:$0xff] }
 0x417   : > { %1984 = vmatmul.f32.gmra.mxu3 %v2847_v56  ;;  %v4300_v22 = vadd.f32 %v2847_v56, %v2845_v17  ;;  %v4308_v30 = vpop.eup %2848  ;;  %v887_v56 = vsub.f32 %v4013_v16, %v4021_v1  ;;  %v4329_v1 = vpop.permute.xlu1 %1672 }
 0x418   : > { %1511 = vst.msk [vmem:[#allocation3 + $0x50] sm:$0xff] %vm313_vm0, %v1478_v7  ;;  %v4310_v21 = vpop.eup %2850 }
 0x419   : > { %v946_v26 = vmul.f32 1.442695, %v887_v56 }
 0x41d   : > { %v1392_v2 = vpop.xlane.xlu2 %1391 }
 0x41e   : > { %v1474_v4 = vadd.f32 %v1392_v2, %v1346_v48  ;;  %1874 = vmatmul.f32.gmra.mxu2 %v4308_v30  ;;  %v954_v48 = vmul.f32 1.442695, %v891_v14 }
 0x41f   : > { %1987 = vmatmul.f32.gmra.mxu3 %v4310_v21 }
 0x420   : > { %1507 = vst.msk [vmem:[#allocation3 + $0x30] sm:$0xff] %vm313_vm0, %v1474_v4 }
 0x422   : > { %v1860_v27 = vpop.f32.mrf.mxu2 }
 0x423   : > { %v1973_v52 = vpop.f32.mrf.mxu3 }
 0x424   : > { %v1974_v23 = vadd.f32 %v1973_v52, %v1860_v27  ;;  %v2148_v27 = vld [vmem:[#allocation3 + $0x10] sm:$0xff]  ;;  %v1316_v52 = vld [vmem:[#allocation3 + $0x40] sm:$0xff] }
 0x425   : > { %v1079_v20 = vpop.permute.xlu2 %1078 }
 0x426   : > { %v1164_v55 = vsub.f32 %v4842_v54, %v1079_v20  ;;  %v1165_v17 = vsub.f32 %v4843_v38, %v1079_v20  ;;  %1421 = vadd.xlane.f32.xlu0 %v4136_v39  ;;  %v4318_v49 = vadd.f32 %v1974_v23, %v1743_v33  ;;  %v889_v38 = vsub.f32 %v4127_v44, %v4130_v58 }
 0x428   : > { %v1276_v7 = vmul.f32 1.442695, %v1164_v55  ;;  %v1278_v32 = vmul.f32 1.442695, %v1165_v17  ;;  %v4338_v55 = vpop.permute.xlu0 %1692 }
 0x429   : > { %4845 = vst [vmem:[#allocation24_spill] sm:$0xff] %v4338_v55 }
 0x42a   : > { %2852 = vpow2.f32 %v1276_v7  ;;  %v1744_v7 = vmul.f32 0.0, %v4221_v28 }
 0x42b   : > { %2854 = vpow2.f32 %v1278_v32 }
 0x42c   : > { %2856 = vpow2.f32 %v946_v26  ;;  %v950_v26 = vmul.f32 1.442695, %v889_v38  ;;  %v4850_v38 = vld [vmem:[#allocation54_spill] sm:$0xff] }
 0x42d   : > { %2858 = vpow2.f32 %v954_v48 }
 0x42e   : > { %1098 = vperm.xlu1 %2699, %v4073_v18   ;;  %2860 = vrcp.f32 %v2148_v27  ;;  %v4844_v18 = vld [vmem:[#allocation52_spill] sm:$0xff]  ;;  %v4847_v27 = vld [vmem:[#allocation50_spill] sm:$0xff] }
 0x42f   : > { %v1348_v33 = vmul.f32 %v4844_v18, %v1316_v52  ;;  %2862 = vpow2.f32 %v950_v26  ;;  %v1321_v18 = vld [vmem:[#allocation3 + $0x68] sm:$0xff]  ;;  %v4358_v26 = vpop.permute.xlu2 %1682 }
 0x430   : > { %v2853_v2 = vpop.eup %2852  ;;  %v4345_v14 = vpop.permute.xlu0 %1103 }
 0x431   : > { %v2855_v4 = vpop.eup %2854  ;;  %1877 = vmatmul.f32.gmra.mxu2 %v2853_v2 }
 0x432   : > { %1990 = vmatmul.f32.gmra.mxu3 %v2855_v4  ;;  %v4325_v39 = vadd.f32 %v2855_v4, %v2853_v2  ;;  %v4327_v16 = vpop.eup %2856  ;;  %v4846_v2 = vld [vmem:[#allocation49_spill] sm:$0xff] }
 0x433   : > { %v4332_v59 = vpop.eup %2858 }
 0x434   : > { %v2861_v54 = vpop.eup %2860 }
 0x436   : > { %1702 = vperm.xlu1 %2699, %v4327_v16  }
 0x43a   : > { %1722 = vperm.xlu0 %2698, %v4332_v59  }
 0x43c   : > { %1409 = vadd.xlane.f32.xlu2 %v4062_v62 }
 0x43d   : > { %v1398_v23 = vpop.xlane.xlu1 %1397 }
 0x43e   : > { %v1476_v20 = vadd.f32 %v1398_v23, %v1348_v33  ;;  %v4848_v33 = vld [vmem:[#allocation53_spill] sm:$0xff]  ;;  %v4849_v23 = vld [vmem:[#allocation58_spill] sm:$0xff] }
 0x43f   : > { %v1168_v28 = vsub.f32 %v4848_v33, %v4287_v24 }
 0x440   : > { %1509 = vst.msk [vmem:[#allocation3 + $0x40] sm:$0xff] %vm313_vm0, %v1476_v20  ;;  %v1353_v20 = vmul.f32 %v4849_v23, %v1321_v18  ;;  %v4852_v18 = vld [vmem:[#allocation55_spill] sm:$0xff] }
 0x442   : > { %2222 = vperm.xlu0 %2698, %v2861_v54   ;;  %v4353_v54 = vpop.eup %2862 }
 0x44e   : > { %v1863_v17 = vpop.f32.mrf.mxu2 }
 0x44f   : > { %v1976_v56 = vpop.f32.mrf.mxu3 }
 0x450   : > { %v1977_v32 = vadd.f32 %v1976_v56, %v1863_v17  ;;  %v1169_v17 = vsub.f32 %v4850_v38, %v4287_v24  ;;  %v4853_v38 = vld [vmem:[#allocation56_spill] sm:$0xff] }
 0x452   : > { %v4343_v62 = vadd.f32 %v1977_v32, %v1744_v7  ;;  %v1284_v32 = vmul.f32 1.442695, %v1168_v28 }
 0x454   : > { %1108 = vperm.xlu2 %2697, %v4105_v25  }
 0x455   : > { %v1084_v48 = vpop.permute.xlu1 %1083 }
 0x456   : > { %v1166_v4 = vsub.f32 %v4846_v2, %v1084_v48  ;;  %v1167_v52 = vsub.f32 %v4847_v27, %v1084_v48  ;;  %v1286_v48 = vmul.f32 1.442695, %v1169_v17 }
 0x458   : > { %v1280_v44 = vmul.f32 1.442695, %v1166_v4  ;;  %v1282_v58 = vmul.f32 1.442695, %v1167_v52  ;;  %v4851_v4 = vld [vmem:[#allocation79_spill] sm:$0xff]  ;;  %v1317_v52 = vld [vmem:[#allocation3 + $0x48] sm:$0xff] }
 0x45a   : > { %2864 = vpow2.f32 %v1280_v44  ;;  %v1349_v44 = vmul.f32 %v4852_v18, %v1317_v52  ;;  %v2151_v52 = vld [vmem:[#allocation3 + $0x28] sm:$0xff] }
 0x45b   : > { %2866 = vpow2.f32 %v1282_v58  ;;  %v1413_v56 = vpop.xlane.xlu0 %1412 }
 0x45c   : > { %v1481_v7 = vadd.f32 %v1413_v56, %v1353_v20  ;;  %1712 = vperm.xlu2 %2697, %v4353_v54   ;;  %2868 = vpow2.f32 %v1284_v32  ;;  %v4854_v56 = vld [vmem:[#allocation57_spill] sm:$0xff] }
 0x45d   : > { %2870 = vpow2.f32 %v1286_v48 }
 0x45e   : > { %1514 = vst.msk [vmem:[#allocation3 + $0x68] sm:$0xff] %vm313_vm0, %v1481_v7 }
 0x460   : > { %v2865_v2 = vpop.eup %2864  ;;  %1415 = vadd.xlane.f32.xlu1 %v4851_v4 }
 0x461   : > { %v2867_v27 = vpop.eup %2866  ;;  %1880 = vmatmul.f32.gmra.mxu2 %v2865_v2 }
 0x462   : > { %1993 = vmatmul.f32.gmra.mxu3 %v2867_v27  ;;  %v4362_v24 = vadd.f32 %v2867_v27, %v2865_v2  ;;  %v4365_v28 = vpop.eup %2868  ;;  %v4855_v2 = vld [vmem:[#allocation89_spill] sm:$0xff] }
 0x463   : > { %v4367_v23 = vpop.eup %2870  ;;  %v890_v4 = vsub.f32 %v4855_v2, %v4105_v25  ;;  %v1319_v25 = vld [vmem:[#allocation3 + $0x58] sm:$0xff]  ;;  %v4859_v2 = vld [vmem:[#allocation70_spill] sm:$0xff] }
 0x465   : > { %v952_v27 = vmul.f32 1.442695, %v890_v4 }
 0x466   : > { %v1401_v58 = vpop.xlane.xlu2 %1400 }
 0x467   : > { %v1477_v33 = vadd.f32 %v1401_v58, %v1349_v44 }
 0x469   : > { %1510 = vst.msk [vmem:[#allocation3 + $0x48] sm:$0xff] %vm313_vm0, %v1477_v33  ;;  %1883 = vmatmul.f32.gmra.mxu2 %v4365_v28 }
 0x46a   : > { %1996 = vmatmul.f32.gmra.mxu3 %v4367_v23 }
 0x46c   : > { %1430 = vadd.xlane.f32.xlu0 %v4239_v36 }
 0x46e   : > { %v1094_v20 = vpop.permute.xlu2 %1093 }
 0x46f   : > { %v1170_v17 = vsub.f32 %v4853_v38, %v1094_v20  ;;  %v1171_v7 = vsub.f32 %v4854_v56, %v1094_v20  ;;  %v4382_v20 = vpop.permute.xlu1 %1687  ;;  %v4857_v38 = vld [vmem:[#allocation63_spill] sm:$0xff] }
 0x470   : > { %4856 = vst [vmem:[#allocation29_spill] sm:$0xff] %v4382_v20 }
 0x471   : > { %v1288_v32 = vmul.f32 1.442695, %v1170_v17  ;;  %v1290_v48 = vmul.f32 1.442695, %v1171_v7  ;;  %v4388_v7 = vpop.permute.xlu0 %1707 }
 0x472   : > { %4858 = vst [vmem:[#allocation28_spill] sm:$0xff] %v4388_v7 }
 0x473   : > { %2872 = vpow2.f32 %v1288_v32  ;;  %v2146_v32 = vld [vmem:[#allocation3] sm:$0xff] }
 0x474   : > { %2874 = vpow2.f32 %v1290_v48  ;;  %v1324_v48 = vld [vmem:[#allocation3 + $0x80] sm:$0xff] }
 0x475   : > { %2876 = vrcp.f32 %v2151_v52  ;;  %v1356_v4 = vmul.f32 %v4859_v2, %v1324_v48 }
 0x476   : > { %2878 = vpow2.f32 %v952_v27  ;;  %v4398_v2 = vpop.permute.xlu2 %1697 }
 0x477   : > { %2880 = vrcp.f32 %v2146_v32  ;;  %v4863_v32 = vld [vmem:[#allocation66_spill] sm:$0xff]  ;;  %4864 = vst [vmem:[#allocation36_spill] sm:$0xff] %v4398_v2 }
 0x478   : > { %v1175_v48 = vsub.f32 %v4863_v32, %v4345_v14 }
 0x479   : > { %v2873_v18 = vpop.eup %2872  ;;  %1113 = vperm.xlu1 %2699, %v4163_v40   ;;  %v1351_v40 = vmul.f32 %v4857_v38, %v1319_v25  ;;  %v4861_v25 = vld [vmem:[#allocation62_spill] sm:$0xff] }
 0x47a   : > { %v2875_v44 = vpop.eup %2874  ;;  %1886 = vmatmul.f32.gmra.mxu2 %v2873_v18 }
 0x47b   : > { %1999 = vmatmul.f32.gmra.mxu3 %v2875_v44  ;;  %v4378_v36 = vadd.f32 %v2875_v44, %v2873_v18  ;;  %v2877_v58 = vpop.eup %2876  ;;  %v4860_v44 = vld [vmem:[#allocation61_spill] sm:$0xff] }
 0x47c   : > { %v4380_v33 = vpop.eup %2878 }
 0x47d   : > { %v2881_v18 = vpop.eup %2880 }
 0x480   : > { %2237 = vperm.xlu0 %2698, %v2877_v58  }
 0x481   : > { %1717 = vperm.xlu1 %2699, %v4380_v33  }
 0x485   : > { %1418 = vadd.xlane.f32.xlu2 %v4152_v35 }
 0x488   : > { %v1407_v17 = vpop.xlane.xlu1 %1406 }
 0x489   : > { %v1479_v56 = vadd.f32 %v1407_v17, %v1351_v40 }
 0x48b   : > { %1512 = vst.msk [vmem:[#allocation3 + $0x58] sm:$0xff] %vm313_vm0, %v1479_v56  ;;  %v4862_v56 = vld [vmem:[#allocation65_spill] sm:$0xff] }
 0x48c   : > { %v1174_v7 = vsub.f32 %v4862_v56, %v4345_v14  ;;  %v4866_v14 = vld [vmem:[#allocation69_spill] sm:$0xff]  ;;  %v4869_v56 = vld [vmem:[#allocation48_spill] sm:$0xff] }
 0x492   : > { %v2157_v55 = vld [vmem:[#allocation3 + $0x58] sm:$0xff] }
 0x499   : > { %v1422_v27 = vpop.xlane.xlu0 %1421 }
 0x49a   : > { %v1484_v52 = vadd.f32 %v1422_v27, %v1356_v4  ;;  %v1296_v4 = vmul.f32 1.442695, %v1174_v7  ;;  %v1298_v27 = vmul.f32 1.442695, %v1175_v48  ;;  %v4867_v7 = vld [vmem:[#allocation21_spill] sm:$0xff] }
 0x49c   : > { %1517 = vst.msk [vmem:[#allocation3 + $0x80] sm:$0xff] %vm313_vm0, %v1484_v52 }
 0x49d   : > { %2212 = vperm.xlu2 %2697, %v2881_v18   ;;  %v1320_v18 = vld [vmem:[#allocation3 + $0x60] sm:$0xff] }
 0x4a0   : > { %v1099_v35 = vpop.permute.xlu1 %1098 }
 0x4a1   : > { %v1172_v58 = vsub.f32 %v4860_v44, %v1099_v35  ;;  %v1173_v38 = vsub.f32 %v4861_v25, %v1099_v35  ;;  %v1352_v25 = vmul.f32 %v4866_v14, %v1320_v18  ;;  %v4870_v14 = vld [vmem:[#allocation67_spill] sm:$0xff] }
 0x4a3   : > { %v1292_v40 = vmul.f32 1.442695, %v1172_v58  ;;  %v1294_v17 = vmul.f32 1.442695, %v1173_v38  ;;  %v4868_v38 = vld [vmem:[#allocation78_spill] sm:$0xff] }
 0x4a5   : > { %2882 = vpow2.f32 %v1292_v40  ;;  %v1926_v40 = vadd.f32 %v4868_v38, %v4867_v7  ;;  %v4871_v7 = vld [vmem:[#allocation68_spill] sm:$0xff] }
 0x4a6   : > { %2884 = vpow2.f32 %v1294_v17 }
 0x4a7   : > { %2886 = vpow2.f32 %v1296_v4 }
 0x4a8   : > { %2888 = vpow2.f32 %v1298_v27  ;;  %v2154_v27 = vld [vmem:[#allocation3 + $0x40] sm:$0xff] }
 0x4a9   : > { %2890 = vrcp.f32 %v2154_v27  ;;  %v4426_v27 = vpop.permute.xlu1 %1702 }
 0x4aa   : > { %1439 = vadd.xlane.f32.xlu0 %v4300_v22  ;;  %4872 = vst [vmem:[#allocation31_spill] sm:$0xff] %v4426_v27 }
 0x4ab   : > { %v2883_v52 = vpop.eup %2882  ;;  %1424 = vadd.xlane.f32.xlu1 %v4154_v37  ;;  %v1727_v37 = vmul.f32 0.0, %v4869_v56 }
 0x4ac   : > { %v2885_v35 = vpop.eup %2884  ;;  %v4402_v44 = vpop.permute.xlu0 %1722  ;;  %1889 = vmatmul.f32.gmra.mxu2 %v2883_v52 }
 0x4ad   : > { %4865 = vst [vmem:[#allocation34_spill] sm:$0xff] %v4402_v44  ;;  %2002 = vmatmul.f32.gmra.mxu3 %v2885_v35  ;;  %v4404_v58 = vadd.f32 %v2885_v35, %v2883_v52  ;;  %v4411_v32 = vpop.eup %2886  ;;  %v2017_v48 = vadd.f32 %v1926_v40, %v1727_v37  ;;  %v2147_v40 = vld [vmem:[#allocation3 + $0x8] sm:$0xff]  ;;  %v4877_v44 = vld [vmem:[#allocation84_spill] sm:$0xff] }
 0x4ae   : > { %v4413_v4 = vpop.eup %2888  ;;  %2892 = vrcp.f32 %v2147_v40  ;;  %v2149_v40 = vld [vmem:[#allocation3 + $0x18] sm:$0xff] }
 0x4af   : > { %v1410_v22 = vpop.xlane.xlu2 %1409  ;;  %v2891_v56 = vpop.eup %2890 }
 0x4b0   : > { %v1480_v17 = vadd.f32 %v1410_v22, %v1352_v25 }
 0x4b2   : > { %1513 = vst.msk [vmem:[#allocation3 + $0x60] sm:$0xff] %vm313_vm0, %v1480_v17 }
 0x4b4   : > { %v2223_v52 = vpop.permute.xlu0 %2222  ;;  %1892 = vmatmul.f32.gmra.mxu2 %v4411_v32  ;;  %v2893_v37 = vpop.eup %2892 }
 0x4b5   : > { %v2372_v35 = vmul.f32 %v2223_v52, %v2017_v48  ;;  %2005 = vmatmul.f32.gmra.mxu3 %v4413_v4 }
 0x4b7   : > { %2404 = vst [vmem:[%s4418_s24 + $0x10] sm:$0xff] %v2372_v35  ;;  %v1109_v18 = vpop.permute.xlu2 %1108 }
 0x4b8   : > { %v1176_v25 = vsub.f32 %v4870_v14, %v1109_v18  ;;  %v1177_v38 = vsub.f32 %v4871_v7, %v1109_v18  ;;  %v1322_v18 = vld [vmem:[#allocation3 + $0x70] sm:$0xff]  ;;  %v4873_v14 = vld [vmem:[#allocation73_spill] sm:$0xff] }
 0x4ba   : > { %v1300_v22 = vmul.f32 1.442695, %v1176_v25  ;;  %v1302_v17 = vmul.f32 1.442695, %v1177_v38  ;;  %v1354_v25 = vmul.f32 %v4873_v14, %v1322_v18  ;;  %v4435_v14 = vpop.f32.mrf.mxu3 }
 0x4bc   : > { %2894 = vpow2.f32 %v1300_v22  ;;  %v1327_v22 = vld [vmem:[#allocation3 + $0x98] sm:$0xff] }
 0x4bd   : > { %2896 = vpow2.f32 %v1302_v17 }
 0x4be   : > { %2252 = vperm.xlu0 %2698, %v2891_v56   ;;  %2898 = vrcp.f32 %v2149_v40  ;;  %v4874_v56 = vld [vmem:[#allocation86_spill] sm:$0xff] }
 0x4bf   : > { %v4444_v2 = vpop.permute.xlu2 %1712 }
 0x4c2   : > { %v2895_v48 = vpop.eup %2894 }
 0x4c3   : > { %v2897_v52 = vpop.eup %2896  ;;  %1895 = vmatmul.f32.gmra.mxu2 %v2895_v48 }
 0x4c4   : > { %2008 = vmatmul.f32.gmra.mxu3 %v2897_v52  ;;  %2217 = vperm.xlu1 %2699, %v2893_v37   ;;  %v4423_v35 = vadd.f32 %v2897_v52, %v2895_v48  ;;  %v2899_v17 = vpop.eup %2898  ;;  %v1359_v37 = vmul.f32 %v4874_v56, %v1327_v22  ;;  %v4878_v22 = vld [vmem:[#allocation85_spill] sm:$0xff] }
 0x4c5   : > { %v1935_v56 = vadd.f32 %v4878_v22, %v4877_v44 }
 0x4c6   : > { %1427 = vadd.xlane.f32.xlu2 %v4208_v63  ;;  %v4433_v63 = vpop.f32.mrf.mxu2 }
 0x4d3   : > { %v1416_v7 = vpop.xlane.xlu1 %1415 }
 0x4d4   : > { %v1482_v38 = vadd.f32 %v1416_v7, %v1354_v25  ;;  %v4875_v25 = vld [vmem:[#allocation71_spill] sm:$0xff] }
 0x4d6   : > { %1515 = vst.msk [vmem:[#allocation3 + $0x70] sm:$0xff] %vm313_vm0, %v1482_v38  ;;  %v4876_v38 = vld [vmem:[#allocation72_spill] sm:$0xff] }
 0x4de   : > { %2227 = vperm.xlu2 %2697, %v2899_v17   ;;  %v1432_v17 = vadd.f32 %v4249_v10, %v4244_v53  ;;  %v4448_v53 = vpop.f32.mrf.mxu3  ;;  %v1323_v10 = vld [vmem:[#allocation3 + $0x78] sm:$0xff] }
 0x4df   : > { %v1431_v48 = vpop.xlane.xlu0 %1430 }
 0x4e0   : > { %v1487_v52 = vadd.f32 %v1431_v48, %v1359_v37 }
 0x4e2   : > { %1520 = vst.msk [vmem:[#allocation3 + $0x98] sm:$0xff] %vm313_vm0, %v1487_v52 }
 0x4e8   : > { %1448 = vadd.xlane.f32.xlu0 %v4362_v24  ;;  %v4879_v24 = vld [vmem:[#allocation64_spill] sm:$0xff] }
 0x4e9   : > { %v1730_v52 = vmul.f32 0.0, %v4879_v24  ;;  %v4881_v24 = vld [vmem:[#allocation75_spill] sm:$0xff] }
 0x4eb   : > { %v1114_v18 = vpop.permute.xlu1 %1113  ;;  %v2020_v27 = vadd.f32 %v1935_v56, %v1730_v52  ;;  %v4882_v52 = vld [vmem:[#allocation76_spill] sm:$0xff] }
 0x4ec   : > { %v1178_v7 = vsub.f32 %v4875_v25, %v1114_v18  ;;  %v1179_v40 = vsub.f32 %v4876_v38, %v1114_v18  ;;  %v4446_v18 = vpop.f32.mrf.mxu2 }
 0x4ee   : > { %v1304_v37 = vmul.f32 1.442695, %v1178_v7  ;;  %v1306_v48 = vmul.f32 1.442695, %v1179_v40  ;;  %1433 = vadd.xlane.f32.xlu1 %v1432_v17  ;;  %v4880_v40 = vld [vmem:[#allocation20_spill] sm:$0xff] }
 0x4ef   : > { %v1355_v17 = vmul.f32 %v4880_v40, %v1323_v10  ;;  %v2150_v10 = vld [vmem:[#allocation3 + $0x20] sm:$0xff] }
 0x4f0   : > { %2900 = vpow2.f32 %v1304_v37 }
 0x4f1   : > { %2902 = vpow2.f32 %v1306_v48 }
 0x4f2   : > { %v2238_v25 = vpop.permute.xlu0 %2237  ;;  %2904 = vrcp.f32 %v2157_v55  ;;  %v4459_v55 = vpop.f32.mrf.mxu3 }
 0x4f3   : > { %v2375_v38 = vmul.f32 %v2238_v25, %v2020_v27  ;;  %v1920_v27 = vadd.f32 %v4882_v52, %v4881_v24  ;;  %4884 = vst [vmem:[#allocation35_spill] sm:$0xff] %v4459_v55  ;;  %2906 = vrcp.f32 %v2150_v10  ;;  %v2152_v52 = vld [vmem:[#allocation3 + $0x30] sm:$0xff] }
 0x4f4   : > { %v4456_v25 = vpop.f32.mrf.mxu2  ;;  %2908 = vrcp.f32 %v2152_v52 }
 0x4f5   : > { %2407 = vst [vmem:[%s4418_s24 + $0x28] sm:$0xff] %v2375_v38  ;;  %v4885_v38 = vld [vmem:[#allocation40_spill] sm:$0xff] }
 0x4f6   : > { %v2901_v44 = vpop.eup %2900  ;;  %4883 = vst [vmem:[#allocation30_spill] sm:$0xff] %v4456_v25  ;;  %v1725_v20 = vmul.f32 0.0, %v4885_v38  ;;  %v1325_v38 = vld [vmem:[#allocation3 + $0x88] sm:$0xff] }
 0x4f7   : > { %v2903_v7 = vpop.eup %2902  ;;  %1898 = vmatmul.f32.gmra.mxu2 %v2901_v44 }
 0x4f8   : > { %2011 = vmatmul.f32.gmra.mxu3 %v2903_v7  ;;  %v1419_v22 = vpop.xlane.xlu2 %1418  ;;  %v4452_v37 = vadd.f32 %v2903_v7, %v2901_v44  ;;  %v2905_v48 = vpop.eup %2904  ;;  %v2015_v40 = vadd.f32 %v1920_v27, %v1725_v20 }
 0x4f9   : > { %v1483_v56 = vadd.f32 %v1419_v22, %v1355_v17  ;;  %v2907_v17 = vpop.eup %2906  ;;  %v4476_v27 = vpop.permute.xlu1 %1717 }
 0x4fa   : > { %v4465_v22 = vpop.f32.mrf.mxu3  ;;  %4890 = vst [vmem:[#allocation39_spill] sm:$0xff] %v4476_v27  ;;  %v2160_v27 = vld [vmem:[#allocation3 + $0x70] sm:$0xff] }
 0x4fb   : > { %1516 = vst.msk [vmem:[#allocation3 + $0x78] sm:$0xff] %vm313_vm0, %v1483_v56  ;;  %2910 = vrcp.f32 %v2160_v27  ;;  %v4904_v27 = vld [vmem:[#allocation80_spill] sm:$0xff] }
 0x4fc   : > { %2267 = vperm.xlu0 %2698, %v2905_v48   ;;  %v4463_v7 = vpop.f32.mrf.mxu2 }
 0x500   : > { %v2213_v42 = vpop.permute.xlu2 %2212 }
 0x501   : > { %v2370_v44 = vmul.f32 %v2213_v42, %v2015_v40  ;;  %v1330_v42 = vld [vmem:[#allocation3 + $0xb0] sm:$0xff] }
 0x502   : > { %v4470_v24 = vpop.f32.mrf.mxu3  ;;  %v1362_v10 = vmul.f32 %v4167_v0, %v1330_v42  ;;  %v4896_v42 = vld [vmem:[#allocation25_spill] sm:$0xff] }
 0x503   : > { %2402 = vst [vmem:[%s4418_s24] sm:$0xff] %v2370_v44  ;;  %v4891_v44 = vld [vmem:[#allocation92_spill] sm:$0xff] }
 0x504   : > { %v4468_v56 = vpop.f32.mrf.mxu2  ;;  %4887 = vst [vmem:[#allocation33_spill] sm:$0xff] %v4470_v24 }
 0x505   : > { %4886 = vst [vmem:[#allocation32_spill] sm:$0xff] %v4468_v56 }
 0x507   : > { %2232 = vperm.xlu1 %2699, %v2907_v17   ;;  %1436 = vadd.xlane.f32.xlu2 %v4267_v19  ;;  %v1357_v17 = vmul.f32 %v4891_v44, %v1325_v38  ;;  %v2909_v19 = vpop.eup %2908  ;;  %v4897_v38 = vld [vmem:[#allocation26_spill] sm:$0xff] }
 0x50a   : > { %v4474_v20 = vpop.f32.mrf.mxu3 }
 0x50b   : > { %4889 = vst [vmem:[#allocation38_spill] sm:$0xff] %v4474_v20  ;;  %v1754_v20 = vmul.f32 0.0, %v4444_v2 }
 0x50c   : > { %v4472_v48 = vpop.f32.mrf.mxu2 }
 0x50d   : > { %4888 = vst [vmem:[#allocation37_spill] sm:$0xff] %v4472_v48 }
 0x512   : > { %v4482_v48 = vpop.f32.mrf.mxu3 }
 0x513   : > { %4893 = vst [vmem:[#allocation47_spill] sm:$0xff] %v4482_v48  ;;  %v4902_v48 = vld [vmem:[#allocation22_spill] sm:$0xff] }
 0x514   : > { %v4480_v25 = vpop.f32.mrf.mxu2 }
 0x515   : > { %4892 = vst [vmem:[#allocation41_spill] sm:$0xff] %v4480_v25 }
 0x51a   : > { %v4489_v52 = vpop.f32.mrf.mxu3 }
 0x51b   : > { %4895 = vst [vmem:[#allocation44_spill] sm:$0xff] %v4489_v52 }
 0x51c   : > { %v4487_v0 = vpop.f32.mrf.mxu2 }
 0x51d   : > { %v1440_v40 = vpop.xlane.xlu0 %1439  ;;  %4894 = vst [vmem:[#allocation43_spill] sm:$0xff] %v4487_v0  ;;  %v4903_v0 = vld [vmem:[#allocation42_spill] sm:$0xff] }
 0x51e   : > { %v1490_v55 = vadd.f32 %v1440_v40, %v1362_v10  ;;  %v1425_v56 = vpop.xlane.xlu1 %1424  ;;  %v1944_v10 = vadd.f32 %v4897_v38, %v4896_v42  ;;  %v4898_v40 = vld [vmem:[#allocation74_spill] sm:$0xff]  ;;  %v1726_v42 = vmul.f32 0.0, %v4903_v0 }
 0x51f   : > { %v1485_v24 = vadd.f32 %v1425_v56, %v1357_v17  ;;  %2242 = vperm.xlu2 %2697, %v2909_v19   ;;  %v1733_v44 = vmul.f32 0.0, %v4898_v40  ;;  %v1326_v40 = vld [vmem:[#allocation3 + $0x90] sm:$0xff] }
 0x520   : > { %1523 = vst.msk [vmem:[#allocation3 + $0xb0] sm:$0xff] %vm313_vm0, %v1490_v55  ;;  %v1441_v55 = vadd.f32 %v4310_v21, %v4308_v30  ;;  %v1358_v21 = vmul.f32 %v4149_v41, %v1326_v40  ;;  %v2153_v41 = vld [vmem:[#allocation3 + $0x38] sm:$0xff] }
 0x521   : > { %1518 = vst.msk [vmem:[#allocation3 + $0x88] sm:$0xff] %vm313_vm0, %v1485_v24  ;;  %v2023_v17 = vadd.f32 %v1944_v10, %v1733_v44  ;;  %2912 = vrcp.f32 %v2153_v41  ;;  %v4909_v41 = vld [vmem:[#allocation83_spill] sm:$0xff] }
 0x526   : > { %1457 = vadd.xlane.f32.xlu0 %v4404_v58  ;;  %v4901_v58 = vld [vmem:[#allocation77_spill] sm:$0xff] }
 0x527   : > { %v1923_v25 = vadd.f32 %v4902_v48, %v4901_v58 }
 0x529   : > { %v2016_v38 = vadd.f32 %v1923_v25, %v1726_v42  ;;  %v4905_v25 = vld [vmem:[#allocation81_spill] sm:$0xff] }
 0x52f   : > { %v4494_v56 = vpop.f32.mrf.mxu2 }
 0x530   : > { %4899 = vst [vmem:[#allocation45_spill] sm:$0xff] %v4494_v56  ;;  %v4498_v19 = vpop.f32.mrf.mxu3  ;;  %v2253_v24 = vpop.permute.xlu0 %2252 }
 0x531   : > { %4900 = vst [vmem:[#allocation52_spill] sm:$0xff] %v4498_v19  ;;  %v2378_v52 = vmul.f32 %v2253_v24, %v2023_v17  ;;  %1442 = vadd.xlane.f32.xlu1 %v1441_v55  ;;  %v2911_v19 = vpop.eup %2910  ;;  %v4906_v24 = vld [vmem:[#allocation46_spill] sm:$0xff] }
 0x532   : > { %v1728_v58 = vmul.f32 0.0, %v4906_v24  ;;  %v2913_v2 = vpop.eup %2912  ;;  %v2163_v24 = vld [vmem:[#allocation3 + $0x88] sm:$0xff] }
 0x533   : > { %2410 = vst [vmem:[%s4418_s24 + $0x40] sm:$0xff] %v2378_v52  ;;  %v1929_v52 = vadd.f32 %v4905_v25, %v4904_v27 }
 0x535   : > { %v2018_v42 = vadd.f32 %v1929_v52, %v1728_v58 }
 0x536   : > { %v2218_v10 = vpop.permute.xlu1 %2217 }
 0x537   : > { %v2371_v44 = vmul.f32 %v2218_v10, %v2016_v38  ;;  %v1893_v56 = vpop.f32.mrf.mxu2 }
 0x538   : > { %v2006_v30 = vpop.f32.mrf.mxu3 }
 0x539   : > { %2403 = vst [vmem:[%s4418_s24 + $0x8] sm:$0xff] %v2371_v44  ;;  %v2007_v48 = vadd.f32 %v2006_v30, %v1893_v56  ;;  %v1428_v17 = vpop.xlane.xlu2 %1427  ;;  %v2155_v56 = vld [vmem:[#allocation3 + $0x48] sm:$0xff]  ;;  %v1328_v30 = vld [vmem:[#allocation3 + $0xa0] sm:$0xff] }
 0x53a   : > { %v1486_v55 = vadd.f32 %v1428_v17, %v1358_v21  ;;  %2282 = vperm.xlu0 %2698, %v2911_v19   ;;  %2914 = vrcp.f32 %v2155_v56 }
 0x53b   : > { %v4507_v0 = vadd.f32 %v2007_v48, %v1754_v20  ;;  %v1333_v20 = vld [vmem:[#allocation3 + $0xc8] sm:$0xff]  ;;  %v1360_v48 = vmul.f32 %v4177_v15, %v1328_v30  ;;  %2916 = vrcp.f32 %v2163_v24  ;;  %v1450_v15 = vadd.f32 %v4367_v23, %v4365_v28  ;;  %v4911_v28 = vld [vmem:[#allocation87_spill] sm:$0xff]  ;;  %v4912_v23 = vld [vmem:[#allocation88_spill] sm:$0xff] }
 0x53c   : > { %1519 = vst.msk [vmem:[#allocation3 + $0x90] sm:$0xff] %vm313_vm0, %v1486_v55  ;;  %v1365_v19 = vmul.f32 %v4216_v3, %v1333_v20  ;;  %v4907_v3 = vld [vmem:[#allocation93_spill] sm:$0xff]  ;;  %v2158_v24 = vld [vmem:[#allocation3 + $0x60] sm:$0xff] }
 0x53d   : > { %v1736_v27 = vmul.f32 0.0, %v4907_v3 }
 0x540   : > { %v2915_v21 = vpop.eup %2914 }
 0x541   : > { %v2228_v38 = vpop.permute.xlu2 %2227 }
 0x542   : > { %v2373_v40 = vmul.f32 %v2228_v38, %v2018_v42  ;;  %v4908_v42 = vld [vmem:[#allocation82_spill] sm:$0xff] }
 0x543   : > { %v1932_v38 = vadd.f32 %v4909_v41, %v4908_v42 }
 0x544   : > { %2405 = vst [vmem:[%s4418_s24 + $0x18] sm:$0xff] %v2373_v40 }
 0x548   : > { %1445 = vadd.xlane.f32.xlu2 %v4325_v39  ;;  %v1953_v39 = vadd.f32 %v4187_v57, %v4185_v29  ;;  %v2917_v57 = vpop.eup %2916 }
 0x54a   : > { %2247 = vperm.xlu1 %2699, %v2913_v2   ;;  %v2026_v25 = vadd.f32 %v1953_v39, %v1736_v27  ;;  %v1329_v2 = vld [vmem:[#allocation3 + $0xa8] sm:$0xff] }
 0x55b   : > { %v1449_v10 = vpop.xlane.xlu0 %1448 }
 0x55c   : > { %v1493_v44 = vadd.f32 %v1449_v10, %v1365_v19  ;;  %v1361_v19 = vmul.f32 %v4201_v47, %v1329_v2 }
 0x55e   : > { %1526 = vst.msk [vmem:[#allocation3 + $0xc8] sm:$0xff] %vm313_vm0, %v1493_v44 }
 0x560   : > { %2257 = vperm.xlu2 %2697, %v2915_v21   ;;  %v1938_v21 = vadd.f32 %v4912_v23, %v4911_v28 }
 0x561   : > { %v1434_v17 = vpop.xlane.xlu1 %1433 }
 0x562   : > { %v1488_v55 = vadd.f32 %v1434_v17, %v1360_v48  ;;  %v4913_v17 = vld [vmem:[#allocation59_spill] sm:$0xff] }
 0x564   : > { %1521 = vst.msk [vmem:[#allocation3 + $0xa0] sm:$0xff] %vm313_vm0, %v1488_v55  ;;  %1466 = vadd.xlane.f32.xlu0 %v4452_v37  ;;  %v4910_v37 = vld [vmem:[#allocation51_spill] sm:$0xff]  ;;  %v1731_v55 = vmul.f32 0.0, %v4913_v17 }
 0x565   : > { %v1729_v40 = vmul.f32 0.0, %v4910_v37 }
 0x566   : > { %v2021_v39 = vadd.f32 %v1938_v21, %v1731_v55 }
 0x567   : > { %v2019_v56 = vadd.f32 %v1932_v38, %v1729_v40  ;;  %v1331_v38 = vld [vmem:[#allocation3 + $0xb8] sm:$0xff] }
 0x568   : > { %v1363_v37 = vmul.f32 %v4233_v43, %v1331_v38  ;;  %v1459_v43 = vadd.f32 %v4413_v4, %v4411_v32  ;;  %v1334_v38 = vld [vmem:[#allocation3 + $0xd0] sm:$0xff] }
 0x56b   : > { %v2166_v29 = vld [vmem:[#allocation3 + $0xa0] sm:$0xff] }
 0x56c   : > { %2918 = vrcp.f32 %v2166_v29 }
 0x56e   : > { %v2268_v52 = vpop.permute.xlu0 %2267 }
 0x56f   : > { %v2381_v58 = vmul.f32 %v2268_v52, %v2026_v25  ;;  %v2156_v25 = vld [vmem:[#allocation3 + $0x50] sm:$0xff]  ;;  %v1336_v52 = vld [vmem:[#allocation3 + $0xe0] sm:$0xff] }
 0x570   : > { %2920 = vrcp.f32 %v2156_v25 }
 0x571   : > { %2413 = vst [vmem:[%s4418_s24 + $0x58] sm:$0xff] %v2381_v58  ;;  %v1368_v58 = vmul.f32 %v4277_v9, %v1336_v52  ;;  %2922 = vrcp.f32 %v2158_v24  ;;  %v1739_v9 = vmul.f32 0.0, %v4182_v46 }
 0x572   : > { %v2919_v48 = vpop.eup %2918 }
 0x574   : > { %1451 = vadd.xlane.f32.xlu1 %v1450_v15 }
 0x576   : > { %v2921_v47 = vpop.eup %2920 }
 0x577   : > { %v2923_v41 = vpop.eup %2922 }
 0x578   : > { %2297 = vperm.xlu0 %2698, %v2917_v57  }
 0x579   : > { %v2233_v20 = vpop.permute.xlu1 %2232 }
 0x57a   : > { %v2374_v10 = vmul.f32 %v2233_v20, %v2019_v56  ;;  %v1437_v44 = vpop.xlane.xlu2 %1436 }
 0x57b   : > { %v1489_v30 = vadd.f32 %v1437_v44, %v1361_v19  ;;  %v4915_v44 = vld [vmem:[#allocation91_spill] sm:$0xff] }
 0x57c   : > { %2406 = vst [vmem:[%s4418_s24 + $0x20] sm:$0xff] %v2374_v10  ;;  %v4914_v10 = vld [vmem:[#allocation90_spill] sm:$0xff] }
 0x57d   : > { %1522 = vst.msk [vmem:[#allocation3 + $0xa8] sm:$0xff] %vm313_vm0, %v1489_v30  ;;  %v4916_v30 = vld [vmem:[#allocation60_spill] sm:$0xff] }
 0x57e   : > { %v1732_v46 = vmul.f32 0.0, %v4916_v30 }
 0x580   : > { %2312 = vperm.xlu0 %2698, %v2919_v48  }
 0x582   : > { %v2243_v3 = vpop.permute.xlu2 %2242 }
 0x583   : > { %v2376_v27 = vmul.f32 %v2243_v3, %v2021_v39  ;;  %v2159_v39 = vld [vmem:[#allocation3 + $0x68] sm:$0xff]  ;;  %v2162_v3 = vld [vmem:[#allocation3 + $0x80] sm:$0xff] }
 0x585   : > { %2408 = vst [vmem:[%s4418_s24 + $0x30] sm:$0xff] %v2376_v27 }
 0x589   : > { %1454 = vadd.xlane.f32.xlu2 %v4378_v36  ;;  %v1962_v36 = vadd.f32 %v4246_v13, %v4242_v60  ;;  %v1941_v60 = vadd.f32 %v4915_v44, %v4914_v10  ;;  %v1332_v13 = vld [vmem:[#allocation3 + $0xc0] sm:$0xff] }
 0x58a   : > { %v1364_v28 = vmul.f32 %v4269_v51, %v1332_v13  ;;  %v1339_v51 = vld [vmem:[#allocation3 + $0xf8] sm:$0xff] }
 0x58b   : > { %v2029_v29 = vadd.f32 %v1962_v36, %v1739_v9  ;;  %v2022_v21 = vadd.f32 %v1941_v60, %v1732_v46  ;;  %v1371_v25 = vmul.f32 %v4332_v59, %v1339_v51  ;;  %v1971_v59 = vadd.f32 %v4305_v45, %v4303_v12 }
 0x58c   : > { %v1742_v36 = vmul.f32 0.0, %v4237_v5  ;;  %v1745_v45 = vmul.f32 0.0, %v4297_v61 }
 0x58d   : > { %2262 = vperm.xlu1 %2699, %v2921_v47   ;;  %v2165_v47 = vld [vmem:[#allocation3 + $0x98] sm:$0xff] }
 0x599   : > { %v1458_v15 = vpop.xlane.xlu0 %1457 }
 0x59a   : > { %v1496_v42 = vadd.f32 %v1458_v15, %v1368_v58  ;;  %v2161_v15 = vld [vmem:[#allocation3 + $0x78] sm:$0xff] }
 0x59c   : > { %1529 = vst.msk [vmem:[#allocation3 + $0xe0] sm:$0xff] %vm313_vm0, %v1496_v42 }
 0x5a1   : > { %2272 = vperm.xlu2 %2697, %v2923_v41  }
 0x5a3   : > { %v2174_v12 = vld [vmem:[#allocation3 + $0xe0] sm:$0xff] }
 0x5a4   : > { %v1443_v40 = vpop.xlane.xlu1 %1442 }
 0x5a5   : > { %v1491_v2 = vadd.f32 %v1443_v40, %v1363_v37  ;;  %v1366_v37 = vmul.f32 %v4293_v8, %v1334_v38  ;;  %v2171_v40 = vld [vmem:[#allocation3 + $0xc8] sm:$0xff]  ;;  %v1980_v8 = vadd.f32 %v4435_v14, %v4433_v63 }
 0x5a7   : > { %1524 = vst.msk [vmem:[#allocation3 + $0xb8] sm:$0xff] %vm313_vm0, %v1491_v2  ;;  %v2035_v60 = vadd.f32 %v1980_v8, %v1745_v45 }
 0x5ac   : > { %v2283_v57 = vpop.permute.xlu0 %2282 }
 0x5ad   : > { %v2384_v56 = vmul.f32 %v2283_v57, %v2029_v29  ;;  %v2167_v57 = vld [vmem:[#allocation3 + $0xa8] sm:$0xff] }
 0x5ae   : > { %v2169_v20 = vld [vmem:[#allocation3 + $0xb8] sm:$0xff] }
 0x5af   : > { %2416 = vst [vmem:[%s4418_s24 + $0x70] sm:$0xff] %v2384_v56  ;;  %2924 = vrcp.f32 %v2169_v20  ;;  %v2032_v20 = vadd.f32 %v1971_v59, %v1742_v36 }
 0x5b0   : > { %2926 = vrcp.f32 %v2159_v39 }
 0x5b1   : > { %2928 = vrcp.f32 %v2162_v3 }
 0x5b2   : > { %2930 = vrcp.f32 %v2165_v47  ;;  %v1748_v47 = vmul.f32 0.0, %v4358_v26 }
 0x5b3   : > { %2932 = vrcp.f32 %v2161_v15 }
 0x5b5   : > { %v2925_v19 = vpop.eup %2924 }
 0x5b6   : > { %2327 = vperm.xlu0 %2698, %v2925_v19   ;;  %v2927_v27 = vpop.eup %2926 }
 0x5b7   : > { %1460 = vadd.xlane.f32.xlu1 %v1459_v43  ;;  %v2929_v52 = vpop.eup %2928 }
 0x5b8   : > { %v2931_v42 = vpop.eup %2930 }
 0x5b9   : > { %v2933_v41 = vpop.eup %2932 }
 0x5bb   : > { %v1446_v23 = vpop.xlane.xlu2 %1445 }
 0x5bc   : > { %v1492_v48 = vadd.f32 %v1446_v23, %v1364_v28  ;;  %v2248_v17 = vpop.permute.xlu1 %2247  ;;  %v1335_v23 = vld [vmem:[#allocation3 + $0xd8] sm:$0xff] }
 0x5bd   : > { %v2377_v55 = vmul.f32 %v2248_v17, %v2022_v21  ;;  %v1367_v61 = vmul.f32 %v4327_v16, %v1335_v23  ;;  %v1989_v16 = vadd.f32 %v4465_v22, %v4463_v7 }
 0x5be   : > { %1525 = vst.msk [vmem:[#allocation3 + $0xc0] sm:$0xff] %vm313_vm0, %v1492_v48 }
 0x5bf   : > { %2409 = vst [vmem:[%s4418_s24 + $0x38] sm:$0xff] %v2377_v55 }
 0x5c3   : > { %v2258_v32 = vpop.permute.xlu2 %2257 }
 0x5c4   : > { %v2379_v4 = vmul.f32 %v2258_v32, %v4141_v50  ;;  %v2168_v50 = vld [vmem:[#allocation3 + $0xb0] sm:$0xff] }
 0x5c5   : > { %2934 = vrcp.f32 %v2168_v50  ;;  %v2170_v10 = vld [vmem:[#allocation3 + $0xc0] sm:$0xff] }
 0x5c6   : > { %2411 = vst [vmem:[%s4418_s24 + $0x48] sm:$0xff] %v2379_v4  ;;  %v4917_v4 = vld [vmem:[#allocation27_spill] sm:$0xff] }
 0x5ca   : > { %1463 = vadd.xlane.f32.xlu2 %v4423_v35  ;;  %v2164_v35 = vld [vmem:[#allocation3 + $0x90] sm:$0xff] }
 0x5cb   : > { %2936 = vrcp.f32 %v2164_v35  ;;  %v2935_v2 = vpop.eup %2934 }
 0x5cc   : > { %2938 = vrcp.f32 %v2171_v40 }
 0x5cd   : > { %2940 = vrcp.f32 %v2167_v57 }
 0x5ce   : > { %2942 = vrcp.f32 %v2174_v12 }
 0x5d0   : > { %2277 = vperm.xlu1 %2699, %v2927_v27  }
 0x5d1   : > { %v2937_v56 = vpop.eup %2936 }
 0x5d2   : > { %v2939_v5 = vpop.eup %2938 }
 0x5d3   : > { %v2941_v44 = vpop.eup %2940 }
 0x5d4   : > { %v2943_v63 = vpop.eup %2942 }
 0x5d7   : > { %v1467_v24 = vpop.xlane.xlu0 %1466 }
 0x5d8   : > { %v1499_v58 = vadd.f32 %v1467_v24, %v1371_v25  ;;  %2292 = vperm.xlu1 %2699, %v2929_v52   ;;  %v1337_v52 = vld [vmem:[#allocation3 + $0xe8] sm:$0xff]  ;;  %v2038_v24 = vadd.f32 %v1989_v16, %v1748_v47  ;;  %v4931_v47 = vld [vmem:[#allocation52_spill] sm:$0xff] }
 0x5d9   : > { %v1369_v50 = vmul.f32 %v4353_v54, %v1337_v52  ;;  %v4930_v16 = vld [vmem:[#allocation45_spill] sm:$0xff] }
 0x5da   : > { %1532 = vst.msk [vmem:[#allocation3 + $0xf8] sm:$0xff] %vm313_vm0, %v1499_v58  ;;  %v2004_v52 = vadd.f32 %v4931_v47, %v4930_v16 }
 0x5e0   : > { %2307 = vperm.xlu1 %2699, %v2931_v42  }
 0x5e1   : > { %v2177_v28 = vld [vmem:[#allocation3 + $0xf8] sm:$0xff] }
 0x5e2   : > { %2287 = vperm.xlu2 %2697, %v2933_v41   ;;  %v1338_v41 = vld [vmem:[#allocation3 + $0xf0] sm:$0xff] }
 0x5e3   : > { %v1370_v26 = vmul.f32 %v4380_v33, %v1338_v41 }
 0x5e7   : > { %v1452_v9 = vpop.xlane.xlu1 %1451 }
 0x5e8   : > { %v1494_v29 = vadd.f32 %v1452_v9, %v1366_v37  ;;  %2322 = vperm.xlu1 %2699, %v2935_v2  }
 0x5ea   : > { %1527 = vst.msk [vmem:[#allocation3 + $0xd0] sm:$0xff] %vm313_vm0, %v1494_v29  ;;  %v2298_v19 = vpop.permute.xlu0 %2297  ;;  %2302 = vperm.xlu2 %2697, %v2937_v56  }
 0x5eb   : > { %v2387_v43 = vmul.f32 %v2298_v19, %v2032_v20 }
 0x5ed   : > { %2419 = vst [vmem:[%s4418_s24 + $0x88] sm:$0xff] %v2387_v43  ;;  %v4918_v43 = vld [vmem:[#allocation30_spill] sm:$0xff] }
 0x5f0   : > { %2337 = vperm.xlu1 %2699, %v2939_v5  }
 0x5f1   : > { %v2172_v13 = vld [vmem:[#allocation3 + $0xd0] sm:$0xff] }
 0x5f2   : > { %v2313_v30 = vpop.permute.xlu0 %2312  ;;  %2317 = vperm.xlu2 %2697, %v2941_v44   ;;  %2944 = vrcp.f32 %v2172_v13  ;;  %v4922_v44 = vld [vmem:[#allocation33_spill] sm:$0xff] }
 0x5f3   : > { %v2390_v46 = vmul.f32 %v2313_v30, %v2035_v60  ;;  %2946 = vrcp.f32 %v2170_v10  ;;  %v4921_v10 = vld [vmem:[#allocation32_spill] sm:$0xff] }
 0x5f4   : > { %2948 = vrcp.f32 %v2177_v28  ;;  %v4925_v28 = vld [vmem:[#allocation38_spill] sm:$0xff] }
 0x5f5   : > { %2422 = vst [vmem:[%s4418_s24 + $0xa0] sm:$0xff] %v2390_v46  ;;  %v4924_v46 = vld [vmem:[#allocation37_spill] sm:$0xff] }
 0x5f8   : > { %v2945_v14 = vpop.eup %2944  ;;  %2352 = vperm.xlu1 %2699, %v2943_v63   ;;  %v1995_v63 = vadd.f32 %v4925_v28, %v4924_v46 }
 0x5f9   : > { %v2947_v21 = vpop.eup %2946  ;;  %2342 = vperm.xlu0 %2698, %v2945_v14  }
 0x5fa   : > { %2332 = vperm.xlu2 %2697, %v2947_v21   ;;  %v2949_v55 = vpop.eup %2948  ;;  %v4926_v21 = vld [vmem:[#allocation24_spill] sm:$0xff] }
 0x5fc   : > { %v1455_v48 = vpop.xlane.xlu2 %1454 }
 0x5fd   : > { %v1495_v17 = vadd.f32 %v1455_v48, %v1367_v61  ;;  %v1750_v61 = vmul.f32 0.0, %v4926_v21  ;;  %v1896_v48 = vpop.f32.mrf.mxu2 }
 0x5ff   : > { %1528 = vst.msk [vmem:[#allocation3 + $0xd8] sm:$0xff] %vm313_vm0, %v1495_v17  ;;  %v2263_v32 = vpop.permute.xlu1 %2262  ;;  %v2040_v17 = vadd.f32 %v1995_v63, %v1750_v61 }
 0x600   : > { %v2380_v39 = vmul.f32 %v2263_v32, %v4917_v4  ;;  %2367 = vperm.xlu1 %2699, %v2949_v55   ;;  %v2009_v55 = vpop.f32.mrf.mxu3  ;;  %v4927_v4 = vld [vmem:[#allocation43_spill] sm:$0xff] }
 0x602   : > { %2412 = vst [vmem:[%s4418_s24 + $0x50] sm:$0xff] %v2380_v39  ;;  %v4928_v39 = vld [vmem:[#allocation44_spill] sm:$0xff] }
 0x604   : > { %v2273_v3 = vpop.permute.xlu2 %2272 }
 0x605   : > { %v2382_v27 = vmul.f32 %v2273_v3, %v4197_v34  ;;  %v2001_v3 = vadd.f32 %v4928_v39, %v4927_v4 }
 0x606   : > { %v2173_v51 = vld [vmem:[#allocation3 + $0xd8] sm:$0xff] }
 0x607   : > { %2414 = vst [vmem:[%s4418_s24 + $0x60] sm:$0xff] %v2382_v27  ;;  %2950 = vrcp.f32 %v2173_v51  ;;  %v4929_v51 = vld [vmem:[#allocation31_spill] sm:$0xff] }
 0x60d   : > { %v2951_v25 = vpop.eup %2950 }
 0x60e   : > { %2347 = vperm.xlu2 %2697, %v2951_v25   ;;  %v1752_v25 = vmul.f32 0.0, %v4929_v51 }
 0x628   : > { %v2328_v58 = vpop.permute.xlu0 %2327 }
 0x629   : > { %v2393_v15 = vmul.f32 %v2328_v58, %v2038_v24  ;;  %v4932_v24 = vld [vmem:[#allocation41_spill] sm:$0xff]  ;;  %v4933_v58 = vld [vmem:[#allocation47_spill] sm:$0xff] }
 0x62a   : > { %v1461_v42 = vpop.xlane.xlu1 %1460 }
 0x62b   : > { %2425 = vst [vmem:[%s4418_s24 + $0xb8] sm:$0xff] %v2393_v15  ;;  %v1497_v34 = vadd.f32 %v1461_v42, %v1369_v50  ;;  %v1998_v15 = vadd.f32 %v4933_v58, %v4932_v24  ;;  %v4934_v50 = vld [vmem:[#allocation28_spill] sm:$0xff] }
 0x62c   : > { %v1753_v42 = vmul.f32 0.0, %v4934_v50 }
 0x62d   : > { %1530 = vst.msk [vmem:[#allocation3 + $0xe8] sm:$0xff] %vm313_vm0, %v1497_v34  ;;  %v2042_v34 = vadd.f32 %v2001_v3, %v1752_v25 }
 0x634   : > { %v2175_v35 = vld [vmem:[#allocation3 + $0xe8] sm:$0xff] }
 0x635   : > { %2952 = vrcp.f32 %v2175_v35  ;;  %v4935_v35 = vld [vmem:[#allocation36_spill] sm:$0xff] }
 0x636   : > { %v1751_v41 = vmul.f32 0.0, %v4935_v35 }
 0x63b   : > { %v2953_v38 = vpop.eup %2952 }
 0x63c   : > { %2357 = vperm.xlu0 %2698, %v2953_v38  }
 0x63d   : > { %v1464_v7 = vpop.xlane.xlu2 %1463 }
 0x63e   : > { %v1498_v22 = vadd.f32 %v1464_v7, %v1370_v26  ;;  %v1899_v26 = vpop.f32.mrf.mxu2 }
 0x640   : > { %1531 = vst.msk [vmem:[#allocation3 + $0xf0] sm:$0xff] %vm313_vm0, %v1498_v22  ;;  %v2043_v22 = vadd.f32 %v2004_v52, %v1753_v42 }
 0x642   : > { %v2278_v54 = vpop.permute.xlu1 %2277 }
 0x643   : > { %v2383_v59 = vmul.f32 %v2278_v54, %v4203_v31  ;;  %v1983_v31 = vadd.f32 %v4448_v53, %v4446_v18  ;;  %v1992_v18 = vadd.f32 %v4922_v44, %v4921_v10  ;;  %v2012_v54 = vpop.f32.mrf.mxu3 }
 0x645   : > { %2415 = vst [vmem:[%s4418_s24 + $0x68] sm:$0xff] %v2383_v59  ;;  %v2288_v37 = vpop.permute.xlu2 %2287 }
 0x646   : > { %v2385_v40 = vmul.f32 %v2288_v37, %v4260_v6  ;;  %v1746_v6 = vmul.f32 0.0, %v4329_v1  ;;  %v4923_v1 = vld [vmem:[#allocation29_spill] sm:$0xff]  ;;  %v2041_v37 = vadd.f32 %v1998_v15, %v1751_v41 }
 0x647   : > { %v2176_v2 = vld [vmem:[#allocation3 + $0xf0] sm:$0xff]  ;;  %v1749_v60 = vmul.f32 0.0, %v4923_v1 }
 0x648   : > { %2417 = vst [vmem:[%s4418_s24 + $0x78] sm:$0xff] %v2385_v40  ;;  %2954 = vrcp.f32 %v2176_v2  ;;  %v2036_v19 = vadd.f32 %v1983_v31, %v1746_v6 }
 0x64a   : > { %v2293_v36 = vpop.permute.xlu1 %2292 }
 0x64b   : > { %v2386_v9 = vmul.f32 %v2293_v36, %v4264_v11  ;;  %v4919_v11 = vld [vmem:[#allocation35_spill] sm:$0xff] }
 0x64c   : > { %v1986_v8 = vadd.f32 %v4919_v11, %v4918_v43 }
 0x64d   : > { %2418 = vst [vmem:[%s4418_s24 + $0x80] sm:$0xff] %v2386_v9  ;;  %v2303_v33 = vpop.permute.xlu2 %2302  ;;  %v2013_v9 = vadd.f32 %v2012_v54, %v1899_v26 }
 0x64e   : > { %v2955_v29 = vpop.eup %2954  ;;  %v2388_v57 = vmul.f32 %v2303_v33, %v4318_v49  ;;  %v4920_v49 = vld [vmem:[#allocation23_spill] sm:$0xff]  ;;  %v4936_v33 = vld [vmem:[#allocation34_spill] sm:$0xff] }
 0x64f   : > { %2362 = vperm.xlu2 %2697, %v2955_v29   ;;  %v1747_v45 = vmul.f32 0.0, %v4920_v49  ;;  %v1756_v29 = vmul.f32 0.0, %v4936_v33 }
 0x650   : > { %2420 = vst [vmem:[%s4418_s24 + $0x90] sm:$0xff] %v2388_v57 }
 0x651   : > { %v2037_v53 = vadd.f32 %v1986_v8, %v1747_v45  ;;  %v2046_v57 = vadd.f32 %v2013_v9, %v1756_v29 }
 0x652   : > { %v2308_v56 = vpop.permute.xlu1 %2307 }
 0x653   : > { %v2389_v20 = vmul.f32 %v2308_v56, %v4343_v62  ;;  %v2039_v62 = vadd.f32 %v1992_v18, %v1749_v60  ;;  %v2010_v56 = vadd.f32 %v2009_v55, %v1896_v48 }
 0x655   : > { %2421 = vst [vmem:[%s4418_s24 + $0x98] sm:$0xff] %v2389_v20  ;;  %v2318_v12 = vpop.permute.xlu2 %2317  ;;  %v4937_v20 = vld [vmem:[#allocation39_spill] sm:$0xff] }
 0x656   : > { %v2391_v5 = vmul.f32 %v2318_v12, %v2036_v19  ;;  %v1755_v19 = vmul.f32 0.0, %v4937_v20 }
 0x658   : > { %2423 = vst [vmem:[%s4418_s24 + $0xa8] sm:$0xff] %v2391_v5  ;;  %v2045_v43 = vadd.f32 %v2010_v56, %v1755_v19 }
 0x65a   : > { %v2323_v13 = vpop.permute.xlu1 %2322 }
 0x65b   : > { %v2392_v30 = vmul.f32 %v2323_v13, %v2037_v53 }
 0x65d   : > { %2424 = vst [vmem:[%s4418_s24 + $0xb0] sm:$0xff] %v2392_v30  ;;  %v2333_v14 = vpop.permute.xlu2 %2332 }
 0x65e   : > { %v2394_v23 = vmul.f32 %v2333_v14, %v2039_v62 }
 0x660   : > { %2426 = vst [vmem:[%s4418_s24 + $0xc0] sm:$0xff] %v2394_v23 }
 0x662   : > { %v2338_v32 = vpop.permute.xlu1 %2337 }
 0x663   : > { %v2395_v27 = vmul.f32 %v2338_v32, %v2040_v17 }
 0x665   : > { %2427 = vst [vmem:[%s4418_s24 + $0xc8] sm:$0xff] %v2395_v27 }
 0x668   : > { %v2348_v38 = vpop.permute.xlu2 %2347 }
 0x669   : > { %v2397_v7 = vmul.f32 %v2348_v38, %v2042_v34 }
 0x66a   : > { %v2353_v59 = vpop.permute.xlu1 %2352 }
 0x66b   : > { %2429 = vst [vmem:[%s4418_s24 + $0xd8] sm:$0xff] %v2397_v7  ;;  %v2398_v40 = vmul.f32 %v2353_v59, %v2043_v22  ;;  %v2343_v2 = vpop.permute.xlu0 %2342 }
 0x66c   : > { %v2396_v36 = vmul.f32 %v2343_v2, %v2041_v37 }
 0x66d   : > { %2430 = vst [vmem:[%s4418_s24 + $0xe0] sm:$0xff] %v2398_v40 }
 0x66e   : > { %2428 = vst [vmem:[%s4418_s24 + $0xd0] sm:$0xff] %v2396_v36 }
 0x672   : > { %v2368_v31 = vpop.permute.xlu1 %2367 }
 0x673   : > { %v2401_v6 = vmul.f32 %v2368_v31, %v2046_v57 }
 0x675   : > { %2433 = vst [vmem:[%s4418_s24 + $0xf8] sm:$0xff] %v2401_v6 }
 0x6a9   : > { %v2363_v11 = vpop.permute.xlu2 %2362 }
 0x6aa   : > { %v2400_v8 = vmul.f32 %v2363_v11, %v2045_v43 }
 0x6ac   : > { %2432 = vst [vmem:[%s4418_s24 + $0xf0] sm:$0xff] %v2400_v8 }
 0x6ae   : > { %v2358_v12 = vpop.permute.xlu0 %2357 }
 0x6af   : > { %v2399_v5 = vmul.f32 %v2358_v12, %v4507_v0 }
 0x6b1   : > { %2431 = vst [vmem:[%s4418_s24 + $0xe8] sm:$0xff] %v2399_v5 }
 0x6b2   : > { %3073 = shalt.err (!%p3070_p13)
}
 0x6b3   : > { %s3139_s11 = smov 128   ;;  %s3140_s1 = smov 8  }
 0x6b4   : > { %2624 = dma.vmem_to_hbm [thread:$0]  (%p3216_p9), %s2450_s21, 4096, %s2452_s22, %s2435_s15, %s3139_s11, %s3139_s11, %s3140_s1  }
 0x6b5 PF: > { %s4938_s20 = sld [smem:[#allocation17_spill]]  ;;  %s2466_s28 = sand.u32 1, %s3112_s12  }
 0x6b6   : > { %p2637_p0 = pnand %p2594_p12, %p3223_p11  ;;  %s2467_s16 = scalar_lea.sflag [#allocation7], %s2466_s28 }
 0x6b8   : > { %p2638_p1 = pneg %p2637_p0 }
 0x6ba   : > { %3107 = dma.done.wait (%p2638_p1), %s2467_s16, 4096  }
 0x6bb   : > { %3109 = vsyncadd (%p2638_p1), %s2467_s16, 4294963200  ;;  %s22_s17 = sadd.s32 1, %s4938_s20   ;;  %s4939_s14 = sld [smem:[#allocation15_spill]] }
 0x6bc   : > { %p19_p2 = scmp.ge.s32.totalorder %s22_s17, 4   ;;  %s4940_s26 = sld [smem:[#allocation19_spill]] }
 0x6bd   : > { %s4941_s15 = sld [smem:[#allocation16_spill]]  ;;  %s4943_s12 = smov %s3116_s13 }
 0x6be   : > { %s4942_s16 = sld [smem:[#allocation18_spill]]  ;;  %21 = sbr.rel (!%p19_p2) target bundleno = 10 (0xa), region = 109 }
 0x6c1   : > { %s4944_s13 = smov %s4939_s14 }
 0x6c2   : > { %s4945_s14 = smov %s4940_s26 }
 0x6c3   :  { %2473 = vsyncpa [#allocation6], 1 }
 0x6c4   :  { %2475 = vsyncpa [#allocation6 + $0x1], 1 }
 0x6c5   :  { %2476 = vsyncpa [#allocation9], 1 }
 0x6c6   :  { %2478 = vsyncpa [#allocation9 + $0x1], 1 }
 0x6c7   :  { %2479 = vsyncpa [#allocation7], 1 }
 0x6c8   :  { %2481 = vsyncpa [#allocation7 + $0x1], 1 }

</bundles_post_ra>
